<compile_context>
chip_gen: v5e
topology: v5e:2x2
jax: 0.10.0
libtpu: 0.0.40
codegen_flags: <defaults>
</compile_context>

<pallas_src>
import jax
import jax.numpy as jnp
from jax.experimental import pallas as pl
from jax.experimental.pallas import tpu as pltpu

# ----------------------------- model dims ------------------------------------
VOCAB = 64        # vocab size of tweet embedding table
EMB_D = 32        # text_input_size (embedding dim / GRU input size)
HID_GRU = 32      # tweet_out_size (GRU hidden size)
NUM_GRU_LAYERS = 2
HID1 = 16         # hidden_size1 (per-head out channels of conv1, heads=8 -> 128 concat)
HID2 = 16         # hidden_size2 (conv2 out, heads=1, concat=False)
HEADS1 = 8
NEG_SLOPE = 0.2   # GATConv leaky_relu default
OUT_LANES = 128   # lane-dense output slab; the real result occupies the first HID2 lanes


# ====================== fully-fused forward kernel ============================
def _make_fused_kernel(n, seq, batch, h_gru, heads, out_lanes, neg_slope=NEG_SLOPE):
    H = h_gru

    def kernel(x_flat_ref, h0_ref,
               wih0_ref, whh0_ref, bih0_ref, bhn0_ref,
               wih1_ref, whh1_ref, bih1_ref, bhn1_ref,
               root_ref, adj_ref,
               w1h_ref, asrc1_ref, adst1_ref,
               w2h_ref, b1w2_ref, asrc2_ref, adst2_ref, bias2_ref,
               out_ref, gi_scr, hseq_scr):
        # ===================== 2-layer GRU over the full sequence =====================
        # gi already carries b_ih + [b_hr, b_hz, 0]; only the new-gate hidden bias (b_hn)
        # is added per step (inside the reset gate, per the PyTorch GRU formula).
        def make_gru_step(whh_T, b_hn, store_hidden):
            def step(t, h):
                row = pl.multiple_of(t * n, n)
                gi = gi_scr[pl.ds(row, n), :]                        # (n, 3H)
                gh = jnp.dot(h, whh_T, preferred_element_type=jnp.float32)
                # PyTorch gate ordering: [reset, update, new]
                r = jax.nn.sigmoid(gi[:, 0:H] + gh[:, 0:H])
                z = jax.nn.sigmoid(gi[:, H:2 * H] + gh[:, H:2 * H])
                ng = jnp.tanh(gi[:, 2 * H:3 * H] + r * (gh[:, 2 * H:3 * H] + b_hn))
                h_new = (1.0 - z) * ng + z * h
                if store_hidden:
                    hseq_scr[pl.ds(row, n), :] = h_new
                return h_new
            return step

        # Layer 0: ONE (T*N, D) x (D, 3H) matmul for every timestep's input gates ...
        gi_scr[...] = jnp.dot(x_flat_ref[...], wih0_ref[...],
                              preferred_element_type=jnp.float32) + bih0_ref[...]
        # ... then a cheap recurrent loop (one small matmul per step), fully unrolled (T=8).
        jax.lax.fori_loop(0, seq, make_gru_step(whh0_ref[...], bhn0_ref[...], True),
                          h0_ref[0], unroll=True)

        # Layer 1: same trick, input gates computed from layer-0's hidden sequence.
        gi_scr[...] = jnp.dot(hseq_scr[...], wih1_ref[...],
                              preferred_element_type=jnp.float32) + bih1_ref[...]
        h_last = jax.lax.fori_loop(0, seq, make_gru_step(whh1_ref[...], bhn1_ref[...], False),
                                   h0_ref[1], unroll=True)           # (n, H) == hn[-1]

        # Overwrite the first `batch` rows with user_root_embed (PyTorch in-place loop).
        row_ids = jax.lax.broadcasted_iota(jnp.int32, (n, 1), 0)
        x_in = jnp.where(row_ids < batch, root_ref[...], h_last)     # (n, H)

        # ============================ 2 fused GATConv layers ==========================
        adj = adj_ref[...]                                            # (n, n); adj[i,j]=1 iff edge j->i

        def gat_attention(xw_h, asrc_b, adst_b):
            # xw_h: (heads, n, c); asrc_b/adst_b: (heads, 1, c).  Head-batched PyG attention.
            a_src = jnp.sum(xw_h * asrc_b, axis=-1)                   # (heads, n)
            a_dst = jnp.sum(xw_h * adst_b, axis=-1)                   # (heads, n)
            e = a_dst[:, :, None] + a_src[:, None, :]                 # e[h,i,j] = a_dst[i] + a_src[j]
            e = jnp.where(e > 0.0, e, neg_slope * e)                  # leaky_relu(0.2)
            e = jnp.where(adj[None, :, :] > 0.0, e, -1e30)            # mask non-edges
            e = e - jnp.max(e, axis=-1, keepdims=True)
            p = jnp.exp(e)                                            # masked entries underflow to 0
            att = p * pl.reciprocal(jnp.sum(p, axis=-1, keepdims=True), approx=True)
            return jnp.einsum('hij,hjc->hic', att, xw_h,
                              preferred_element_type=jnp.float32)     # (heads, n, c)

        # conv1 (heads=8, concat=True) -- the concatenated output is never materialized.
        x_b = jnp.broadcast_to(x_in[None, :, :], (heads, n, H))
        xw1 = jnp.einsum('hnf,hfc->hnc', x_b, w1h_ref[...],
                         preferred_element_type=jnp.float32)          # (heads, n, C1)
        o1 = gat_attention(xw1, asrc1_ref[...], adst1_ref[...])       # (heads, n, C1)

        # conv2 (heads=1, concat=False); conv1 bias pre-folded through w2 (b1w2) in the wrapper.
        xw2 = jnp.einsum('hnc,hcd->hnd', o1, w2h_ref[...],
                         preferred_element_type=jnp.float32).sum(axis=0) + b1w2_ref[...]  # (n, C2)
        o2 = gat_attention(xw2[None, :, :], asrc2_ref[...], adst2_ref[...])[0]            # (n, C2)
        o2 = o2 + bias2_ref[...]

        # Lane-dense (n, 128) store; the wrapper slices the first C2 lanes.
        out_ref[...] = jnp.concatenate(
            [o2, jnp.zeros((n, out_lanes - o2.shape[-1]), jnp.float32)], axis=-1)

    return kernel


# ================================ glue ========================================
def build_adj(edge_index, n_nodes):
    """Dense adjacency mask, adj[i, j] = 1 if edge j -> i; self loops added (PyG default)."""
    src = edge_index[0]
    dst = edge_index[1]
    adj = jnp.zeros((n_nodes, n_nodes), jnp.float32)
    adj = adj.at[dst, src].set(1.0)
    diag = jnp.arange(n_nodes)
    adj = adj.at[diag, diag].set(1.0)
    return adj


def init_params(key):
    ks = jax.random.split(key, 20)
    s = 0.1
    p = {}
    p["embedding"] = jax.random.normal(ks[0], (VOCAB, EMB_D), jnp.float32)
    # GRU layer 0
    p["gru_w_ih0"] = s * jax.random.normal(ks[1], (3 * HID_GRU, EMB_D), jnp.float32)
    p["gru_w_hh0"] = s * jax.random.normal(ks[2], (3 * HID_GRU, HID_GRU), jnp.float32)
    p["gru_b_ih0"] = s * jax.random.normal(ks[3], (3 * HID_GRU,), jnp.float32)
    p["gru_b_hh0"] = s * jax.random.normal(ks[4], (3 * HID_GRU,), jnp.float32)
    # GRU layer 1
    p["gru_w_ih1"] = s * jax.random.normal(ks[5], (3 * HID_GRU, HID_GRU), jnp.float32)
    p["gru_w_hh1"] = s * jax.random.normal(ks[6], (3 * HID_GRU, HID_GRU), jnp.float32)
    p["gru_b_ih1"] = s * jax.random.normal(ks[7], (3 * HID_GRU,), jnp.float32)
    p["gru_b_hh1"] = s * jax.random.normal(ks[8], (3 * HID_GRU,), jnp.float32)
    # GATConv 1: in=HID_GRU, out=HID1, heads=8, concat=True
    p["w1"] = s * jax.random.normal(ks[9], (HID_GRU, HEADS1 * HID1), jnp.float32)
    p["att_src1"] = s * jax.random.normal(ks[10], (HEADS1, HID1), jnp.float32)
    p["att_dst1"] = s * jax.random.normal(ks[11], (HEADS1, HID1), jnp.float32)
    p["bias1"] = s * jax.random.normal(ks[12], (HEADS1 * HID1,), jnp.float32)
    # GATConv 2: in=8*HID1, out=HID2, heads=1, concat=False
    p["w2"] = s * jax.random.normal(ks[13], (HEADS1 * HID1, HID2), jnp.float32)
    p["att_src2"] = s * jax.random.normal(ks[14], (1, HID2), jnp.float32)
    p["att_dst2"] = s * jax.random.normal(ks[15], (1, HID2), jnp.float32)
    p["bias2"] = s * jax.random.normal(ks[16], (HID2,), jnp.float32)
    return p


def _fold_gru_biases(b_ih, b_hh, h):
    """Fold the hidden reset/update biases into the input bias; return (bih_folded, b_hn)."""
    bih_f = b_ih + jnp.concatenate([b_hh[:2 * h], jnp.zeros((h,), jnp.float32)])
    b_hn = b_hh[2 * h:3 * h]
    return bih_f.reshape(1, -1), b_hn.reshape(1, -1)


def tree_gat_forward(params, merged_tree_feature, merged_tree_edge_index,
                     user_root_embed, h0):
    # Embedding lookup + permute(1, 0, 2): (N, T) -> (N, T, D) -> (T, N, D) -> flat (T*N, D)
    emb = params["embedding"][merged_tree_feature]
    x_seq = jnp.transpose(emb, (1, 0, 2)).astype(jnp.float32)
    T, N, D = x_seq.shape
    x_flat = x_seq.reshape(T * N, D)

    batch = user_root_embed.shape[0]
    root_pad = jnp.zeros((N, HID_GRU), jnp.float32).at[:batch, :].set(
        user_root_embed.astype(jnp.float32))
    adj = build_adj(merged_tree_edge_index, N)

    # GRU weights (PyTorch layout (3H, in)) -> (in, 3H); hidden r/z biases pre-folded.
    wih0 = params["gru_w_ih0"].T
    whh0 = params["gru_w_hh0"].T
    wih1 = params["gru_w_ih1"].T
    whh1 = params["gru_w_hh1"].T
    bih0f, bhn0 = _fold_gru_biases(params["gru_b_ih0"], params["gru_b_hh0"], HID_GRU)
    bih1f, bhn1 = _fold_gru_biases(params["gru_b_ih1"], params["gru_b_hh1"], HID_GRU)

    # GAT weights in head-batched layout (avoids in-kernel reshapes of the concat dim).
    w1h = params["w1"].reshape(HID_GRU, HEADS1, HID1).transpose(1, 0, 2)   # (heads, Fin, C1)
    asrc1 = params["att_src1"].reshape(HEADS1, 1, HID1)
    adst1 = params["att_dst1"].reshape(HEADS1, 1, HID1)
    w2h = params["w2"].reshape(HEADS1, HID1, HID2)                         # (heads, C1, C2)
    b1w2 = (params["bias1"] @ params["w2"]).reshape(1, HID2)               # bias1 folded thru w2
    asrc2 = params["att_src2"].reshape(1, 1, HID2)
    adst2 = params["att_dst2"].reshape(1, 1, HID2)
    bias2 = params["bias2"].reshape(1, HID2)

    kernel = _make_fused_kernel(n=N, seq=T, batch=batch, h_gru=HID_GRU,
                                heads=HEADS1, out_lanes=OUT_LANES)
    out_pad = pl.pallas_call(
        kernel,
        out_shape=jax.ShapeDtypeStruct((N, OUT_LANES), jnp.float32),
        scratch_shapes=[pltpu.VMEM((T * N, 3 * HID_GRU), jnp.float32),   # gi (input gate preacts)
                        pltpu.VMEM((T * N, HID_GRU), jnp.float32)],      # layer-0 hidden sequence
    )(x_flat, h0.astype(jnp.float32),
      wih0, whh0, bih0f, bhn0,
      wih1, whh1, bih1f, bhn1,
      root_pad, adj,
      w1h, asrc1, adst1, w2h, b1w2, asrc2, adst2, bias2)
    return out_pad[:, :HID2]


# ================================ main ========================================
if __name__ == "__main__":
    N_NODES = 16
    SEQ = 8
    BATCH = 2
    N_EDGES = 24

    key = jax.random.PRNGKey(0)
    k_feat, k_src, k_dst, k_root, k_h0, k_params = jax.random.split(key, 6)

    merged_tree_feature = jax.random.randint(k_feat, (N_NODES, SEQ), 0, VOCAB, dtype=jnp.int32)
    src = jax.random.randint(k_src, (N_EDGES,), 0, N_NODES, dtype=jnp.int32)
    dst = jax.random.randint(k_dst, (N_EDGES,), 0, N_NODES, dtype=jnp.int32)
    merged_tree_edge_index = jnp.stack([src, dst], axis=0)            # (2, E)
    user_root_embed = jax.random.normal(k_root, (BATCH, HID_GRU), jnp.float32)
    # h0 = torch.randn(...) in the PyTorch forward -> deterministic random here.
    h0 = jax.random.normal(k_h0, (NUM_GRU_LAYERS, N_NODES, HID_GRU), jnp.float32)

    params = init_params(k_params)

    fwd = jax.jit(tree_gat_forward)
    out = fwd(params, merged_tree_feature, merged_tree_edge_index, user_root_embed, h0)
    out = jax.block_until_ready(out)
    assert out.shape == (N_NODES, HID2)
    print("KERNEL_OK")
</pallas_src>

<mosaic_0001>
module attributes {stable_mosaic.version = 11 : i64} {
  func.func @kernel(%arg0: memref<128x32xf32, #tpu.memory_space<vmem>>, %arg1: memref<2x16x32xf32, #tpu.memory_space<vmem>>, %arg2: memref<32x96xf32, #tpu.memory_space<vmem>>, %arg3: memref<32x96xf32, #tpu.memory_space<vmem>>, %arg4: memref<1x96xf32, #tpu.memory_space<vmem>>, %arg5: memref<1x32xf32, #tpu.memory_space<vmem>>, %arg6: memref<32x96xf32, #tpu.memory_space<vmem>>, %arg7: memref<32x96xf32, #tpu.memory_space<vmem>>, %arg8: memref<1x96xf32, #tpu.memory_space<vmem>>, %arg9: memref<1x32xf32, #tpu.memory_space<vmem>>, %arg10: memref<16x32xf32, #tpu.memory_space<vmem>>, %arg11: memref<16x16xf32, #tpu.memory_space<vmem>>, %arg12: memref<8x32x16xf32, #tpu.memory_space<vmem>>, %arg13: memref<8x1x16xf32, #tpu.memory_space<vmem>>, %arg14: memref<8x1x16xf32, #tpu.memory_space<vmem>>, %arg15: memref<8x16x16xf32, #tpu.memory_space<vmem>>, %arg16: memref<1x16xf32, #tpu.memory_space<vmem>>, %arg17: memref<1x1x16xf32, #tpu.memory_space<vmem>>, %arg18: memref<1x1x16xf32, #tpu.memory_space<vmem>>, %arg19: memref<1x16xf32, #tpu.memory_space<vmem>>, %arg20: memref<16x128xf32, #tpu.memory_space<vmem>>, %arg21: memref<128x96xf32, #tpu.memory_space<vmem>>, %arg22: memref<128x32xf32, #tpu.memory_space<vmem>>) attributes {dimension_semantics = [], scalar_prefetch = 0 : i64, scratch_operands = 2 : i64, tpu.core_type = #tpu.core_type<tc>} {
    %c0 = arith.constant 0 : index
    %c0_0 = arith.constant 0 : index
    %0 = vector.load %arg0[%c0, %c0_0] : memref<128x32xf32, #tpu.memory_space<vmem>>, vector<128x32xf32>
    %c0_1 = arith.constant 0 : index
    %c0_2 = arith.constant 0 : index
    %1 = vector.load %arg2[%c0_1, %c0_2] : memref<32x96xf32, #tpu.memory_space<vmem>>, vector<32x96xf32>
    %cst = arith.constant dense<0.000000e+00> : vector<128x96xf32>
    %2 = tpu.matmul %0, %1, %cst {dimension_numbers = #tpu.dot_dimension_numbers<[1], [0], [0], [1], [0, 0, 1, 1], [], []>} : vector<128x32xf32>, vector<32x96xf32>, vector<128x96xf32> -> vector<128x96xf32>
    %c0_3 = arith.constant 0 : index
    %c0_4 = arith.constant 0 : index
    %3 = vector.load %arg4[%c0_3, %c0_4] : memref<1x96xf32, #tpu.memory_space<vmem>>, vector<1x96xf32>
    %4 = vector.broadcast %3 : vector<1x96xf32> to vector<128x96xf32>
    %5 = arith.addf %2, %4 : vector<128x96xf32>
    %c0_5 = arith.constant 0 : index
    %c0_6 = arith.constant 0 : index
    %6 = vector.load %arg21[%c0_5, %c0_6] : memref<128x96xf32, #tpu.memory_space<vmem>>, vector<128x96xf32>
    tpu.vector_store %arg21[%c0_5, %c0_6], %5 {strides = array<i32>} : memref<128x96xf32, #tpu.memory_space<vmem>>, vector<128x96xf32>,
    %c0_7 = arith.constant 0 : index
    %c0_8 = arith.constant 0 : index
    %7 = vector.load %arg3[%c0_7, %c0_8] : memref<32x96xf32, #tpu.memory_space<vmem>>, vector<32x96xf32>
    %c0_9 = arith.constant 0 : index
    %c0_10 = arith.constant 0 : index
    %8 = vector.load %arg5[%c0_9, %c0_10] : memref<1x32xf32, #tpu.memory_space<vmem>>, vector<1x32xf32>
    %c0_11 = arith.constant 0 : index
    %c0_12 = arith.constant 0 : index
    %c0_13 = arith.constant 0 : index
    %9 = vector.load %arg1[%c0_11, %c0_12, %c0_13] : memref<2x16x32xf32, #tpu.memory_space<vmem>>, vector<1x16x32xf32>
    %10 = vector.shape_cast %9 : vector<1x16x32xf32> to vector<16x32xf32>
    %c0_i32 = arith.constant 0 : i32
    %c16_i32 = arith.constant 16 : i32
    %11 = arith.muli %c0_i32, %c16_i32 : i32
    %12 = tpu.assume_multiple %11, 16 : i32
    %13 = arith.index_cast %12 : i32 to index
    %c0_14 = arith.constant 0 : index
    %14 = vector.load %arg21[%13, %c0_14] : memref<128x96xf32, #tpu.memory_space<vmem>>, vector<16x96xf32>
    %cst_15 = arith.constant dense<0.000000e+00> : vector<16x96xf32>
    %15 = tpu.matmul %10, %7, %cst_15 {dimension_numbers = #tpu.dot_dimension_numbers<[1], [0], [0], [1], [0, 0, 1, 1], [], []>} : vector<16x32xf32>, vector<32x96xf32>, vector<16x96xf32> -> vector<16x96xf32>
    %16 = vector.extract_strided_slice %14 {offsets = [0, 0], sizes = [16, 32], strides = [1, 1]} : vector<16x96xf32> to vector<16x32xf32>
    %17 = vector.extract_strided_slice %15 {offsets = [0, 0], sizes = [16, 32], strides = [1, 1]} : vector<16x96xf32> to vector<16x32xf32>
    %18 = arith.addf %16, %17 : vector<16x32xf32>
    %19 = arith.negf %18 : vector<16x32xf32>
    %20 = math.exp %19 : vector<16x32xf32>
    %cst_16 = arith.constant 1.000000e+00 : f32
    %21 = vector.broadcast %cst_16 : f32 to vector<16x32xf32>
    %22 = arith.addf %21, %20 : vector<16x32xf32>
    %23 = arith.divf %21, %22 : vector<16x32xf32>
    %24 = vector.extract_strided_slice %14 {offsets = [0, 32], sizes = [16, 32], strides = [1, 1]} : vector<16x96xf32> to vector<16x32xf32>
    %25 = vector.extract_strided_slice %15 {offsets = [0, 32], sizes = [16, 32], strides = [1, 1]} : vector<16x96xf32> to vector<16x32xf32>
    %26 = arith.addf %24, %25 : vector<16x32xf32>
    %27 = arith.negf %26 : vector<16x32xf32>
    %28 = math.exp %27 : vector<16x32xf32>
    %cst_17 = arith.constant 1.000000e+00 : f32
    %29 = vector.broadcast %cst_17 : f32 to vector<16x32xf32>
    %30 = arith.addf %29, %28 : vector<16x32xf32>
    %31 = arith.divf %29, %30 : vector<16x32xf32>
    %32 = vector.extract_strided_slice %14 {offsets = [0, 64], sizes = [16, 32], strides = [1, 1]} : vector<16x96xf32> to vector<16x32xf32>
    %33 = vector.extract_strided_slice %15 {offsets = [0, 64], sizes = [16, 32], strides = [1, 1]} : vector<16x96xf32> to vector<16x32xf32>
    %34 = vector.broadcast %8 : vector<1x32xf32> to vector<16x32xf32>
    %35 = arith.addf %33, %34 : vector<16x32xf32>
    %36 = arith.mulf %23, %35 : vector<16x32xf32>
    %37 = arith.addf %32, %36 : vector<16x32xf32>
    %38 = math.tanh %37 : vector<16x32xf32>
    %cst_18 = arith.constant 1.000000e+00 : f32
    %39 = vector.broadcast %cst_18 : f32 to vector<16x32xf32>
    %40 = arith.subf %39, %31 : vector<16x32xf32>
    %41 = arith.mulf %40, %38 : vector<16x32xf32>
    %42 = arith.mulf %31, %10 : vector<16x32xf32>
    %43 = arith.addf %41, %42 : vector<16x32xf32>
    %44 = arith.index_cast %12 : i32 to index
    %c0_19 = arith.constant 0 : index
    %45 = vector.load %arg22[%44, %c0_19] : memref<128x32xf32, #tpu.memory_space<vmem>>, vector<16x32xf32>
    tpu.vector_store %arg22[%44, %c0_19], %43 {strides = array<i32>} : memref<128x32xf32, #tpu.memory_space<vmem>>, vector<16x32xf32>,
    %c1_i32 = arith.constant 1 : i32
    %c16_i32_20 = arith.constant 16 : i32
    %46 = arith.muli %c1_i32, %c16_i32_20 : i32
    %47 = tpu.assume_multiple %46, 16 : i32
    %48 = arith.index_cast %47 : i32 to index
    %c0_21 = arith.constant 0 : index
    %49 = vector.load %arg21[%48, %c0_21] : memref<128x96xf32, #tpu.memory_space<vmem>>, vector<16x96xf32>
    %cst_22 = arith.constant dense<0.000000e+00> : vector<16x96xf32>
    %50 = tpu.matmul %43, %7, %cst_22 {dimension_numbers = #tpu.dot_dimension_numbers<[1], [0], [0], [1], [0, 0, 1, 1], [], []>} : vector<16x32xf32>, vector<32x96xf32>, vector<16x96xf32> -> vector<16x96xf32>
    %51 = vector.extract_strided_slice %49 {offsets = [0, 0], sizes = [16, 32], strides = [1, 1]} : vector<16x96xf32> to vector<16x32xf32>
    %52 = vector.extract_strided_slice %50 {offsets = [0, 0], sizes = [16, 32], strides = [1, 1]} : vector<16x96xf32> to vector<16x32xf32>
    %53 = arith.addf %51, %52 : vector<16x32xf32>
    %54 = arith.negf %53 : vector<16x32xf32>
    %55 = math.exp %54 : vector<16x32xf32>
    %cst_23 = arith.constant 1.000000e+00 : f32
    %56 = vector.broadcast %cst_23 : f32 to vector<16x32xf32>
    %57 = arith.addf %56, %55 : vector<16x32xf32>
    %58 = arith.divf %56, %57 : vector<16x32xf32>
    %59 = vector.extract_strided_slice %49 {offsets = [0, 32], sizes = [16, 32], strides = [1, 1]} : vector<16x96xf32> to vector<16x32xf32>
    %60 = vector.extract_strided_slice %50 {offsets = [0, 32], sizes = [16, 32], strides = [1, 1]} : vector<16x96xf32> to vector<16x32xf32>
    %61 = arith.addf %59, %60 : vector<16x32xf32>
    %62 = arith.negf %61 : vector<16x32xf32>
    %63 = math.exp %62 : vector<16x32xf32>
    %cst_24 = arith.constant 1.000000e+00 : f32
    %64 = vector.broadcast %cst_24 : f32 to vector<16x32xf32>
    %65 = arith.addf %64, %63 : vector<16x32xf32>
    %66 = arith.divf %64, %65 : vector<16x32xf32>
    %67 = vector.extract_strided_slice %49 {offsets = [0, 64], sizes = [16, 32], strides = [1, 1]} : vector<16x96xf32> to vector<16x32xf32>
    %68 = vector.extract_strided_slice %50 {offsets = [0, 64], sizes = [16, 32], strides = [1, 1]} : vector<16x96xf32> to vector<16x32xf32>
    %69 = vector.broadcast %8 : vector<1x32xf32> to vector<16x32xf32>
    %70 = arith.addf %68, %69 : vector<16x32xf32>
    %71 = arith.mulf %58, %70 : vector<16x32xf32>
    %72 = arith.addf %67, %71 : vector<16x32xf32>
    %73 = math.tanh %72 : vector<16x32xf32>
    %cst_25 = arith.constant 1.000000e+00 : f32
    %74 = vector.broadcast %cst_25 : f32 to vector<16x32xf32>
    %75 = arith.subf %74, %66 : vector<16x32xf32>
    %76 = arith.mulf %75, %73 : vector<16x32xf32>
    %77 = arith.mulf %66, %43 : vector<16x32xf32>
    %78 = arith.addf %76, %77 : vector<16x32xf32>
    %79 = arith.index_cast %47 : i32 to index
    %c0_26 = arith.constant 0 : index
    %80 = vector.load %arg22[%79, %c0_26] : memref<128x32xf32, #tpu.memory_space<vmem>>, vector<16x32xf32>
    tpu.vector_store %arg22[%79, %c0_26], %78 {strides = array<i32>} : memref<128x32xf32, #tpu.memory_space<vmem>>, vector<16x32xf32>,
    %c2_i32 = arith.constant 2 : i32
    %c16_i32_27 = arith.constant 16 : i32
    %81 = arith.muli %c2_i32, %c16_i32_27 : i32
    %82 = tpu.assume_multiple %81, 16 : i32
    %83 = arith.index_cast %82 : i32 to index
    %c0_28 = arith.constant 0 : index
    %84 = vector.load %arg21[%83, %c0_28] : memref<128x96xf32, #tpu.memory_space<vmem>>, vector<16x96xf32>
    %cst_29 = arith.constant dense<0.000000e+00> : vector<16x96xf32>
    %85 = tpu.matmul %78, %7, %cst_29 {dimension_numbers = #tpu.dot_dimension_numbers<[1], [0], [0], [1], [0, 0, 1, 1], [], []>} : vector<16x32xf32>, vector<32x96xf32>, vector<16x96xf32> -> vector<16x96xf32>
    %86 = vector.extract_strided_slice %84 {offsets = [0, 0], sizes = [16, 32], strides = [1, 1]} : vector<16x96xf32> to vector<16x32xf32>
    %87 = vector.extract_strided_slice %85 {offsets = [0, 0], sizes = [16, 32], strides = [1, 1]} : vector<16x96xf32> to vector<16x32xf32>
    %88 = arith.addf %86, %87 : vector<16x32xf32>
    %89 = arith.negf %88 : vector<16x32xf32>
    %90 = math.exp %89 : vector<16x32xf32>
    %cst_30 = arith.constant 1.000000e+00 : f32
    %91 = vector.broadcast %cst_30 : f32 to vector<16x32xf32>
    %92 = arith.addf %91, %90 : vector<16x32xf32>
    %93 = arith.divf %91, %92 : vector<16x32xf32>
    %94 = vector.extract_strided_slice %84 {offsets = [0, 32], sizes = [16, 32], strides = [1, 1]} : vector<16x96xf32> to vector<16x32xf32>
    %95 = vector.extract_strided_slice %85 {offsets = [0, 32], sizes = [16, 32], strides = [1, 1]} : vector<16x96xf32> to vector<16x32xf32>
    %96 = arith.addf %94, %95 : vector<16x32xf32>
    %97 = arith.negf %96 : vector<16x32xf32>
    %98 = math.exp %97 : vector<16x32xf32>
    %cst_31 = arith.constant 1.000000e+00 : f32
    %99 = vector.broadcast %cst_31 : f32 to vector<16x32xf32>
    %100 = arith.addf %99, %98 : vector<16x32xf32>
    %101 = arith.divf %99, %100 : vector<16x32xf32>
    %102 = vector.extract_strided_slice %84 {offsets = [0, 64], sizes = [16, 32], strides = [1, 1]} : vector<16x96xf32> to vector<16x32xf32>
    %103 = vector.extract_strided_slice %85 {offsets = [0, 64], sizes = [16, 32], strides = [1, 1]} : vector<16x96xf32> to vector<16x32xf32>
    %104 = vector.broadcast %8 : vector<1x32xf32> to vector<16x32xf32>
    %105 = arith.addf %103, %104 : vector<16x32xf32>
    %106 = arith.mulf %93, %105 : vector<16x32xf32>
    %107 = arith.addf %102, %106 : vector<16x32xf32>
    %108 = math.tanh %107 : vector<16x32xf32>
    %cst_32 = arith.constant 1.000000e+00 : f32
    %109 = vector.broadcast %cst_32 : f32 to vector<16x32xf32>
    %110 = arith.subf %109, %101 : vector<16x32xf32>
    %111 = arith.mulf %110, %108 : vector<16x32xf32>
    %112 = arith.mulf %101, %78 : vector<16x32xf32>
    %113 = arith.addf %111, %112 : vector<16x32xf32>
    %114 = arith.index_cast %82 : i32 to index
    %c0_33 = arith.constant 0 : index
    %115 = vector.load %arg22[%114, %c0_33] : memref<128x32xf32, #tpu.memory_space<vmem>>, vector<16x32xf32>
    tpu.vector_store %arg22[%114, %c0_33], %113 {strides = array<i32>} : memref<128x32xf32, #tpu.memory_space<vmem>>, vector<16x32xf32>,
    %c3_i32 = arith.constant 3 : i32
    %c16_i32_34 = arith.constant 16 : i32
    %116 = arith.muli %c3_i32, %c16_i32_34 : i32
    %117 = tpu.assume_multiple %116, 16 : i32
    %118 = arith.index_cast %117 : i32 to index
    %c0_35 = arith.constant 0 : index
    %119 = vector.load %arg21[%118, %c0_35] : memref<128x96xf32, #tpu.memory_space<vmem>>, vector<16x96xf32>
    %cst_36 = arith.constant dense<0.000000e+00> : vector<16x96xf32>
    %120 = tpu.matmul %113, %7, %cst_36 {dimension_numbers = #tpu.dot_dimension_numbers<[1], [0], [0], [1], [0, 0, 1, 1], [], []>} : vector<16x32xf32>, vector<32x96xf32>, vector<16x96xf32> -> vector<16x96xf32>
    %121 = vector.extract_strided_slice %119 {offsets = [0, 0], sizes = [16, 32], strides = [1, 1]} : vector<16x96xf32> to vector<16x32xf32>
    %122 = vector.extract_strided_slice %120 {offsets = [0, 0], sizes = [16, 32], strides = [1, 1]} : vector<16x96xf32> to vector<16x32xf32>
    %123 = arith.addf %121, %122 : vector<16x32xf32>
    %124 = arith.negf %123 : vector<16x32xf32>
    %125 = math.exp %124 : vector<16x32xf32>
    %cst_37 = arith.constant 1.000000e+00 : f32
    %126 = vector.broadcast %cst_37 : f32 to vector<16x32xf32>
    %127 = arith.addf %126, %125 : vector<16x32xf32>
    %128 = arith.divf %126, %127 : vector<16x32xf32>
    %129 = vector.extract_strided_slice %119 {offsets = [0, 32], sizes = [16, 32], strides = [1, 1]} : vector<16x96xf32> to vector<16x32xf32>
    %130 = vector.extract_strided_slice %120 {offsets = [0, 32], sizes = [16, 32], strides = [1, 1]} : vector<16x96xf32> to vector<16x32xf32>
    %131 = arith.addf %129, %130 : vector<16x32xf32>
    %132 = arith.negf %131 : vector<16x32xf32>
    %133 = math.exp %132 : vector<16x32xf32>
    %cst_38 = arith.constant 1.000000e+00 : f32
    %134 = vector.broadcast %cst_38 : f32 to vector<16x32xf32>
    %135 = arith.addf %134, %133 : vector<16x32xf32>
    %136 = arith.divf %134, %135 : vector<16x32xf32>
    %137 = vector.extract_strided_slice %119 {offsets = [0, 64], sizes = [16, 32], strides = [1, 1]} : vector<16x96xf32> to vector<16x32xf32>
    %138 = vector.extract_strided_slice %120 {offsets = [0, 64], sizes = [16, 32], strides = [1, 1]} : vector<16x96xf32> to vector<16x32xf32>
    %139 = vector.broadcast %8 : vector<1x32xf32> to vector<16x32xf32>
    %140 = arith.addf %138, %139 : vector<16x32xf32>
    %141 = arith.mulf %128, %140 : vector<16x32xf32>
    %142 = arith.addf %137, %141 : vector<16x32xf32>
    %143 = math.tanh %142 : vector<16x32xf32>
    %cst_39 = arith.constant 1.000000e+00 : f32
    %144 = vector.broadcast %cst_39 : f32 to vector<16x32xf32>
    %145 = arith.subf %144, %136 : vector<16x32xf32>
    %146 = arith.mulf %145, %143 : vector<16x32xf32>
    %147 = arith.mulf %136, %113 : vector<16x32xf32>
    %148 = arith.addf %146, %147 : vector<16x32xf32>
    %149 = arith.index_cast %117 : i32 to index
    %c0_40 = arith.constant 0 : index
    %150 = vector.load %arg22[%149, %c0_40] : memref<128x32xf32, #tpu.memory_space<vmem>>, vector<16x32xf32>
    tpu.vector_store %arg22[%149, %c0_40], %148 {strides = array<i32>} : memref<128x32xf32, #tpu.memory_space<vmem>>, vector<16x32xf32>,
    %c4_i32 = arith.constant 4 : i32
    %c16_i32_41 = arith.constant 16 : i32
    %151 = arith.muli %c4_i32, %c16_i32_41 : i32
    %152 = tpu.assume_multiple %151, 16 : i32
    %153 = arith.index_cast %152 : i32 to index
    %c0_42 = arith.constant 0 : index
    %154 = vector.load %arg21[%153, %c0_42] : memref<128x96xf32, #tpu.memory_space<vmem>>, vector<16x96xf32>
    %cst_43 = arith.constant dense<0.000000e+00> : vector<16x96xf32>
    %155 = tpu.matmul %148, %7, %cst_43 {dimension_numbers = #tpu.dot_dimension_numbers<[1], [0], [0], [1], [0, 0, 1, 1], [], []>} : vector<16x32xf32>, vector<32x96xf32>, vector<16x96xf32> -> vector<16x96xf32>
    %156 = vector.extract_strided_slice %154 {offsets = [0, 0], sizes = [16, 32], strides = [1, 1]} : vector<16x96xf32> to vector<16x32xf32>
    %157 = vector.extract_strided_slice %155 {offsets = [0, 0], sizes = [16, 32], strides = [1, 1]} : vector<16x96xf32> to vector<16x32xf32>
    %158 = arith.addf %156, %157 : vector<16x32xf32>
    %159 = arith.negf %158 : vector<16x32xf32>
    %160 = math.exp %159 : vector<16x32xf32>
    %cst_44 = arith.constant 1.000000e+00 : f32
    %161 = vector.broadcast %cst_44 : f32 to vector<16x32xf32>
    %162 = arith.addf %161, %160 : vector<16x32xf32>
    %163 = arith.divf %161, %162 : vector<16x32xf32>
    %164 = vector.extract_strided_slice %154 {offsets = [0, 32], sizes = [16, 32], strides = [1, 1]} : vector<16x96xf32> to vector<16x32xf32>
    %165 = vector.extract_strided_slice %155 {offsets = [0, 32], sizes = [16, 32], strides = [1, 1]} : vector<16x96xf32> to vector<16x32xf32>
    %166 = arith.addf %164, %165 : vector<16x32xf32>
    %167 = arith.negf %166 : vector<16x32xf32>
    %168 = math.exp %167 : vector<16x32xf32>
    %cst_45 = arith.constant 1.000000e+00 : f32
    %169 = vector.broadcast %cst_45 : f32 to vector<16x32xf32>
    %170 = arith.addf %169, %168 : vector<16x32xf32>
    %171 = arith.divf %169, %170 : vector<16x32xf32>
    %172 = vector.extract_strided_slice %154 {offsets = [0, 64], sizes = [16, 32], strides = [1, 1]} : vector<16x96xf32> to vector<16x32xf32>
    %173 = vector.extract_strided_slice %155 {offsets = [0, 64], sizes = [16, 32], strides = [1, 1]} : vector<16x96xf32> to vector<16x32xf32>
    %174 = vector.broadcast %8 : vector<1x32xf32> to vector<16x32xf32>
    %175 = arith.addf %173, %174 : vector<16x32xf32>
    %176 = arith.mulf %163, %175 : vector<16x32xf32>
    %177 = arith.addf %172, %176 : vector<16x32xf32>
    %178 = math.tanh %177 : vector<16x32xf32>
    %cst_46 = arith.constant 1.000000e+00 : f32
    %179 = vector.broadcast %cst_46 : f32 to vector<16x32xf32>
    %180 = arith.subf %179, %171 : vector<16x32xf32>
    %181 = arith.mulf %180, %178 : vector<16x32xf32>
    %182 = arith.mulf %171, %148 : vector<16x32xf32>
    %183 = arith.addf %181, %182 : vector<16x32xf32>
    %184 = arith.index_cast %152 : i32 to index
    %c0_47 = arith.constant 0 : index
    %185 = vector.load %arg22[%184, %c0_47] : memref<128x32xf32, #tpu.memory_space<vmem>>, vector<16x32xf32>
    tpu.vector_store %arg22[%184, %c0_47], %183 {strides = array<i32>} : memref<128x32xf32, #tpu.memory_space<vmem>>, vector<16x32xf32>,
    %c5_i32 = arith.constant 5 : i32
    %c16_i32_48 = arith.constant 16 : i32
    %186 = arith.muli %c5_i32, %c16_i32_48 : i32
    %187 = tpu.assume_multiple %186, 16 : i32
    %188 = arith.index_cast %187 : i32 to index
    %c0_49 = arith.constant 0 : index
    %189 = vector.load %arg21[%188, %c0_49] : memref<128x96xf32, #tpu.memory_space<vmem>>, vector<16x96xf32>
    %cst_50 = arith.constant dense<0.000000e+00> : vector<16x96xf32>
    %190 = tpu.matmul %183, %7, %cst_50 {dimension_numbers = #tpu.dot_dimension_numbers<[1], [0], [0], [1], [0, 0, 1, 1], [], []>} : vector<16x32xf32>, vector<32x96xf32>, vector<16x96xf32> -> vector<16x96xf32>
    %191 = vector.extract_strided_slice %189 {offsets = [0, 0], sizes = [16, 32], strides = [1, 1]} : vector<16x96xf32> to vector<16x32xf32>
    %192 = vector.extract_strided_slice %190 {offsets = [0, 0], sizes = [16, 32], strides = [1, 1]} : vector<16x96xf32> to vector<16x32xf32>
    %193 = arith.addf %191, %192 : vector<16x32xf32>
    %194 = arith.negf %193 : vector<16x32xf32>
    %195 = math.exp %194 : vector<16x32xf32>
    %cst_51 = arith.constant 1.000000e+00 : f32
    %196 = vector.broadcast %cst_51 : f32 to vector<16x32xf32>
    %197 = arith.addf %196, %195 : vector<16x32xf32>
    %198 = arith.divf %196, %197 : vector<16x32xf32>
    %199 = vector.extract_strided_slice %189 {offsets = [0, 32], sizes = [16, 32], strides = [1, 1]} : vector<16x96xf32> to vector<16x32xf32>
    %200 = vector.extract_strided_slice %190 {offsets = [0, 32], sizes = [16, 32], strides = [1, 1]} : vector<16x96xf32> to vector<16x32xf32>
    %201 = arith.addf %199, %200 : vector<16x32xf32>
    %202 = arith.negf %201 : vector<16x32xf32>
    %203 = math.exp %202 : vector<16x32xf32>
    %cst_52 = arith.constant 1.000000e+00 : f32
    %204 = vector.broadcast %cst_52 : f32 to vector<16x32xf32>
    %205 = arith.addf %204, %203 : vector<16x32xf32>
    %206 = arith.divf %204, %205 : vector<16x32xf32>
    %207 = vector.extract_strided_slice %189 {offsets = [0, 64], sizes = [16, 32], strides = [1, 1]} : vector<16x96xf32> to vector<16x32xf32>
    %208 = vector.extract_strided_slice %190 {offsets = [0, 64], sizes = [16, 32], strides = [1, 1]} : vector<16x96xf32> to vector<16x32xf32>
    %209 = vector.broadcast %8 : vector<1x32xf32> to vector<16x32xf32>
    %210 = arith.addf %208, %209 : vector<16x32xf32>
    %211 = arith.mulf %198, %210 : vector<16x32xf32>
    %212 = arith.addf %207, %211 : vector<16x32xf32>
    %213 = math.tanh %212 : vector<16x32xf32>
    %cst_53 = arith.constant 1.000000e+00 : f32
    %214 = vector.broadcast %cst_53 : f32 to vector<16x32xf32>
    %215 = arith.subf %214, %206 : vector<16x32xf32>
    %216 = arith.mulf %215, %213 : vector<16x32xf32>
    %217 = arith.mulf %206, %183 : vector<16x32xf32>
    %218 = arith.addf %216, %217 : vector<16x32xf32>
    %219 = arith.index_cast %187 : i32 to index
    %c0_54 = arith.constant 0 : index
    %220 = vector.load %arg22[%219, %c0_54] : memref<128x32xf32, #tpu.memory_space<vmem>>, vector<16x32xf32>
    tpu.vector_store %arg22[%219, %c0_54], %218 {strides = array<i32>} : memref<128x32xf32, #tpu.memory_space<vmem>>, vector<16x32xf32>,
    %c6_i32 = arith.constant 6 : i32
    %c16_i32_55 = arith.constant 16 : i32
    %221 = arith.muli %c6_i32, %c16_i32_55 : i32
    %222 = tpu.assume_multiple %221, 16 : i32
    %223 = arith.index_cast %222 : i32 to index
    %c0_56 = arith.constant 0 : index
    %224 = vector.load %arg21[%223, %c0_56] : memref<128x96xf32, #tpu.memory_space<vmem>>, vector<16x96xf32>
    %cst_57 = arith.constant dense<0.000000e+00> : vector<16x96xf32>
    %225 = tpu.matmul %218, %7, %cst_57 {dimension_numbers = #tpu.dot_dimension_numbers<[1], [0], [0], [1], [0, 0, 1, 1], [], []>} : vector<16x32xf32>, vector<32x96xf32>, vector<16x96xf32> -> vector<16x96xf32>
    %226 = vector.extract_strided_slice %224 {offsets = [0, 0], sizes = [16, 32], strides = [1, 1]} : vector<16x96xf32> to vector<16x32xf32>
    %227 = vector.extract_strided_slice %225 {offsets = [0, 0], sizes = [16, 32], strides = [1, 1]} : vector<16x96xf32> to vector<16x32xf32>
    %228 = arith.addf %226, %227 : vector<16x32xf32>
    %229 = arith.negf %228 : vector<16x32xf32>
    %230 = math.exp %229 : vector<16x32xf32>
    %cst_58 = arith.constant 1.000000e+00 : f32
    %231 = vector.broadcast %cst_58 : f32 to vector<16x32xf32>
    %232 = arith.addf %231, %230 : vector<16x32xf32>
    %233 = arith.divf %231, %232 : vector<16x32xf32>
    %234 = vector.extract_strided_slice %224 {offsets = [0, 32], sizes = [16, 32], strides = [1, 1]} : vector<16x96xf32> to vector<16x32xf32>
    %235 = vector.extract_strided_slice %225 {offsets = [0, 32], sizes = [16, 32], strides = [1, 1]} : vector<16x96xf32> to vector<16x32xf32>
    %236 = arith.addf %234, %235 : vector<16x32xf32>
    %237 = arith.negf %236 : vector<16x32xf32>
    %238 = math.exp %237 : vector<16x32xf32>
    %cst_59 = arith.constant 1.000000e+00 : f32
    %239 = vector.broadcast %cst_59 : f32 to vector<16x32xf32>
    %240 = arith.addf %239, %238 : vector<16x32xf32>
    %241 = arith.divf %239, %240 : vector<16x32xf32>
    %242 = vector.extract_strided_slice %224 {offsets = [0, 64], sizes = [16, 32], strides = [1, 1]} : vector<16x96xf32> to vector<16x32xf32>
    %243 = vector.extract_strided_slice %225 {offsets = [0, 64], sizes = [16, 32], strides = [1, 1]} : vector<16x96xf32> to vector<16x32xf32>
    %244 = vector.broadcast %8 : vector<1x32xf32> to vector<16x32xf32>
    %245 = arith.addf %243, %244 : vector<16x32xf32>
    %246 = arith.mulf %233, %245 : vector<16x32xf32>
    %247 = arith.addf %242, %246 : vector<16x32xf32>
    %248 = math.tanh %247 : vector<16x32xf32>
    %cst_60 = arith.constant 1.000000e+00 : f32
    %249 = vector.broadcast %cst_60 : f32 to vector<16x32xf32>
    %250 = arith.subf %249, %241 : vector<16x32xf32>
    %251 = arith.mulf %250, %248 : vector<16x32xf32>
    %252 = arith.mulf %241, %218 : vector<16x32xf32>
    %253 = arith.addf %251, %252 : vector<16x32xf32>
    %254 = arith.index_cast %222 : i32 to index
    %c0_61 = arith.constant 0 : index
    %255 = vector.load %arg22[%254, %c0_61] : memref<128x32xf32, #tpu.memory_space<vmem>>, vector<16x32xf32>
    tpu.vector_store %arg22[%254, %c0_61], %253 {strides = array<i32>} : memref<128x32xf32, #tpu.memory_space<vmem>>, vector<16x32xf32>,
    %c7_i32 = arith.constant 7 : i32
    %c16_i32_62 = arith.constant 16 : i32
    %256 = arith.muli %c7_i32, %c16_i32_62 : i32
    %257 = tpu.assume_multiple %256, 16 : i32
    %258 = arith.index_cast %257 : i32 to index
    %c0_63 = arith.constant 0 : index
    %259 = vector.load %arg21[%258, %c0_63] : memref<128x96xf32, #tpu.memory_space<vmem>>, vector<16x96xf32>
    %cst_64 = arith.constant dense<0.000000e+00> : vector<16x96xf32>
    %260 = tpu.matmul %253, %7, %cst_64 {dimension_numbers = #tpu.dot_dimension_numbers<[1], [0], [0], [1], [0, 0, 1, 1], [], []>} : vector<16x32xf32>, vector<32x96xf32>, vector<16x96xf32> -> vector<16x96xf32>
    %261 = vector.extract_strided_slice %259 {offsets = [0, 0], sizes = [16, 32], strides = [1, 1]} : vector<16x96xf32> to vector<16x32xf32>
    %262 = vector.extract_strided_slice %260 {offsets = [0, 0], sizes = [16, 32], strides = [1, 1]} : vector<16x96xf32> to vector<16x32xf32>
    %263 = arith.addf %261, %262 : vector<16x32xf32>
    %264 = arith.negf %263 : vector<16x32xf32>
    %265 = math.exp %264 : vector<16x32xf32>
    %cst_65 = arith.constant 1.000000e+00 : f32
    %266 = vector.broadcast %cst_65 : f32 to vector<16x32xf32>
    %267 = arith.addf %266, %265 : vector<16x32xf32>
    %268 = arith.divf %266, %267 : vector<16x32xf32>
    %269 = vector.extract_strided_slice %259 {offsets = [0, 32], sizes = [16, 32], strides = [1, 1]} : vector<16x96xf32> to vector<16x32xf32>
    %270 = vector.extract_strided_slice %260 {offsets = [0, 32], sizes = [16, 32], strides = [1, 1]} : vector<16x96xf32> to vector<16x32xf32>
    %271 = arith.addf %269, %270 : vector<16x32xf32>
    %272 = arith.negf %271 : vector<16x32xf32>
    %273 = math.exp %272 : vector<16x32xf32>
    %cst_66 = arith.constant 1.000000e+00 : f32
    %274 = vector.broadcast %cst_66 : f32 to vector<16x32xf32>
    %275 = arith.addf %274, %273 : vector<16x32xf32>
    %276 = arith.divf %274, %275 : vector<16x32xf32>
    %277 = vector.extract_strided_slice %259 {offsets = [0, 64], sizes = [16, 32], strides = [1, 1]} : vector<16x96xf32> to vector<16x32xf32>
    %278 = vector.extract_strided_slice %260 {offsets = [0, 64], sizes = [16, 32], strides = [1, 1]} : vector<16x96xf32> to vector<16x32xf32>
    %279 = vector.broadcast %8 : vector<1x32xf32> to vector<16x32xf32>
    %280 = arith.addf %278, %279 : vector<16x32xf32>
    %281 = arith.mulf %268, %280 : vector<16x32xf32>
    %282 = arith.addf %277, %281 : vector<16x32xf32>
    %283 = math.tanh %282 : vector<16x32xf32>
    %cst_67 = arith.constant 1.000000e+00 : f32
    %284 = vector.broadcast %cst_67 : f32 to vector<16x32xf32>
    %285 = arith.subf %284, %276 : vector<16x32xf32>
    %286 = arith.mulf %285, %283 : vector<16x32xf32>
    %287 = arith.mulf %276, %253 : vector<16x32xf32>
    %288 = arith.addf %286, %287 : vector<16x32xf32>
    %289 = arith.index_cast %257 : i32 to index
    %c0_68 = arith.constant 0 : index
    %290 = vector.load %arg22[%289, %c0_68] : memref<128x32xf32, #tpu.memory_space<vmem>>, vector<16x32xf32>
    tpu.vector_store %arg22[%289, %c0_68], %288 {strides = array<i32>} : memref<128x32xf32, #tpu.memory_space<vmem>>, vector<16x32xf32>,
    %c8_i32 = arith.constant 8 : i32
    %c0_69 = arith.constant 0 : index
    %c0_70 = arith.constant 0 : index
    %291 = vector.load %arg22[%c0_69, %c0_70] : memref<128x32xf32, #tpu.memory_space<vmem>>, vector<128x32xf32>
    %c0_71 = arith.constant 0 : index
    %c0_72 = arith.constant 0 : index
    %292 = vector.load %arg6[%c0_71, %c0_72] : memref<32x96xf32, #tpu.memory_space<vmem>>, vector<32x96xf32>
    %cst_73 = arith.constant dense<0.000000e+00> : vector<128x96xf32>
    %293 = tpu.matmul %291, %292, %cst_73 {dimension_numbers = #tpu.dot_dimension_numbers<[1], [0], [0], [1], [0, 0, 1, 1], [], []>} : vector<128x32xf32>, vector<32x96xf32>, vector<128x96xf32> -> vector<128x96xf32>
    %c0_74 = arith.constant 0 : index
    %c0_75 = arith.constant 0 : index
    %294 = vector.load %arg8[%c0_74, %c0_75] : memref<1x96xf32, #tpu.memory_space<vmem>>, vector<1x96xf32>
    %295 = vector.broadcast %294 : vector<1x96xf32> to vector<128x96xf32>
    %296 = arith.addf %293, %295 : vector<128x96xf32>
    %c0_76 = arith.constant 0 : index
    %c0_77 = arith.constant 0 : index
    %297 = vector.load %arg21[%c0_76, %c0_77] : memref<128x96xf32, #tpu.memory_space<vmem>>, vector<128x96xf32>
    tpu.vector_store %arg21[%c0_76, %c0_77], %296 {strides = array<i32>} : memref<128x96xf32, #tpu.memory_space<vmem>>, vector<128x96xf32>,
    %c0_78 = arith.constant 0 : index
    %c0_79 = arith.constant 0 : index
    %298 = vector.load %arg7[%c0_78, %c0_79] : memref<32x96xf32, #tpu.memory_space<vmem>>, vector<32x96xf32>
    %c0_80 = arith.constant 0 : index
    %c0_81 = arith.constant 0 : index
    %299 = vector.load %arg9[%c0_80, %c0_81] : memref<1x32xf32, #tpu.memory_space<vmem>>, vector<1x32xf32>
    %c1 = arith.constant 1 : index
    %c0_82 = arith.constant 0 : index
    %c0_83 = arith.constant 0 : index
    %300 = vector.load %arg1[%c1, %c0_82, %c0_83] : memref<2x16x32xf32, #tpu.memory_space<vmem>>, vector<1x16x32xf32>
    %301 = vector.shape_cast %300 : vector<1x16x32xf32> to vector<16x32xf32>
    %c0_i32_84 = arith.constant 0 : i32
    %c16_i32_85 = arith.constant 16 : i32
    %302 = arith.muli %c0_i32_84, %c16_i32_85 : i32
    %303 = tpu.assume_multiple %302, 16 : i32
    %304 = arith.index_cast %303 : i32 to index
    %c0_86 = arith.constant 0 : index
    %305 = vector.load %arg21[%304, %c0_86] : memref<128x96xf32, #tpu.memory_space<vmem>>, vector<16x96xf32>
    %cst_87 = arith.constant dense<0.000000e+00> : vector<16x96xf32>
    %306 = tpu.matmul %301, %298, %cst_87 {dimension_numbers = #tpu.dot_dimension_numbers<[1], [0], [0], [1], [0, 0, 1, 1], [], []>} : vector<16x32xf32>, vector<32x96xf32>, vector<16x96xf32> -> vector<16x96xf32>
    %307 = vector.extract_strided_slice %305 {offsets = [0, 0], sizes = [16, 32], strides = [1, 1]} : vector<16x96xf32> to vector<16x32xf32>
    %308 = vector.extract_strided_slice %306 {offsets = [0, 0], sizes = [16, 32], strides = [1, 1]} : vector<16x96xf32> to vector<16x32xf32>
    %309 = arith.addf %307, %308 : vector<16x32xf32>
    %310 = arith.negf %309 : vector<16x32xf32>
    %311 = math.exp %310 : vector<16x32xf32>
    %cst_88 = arith.constant 1.000000e+00 : f32
    %312 = vector.broadcast %cst_88 : f32 to vector<16x32xf32>
    %313 = arith.addf %312, %311 : vector<16x32xf32>
    %314 = arith.divf %312, %313 : vector<16x32xf32>
    %315 = vector.extract_strided_slice %305 {offsets = [0, 32], sizes = [16, 32], strides = [1, 1]} : vector<16x96xf32> to vector<16x32xf32>
    %316 = vector.extract_strided_slice %306 {offsets = [0, 32], sizes = [16, 32], strides = [1, 1]} : vector<16x96xf32> to vector<16x32xf32>
    %317 = arith.addf %315, %316 : vector<16x32xf32>
    %318 = arith.negf %317 : vector<16x32xf32>
    %319 = math.exp %318 : vector<16x32xf32>
    %cst_89 = arith.constant 1.000000e+00 : f32
    %320 = vector.broadcast %cst_89 : f32 to vector<16x32xf32>
    %321 = arith.addf %320, %319 : vector<16x32xf32>
    %322 = arith.divf %320, %321 : vector<16x32xf32>
    %323 = vector.extract_strided_slice %305 {offsets = [0, 64], sizes = [16, 32], strides = [1, 1]} : vector<16x96xf32> to vector<16x32xf32>
    %324 = vector.extract_strided_slice %306 {offsets = [0, 64], sizes = [16, 32], strides = [1, 1]} : vector<16x96xf32> to vector<16x32xf32>
    %325 = vector.broadcast %299 : vector<1x32xf32> to vector<16x32xf32>
    %326 = arith.addf %324, %325 : vector<16x32xf32>
    %327 = arith.mulf %314, %326 : vector<16x32xf32>
    %328 = arith.addf %323, %327 : vector<16x32xf32>
    %329 = math.tanh %328 : vector<16x32xf32>
    %cst_90 = arith.constant 1.000000e+00 : f32
    %330 = vector.broadcast %cst_90 : f32 to vector<16x32xf32>
    %331 = arith.subf %330, %322 : vector<16x32xf32>
    %332 = arith.mulf %331, %329 : vector<16x32xf32>
    %333 = arith.mulf %322, %301 : vector<16x32xf32>
    %334 = arith.addf %332, %333 : vector<16x32xf32>
    %c1_i32_91 = arith.constant 1 : i32
    %c16_i32_92 = arith.constant 16 : i32
    %335 = arith.muli %c1_i32_91, %c16_i32_92 : i32
    %336 = tpu.assume_multiple %335, 16 : i32
    %337 = arith.index_cast %336 : i32 to index
    %c0_93 = arith.constant 0 : index
    %338 = vector.load %arg21[%337, %c0_93] : memref<128x96xf32, #tpu.memory_space<vmem>>, vector<16x96xf32>
    %cst_94 = arith.constant dense<0.000000e+00> : vector<16x96xf32>
    %339 = tpu.matmul %334, %298, %cst_94 {dimension_numbers = #tpu.dot_dimension_numbers<[1], [0], [0], [1], [0, 0, 1, 1], [], []>} : vector<16x32xf32>, vector<32x96xf32>, vector<16x96xf32> -> vector<16x96xf32>
    %340 = vector.extract_strided_slice %338 {offsets = [0, 0], sizes = [16, 32], strides = [1, 1]} : vector<16x96xf32> to vector<16x32xf32>
    %341 = vector.extract_strided_slice %339 {offsets = [0, 0], sizes = [16, 32], strides = [1, 1]} : vector<16x96xf32> to vector<16x32xf32>
    %342 = arith.addf %340, %341 : vector<16x32xf32>
    %343 = arith.negf %342 : vector<16x32xf32>
    %344 = math.exp %343 : vector<16x32xf32>
    %cst_95 = arith.constant 1.000000e+00 : f32
    %345 = vector.broadcast %cst_95 : f32 to vector<16x32xf32>
    %346 = arith.addf %345, %344 : vector<16x32xf32>
    %347 = arith.divf %345, %346 : vector<16x32xf32>
    %348 = vector.extract_strided_slice %338 {offsets = [0, 32], sizes = [16, 32], strides = [1, 1]} : vector<16x96xf32> to vector<16x32xf32>
    %349 = vector.extract_strided_slice %339 {offsets = [0, 32], sizes = [16, 32], strides = [1, 1]} : vector<16x96xf32> to vector<16x32xf32>
    %350 = arith.addf %348, %349 : vector<16x32xf32>
    %351 = arith.negf %350 : vector<16x32xf32>
    %352 = math.exp %351 : vector<16x32xf32>
    %cst_96 = arith.constant 1.000000e+00 : f32
    %353 = vector.broadcast %cst_96 : f32 to vector<16x32xf32>
    %354 = arith.addf %353, %352 : vector<16x32xf32>
    %355 = arith.divf %353, %354 : vector<16x32xf32>
    %356 = vector.extract_strided_slice %338 {offsets = [0, 64], sizes = [16, 32], strides = [1, 1]} : vector<16x96xf32> to vector<16x32xf32>
    %357 = vector.extract_strided_slice %339 {offsets = [0, 64], sizes = [16, 32], strides = [1, 1]} : vector<16x96xf32> to vector<16x32xf32>
    %358 = vector.broadcast %299 : vector<1x32xf32> to vector<16x32xf32>
    %359 = arith.addf %357, %358 : vector<16x32xf32>
    %360 = arith.mulf %347, %359 : vector<16x32xf32>
    %361 = arith.addf %356, %360 : vector<16x32xf32>
    %362 = math.tanh %361 : vector<16x32xf32>
    %cst_97 = arith.constant 1.000000e+00 : f32
    %363 = vector.broadcast %cst_97 : f32 to vector<16x32xf32>
    %364 = arith.subf %363, %355 : vector<16x32xf32>
    %365 = arith.mulf %364, %362 : vector<16x32xf32>
    %366 = arith.mulf %355, %334 : vector<16x32xf32>
    %367 = arith.addf %365, %366 : vector<16x32xf32>
    %c2_i32_98 = arith.constant 2 : i32
    %c16_i32_99 = arith.constant 16 : i32
    %368 = arith.muli %c2_i32_98, %c16_i32_99 : i32
    %369 = tpu.assume_multiple %368, 16 : i32
    %370 = arith.index_cast %369 : i32 to index
    %c0_100 = arith.constant 0 : index
    %371 = vector.load %arg21[%370, %c0_100] : memref<128x96xf32, #tpu.memory_space<vmem>>, vector<16x96xf32>
    %cst_101 = arith.constant dense<0.000000e+00> : vector<16x96xf32>
    %372 = tpu.matmul %367, %298, %cst_101 {dimension_numbers = #tpu.dot_dimension_numbers<[1], [0], [0], [1], [0, 0, 1, 1], [], []>} : vector<16x32xf32>, vector<32x96xf32>, vector<16x96xf32> -> vector<16x96xf32>
    %373 = vector.extract_strided_slice %371 {offsets = [0, 0], sizes = [16, 32], strides = [1, 1]} : vector<16x96xf32> to vector<16x32xf32>
    %374 = vector.extract_strided_slice %372 {offsets = [0, 0], sizes = [16, 32], strides = [1, 1]} : vector<16x96xf32> to vector<16x32xf32>
    %375 = arith.addf %373, %374 : vector<16x32xf32>
    %376 = arith.negf %375 : vector<16x32xf32>
    %377 = math.exp %376 : vector<16x32xf32>
    %cst_102 = arith.constant 1.000000e+00 : f32
    %378 = vector.broadcast %cst_102 : f32 to vector<16x32xf32>
    %379 = arith.addf %378, %377 : vector<16x32xf32>
    %380 = arith.divf %378, %379 : vector<16x32xf32>
    %381 = vector.extract_strided_slice %371 {offsets = [0, 32], sizes = [16, 32], strides = [1, 1]} : vector<16x96xf32> to vector<16x32xf32>
    %382 = vector.extract_strided_slice %372 {offsets = [0, 32], sizes = [16, 32], strides = [1, 1]} : vector<16x96xf32> to vector<16x32xf32>
    %383 = arith.addf %381, %382 : vector<16x32xf32>
    %384 = arith.negf %383 : vector<16x32xf32>
    %385 = math.exp %384 : vector<16x32xf32>
    %cst_103 = arith.constant 1.000000e+00 : f32
    %386 = vector.broadcast %cst_103 : f32 to vector<16x32xf32>
    %387 = arith.addf %386, %385 : vector<16x32xf32>
    %388 = arith.divf %386, %387 : vector<16x32xf32>
    %389 = vector.extract_strided_slice %371 {offsets = [0, 64], sizes = [16, 32], strides = [1, 1]} : vector<16x96xf32> to vector<16x32xf32>
    %390 = vector.extract_strided_slice %372 {offsets = [0, 64], sizes = [16, 32], strides = [1, 1]} : vector<16x96xf32> to vector<16x32xf32>
    %391 = vector.broadcast %299 : vector<1x32xf32> to vector<16x32xf32>
    %392 = arith.addf %390, %391 : vector<16x32xf32>
    %393 = arith.mulf %380, %392 : vector<16x32xf32>
    %394 = arith.addf %389, %393 : vector<16x32xf32>
    %395 = math.tanh %394 : vector<16x32xf32>
    %cst_104 = arith.constant 1.000000e+00 : f32
    %396 = vector.broadcast %cst_104 : f32 to vector<16x32xf32>
    %397 = arith.subf %396, %388 : vector<16x32xf32>
    %398 = arith.mulf %397, %395 : vector<16x32xf32>
    %399 = arith.mulf %388, %367 : vector<16x32xf32>
    %400 = arith.addf %398, %399 : vector<16x32xf32>
    %c3_i32_105 = arith.constant 3 : i32
    %c16_i32_106 = arith.constant 16 : i32
    %401 = arith.muli %c3_i32_105, %c16_i32_106 : i32
    %402 = tpu.assume_multiple %401, 16 : i32
    %403 = arith.index_cast %402 : i32 to index
    %c0_107 = arith.constant 0 : index
    %404 = vector.load %arg21[%403, %c0_107] : memref<128x96xf32, #tpu.memory_space<vmem>>, vector<16x96xf32>
    %cst_108 = arith.constant dense<0.000000e+00> : vector<16x96xf32>
    %405 = tpu.matmul %400, %298, %cst_108 {dimension_numbers = #tpu.dot_dimension_numbers<[1], [0], [0], [1], [0, 0, 1, 1], [], []>} : vector<16x32xf32>, vector<32x96xf32>, vector<16x96xf32> -> vector<16x96xf32>
    %406 = vector.extract_strided_slice %404 {offsets = [0, 0], sizes = [16, 32], strides = [1, 1]} : vector<16x96xf32> to vector<16x32xf32>
    %407 = vector.extract_strided_slice %405 {offsets = [0, 0], sizes = [16, 32], strides = [1, 1]} : vector<16x96xf32> to vector<16x32xf32>
    %408 = arith.addf %406, %407 : vector<16x32xf32>
    %409 = arith.negf %408 : vector<16x32xf32>
    %410 = math.exp %409 : vector<16x32xf32>
    %cst_109 = arith.constant 1.000000e+00 : f32
    %411 = vector.broadcast %cst_109 : f32 to vector<16x32xf32>
    %412 = arith.addf %411, %410 : vector<16x32xf32>
    %413 = arith.divf %411, %412 : vector<16x32xf32>
    %414 = vector.extract_strided_slice %404 {offsets = [0, 32], sizes = [16, 32], strides = [1, 1]} : vector<16x96xf32> to vector<16x32xf32>
    %415 = vector.extract_strided_slice %405 {offsets = [0, 32], sizes = [16, 32], strides = [1, 1]} : vector<16x96xf32> to vector<16x32xf32>
    %416 = arith.addf %414, %415 : vector<16x32xf32>
    %417 = arith.negf %416 : vector<16x32xf32>
    %418 = math.exp %417 : vector<16x32xf32>
    %cst_110 = arith.constant 1.000000e+00 : f32
    %419 = vector.broadcast %cst_110 : f32 to vector<16x32xf32>
    %420 = arith.addf %419, %418 : vector<16x32xf32>
    %421 = arith.divf %419, %420 : vector<16x32xf32>
    %422 = vector.extract_strided_slice %404 {offsets = [0, 64], sizes = [16, 32], strides = [1, 1]} : vector<16x96xf32> to vector<16x32xf32>
    %423 = vector.extract_strided_slice %405 {offsets = [0, 64], sizes = [16, 32], strides = [1, 1]} : vector<16x96xf32> to vector<16x32xf32>
    %424 = vector.broadcast %299 : vector<1x32xf32> to vector<16x32xf32>
    %425 = arith.addf %423, %424 : vector<16x32xf32>
    %426 = arith.mulf %413, %425 : vector<16x32xf32>
    %427 = arith.addf %422, %426 : vector<16x32xf32>
    %428 = math.tanh %427 : vector<16x32xf32>
    %cst_111 = arith.constant 1.000000e+00 : f32
    %429 = vector.broadcast %cst_111 : f32 to vector<16x32xf32>
    %430 = arith.subf %429, %421 : vector<16x32xf32>
    %431 = arith.mulf %430, %428 : vector<16x32xf32>
    %432 = arith.mulf %421, %400 : vector<16x32xf32>
    %433 = arith.addf %431, %432 : vector<16x32xf32>
    %c4_i32_112 = arith.constant 4 : i32
    %c16_i32_113 = arith.constant 16 : i32
    %434 = arith.muli %c4_i32_112, %c16_i32_113 : i32
    %435 = tpu.assume_multiple %434, 16 : i32
    %436 = arith.index_cast %435 : i32 to index
    %c0_114 = arith.constant 0 : index
    %437 = vector.load %arg21[%436, %c0_114] : memref<128x96xf32, #tpu.memory_space<vmem>>, vector<16x96xf32>
    %cst_115 = arith.constant dense<0.000000e+00> : vector<16x96xf32>
    %438 = tpu.matmul %433, %298, %cst_115 {dimension_numbers = #tpu.dot_dimension_numbers<[1], [0], [0], [1], [0, 0, 1, 1], [], []>} : vector<16x32xf32>, vector<32x96xf32>, vector<16x96xf32> -> vector<16x96xf32>
    %439 = vector.extract_strided_slice %437 {offsets = [0, 0], sizes = [16, 32], strides = [1, 1]} : vector<16x96xf32> to vector<16x32xf32>
    %440 = vector.extract_strided_slice %438 {offsets = [0, 0], sizes = [16, 32], strides = [1, 1]} : vector<16x96xf32> to vector<16x32xf32>
    %441 = arith.addf %439, %440 : vector<16x32xf32>
    %442 = arith.negf %441 : vector<16x32xf32>
    %443 = math.exp %442 : vector<16x32xf32>
    %cst_116 = arith.constant 1.000000e+00 : f32
    %444 = vector.broadcast %cst_116 : f32 to vector<16x32xf32>
    %445 = arith.addf %444, %443 : vector<16x32xf32>
    %446 = arith.divf %444, %445 : vector<16x32xf32>
    %447 = vector.extract_strided_slice %437 {offsets = [0, 32], sizes = [16, 32], strides = [1, 1]} : vector<16x96xf32> to vector<16x32xf32>
    %448 = vector.extract_strided_slice %438 {offsets = [0, 32], sizes = [16, 32], strides = [1, 1]} : vector<16x96xf32> to vector<16x32xf32>
    %449 = arith.addf %447, %448 : vector<16x32xf32>
    %450 = arith.negf %449 : vector<16x32xf32>
    %451 = math.exp %450 : vector<16x32xf32>
    %cst_117 = arith.constant 1.000000e+00 : f32
    %452 = vector.broadcast %cst_117 : f32 to vector<16x32xf32>
    %453 = arith.addf %452, %451 : vector<16x32xf32>
    %454 = arith.divf %452, %453 : vector<16x32xf32>
    %455 = vector.extract_strided_slice %437 {offsets = [0, 64], sizes = [16, 32], strides = [1, 1]} : vector<16x96xf32> to vector<16x32xf32>
    %456 = vector.extract_strided_slice %438 {offsets = [0, 64], sizes = [16, 32], strides = [1, 1]} : vector<16x96xf32> to vector<16x32xf32>
    %457 = vector.broadcast %299 : vector<1x32xf32> to vector<16x32xf32>
    %458 = arith.addf %456, %457 : vector<16x32xf32>
    %459 = arith.mulf %446, %458 : vector<16x32xf32>
    %460 = arith.addf %455, %459 : vector<16x32xf32>
    %461 = math.tanh %460 : vector<16x32xf32>
    %cst_118 = arith.constant 1.000000e+00 : f32
    %462 = vector.broadcast %cst_118 : f32 to vector<16x32xf32>
    %463 = arith.subf %462, %454 : vector<16x32xf32>
    %464 = arith.mulf %463, %461 : vector<16x32xf32>
    %465 = arith.mulf %454, %433 : vector<16x32xf32>
    %466 = arith.addf %464, %465 : vector<16x32xf32>
    %c5_i32_119 = arith.constant 5 : i32
    %c16_i32_120 = arith.constant 16 : i32
    %467 = arith.muli %c5_i32_119, %c16_i32_120 : i32
    %468 = tpu.assume_multiple %467, 16 : i32
    %469 = arith.index_cast %468 : i32 to index
    %c0_121 = arith.constant 0 : index
    %470 = vector.load %arg21[%469, %c0_121] : memref<128x96xf32, #tpu.memory_space<vmem>>, vector<16x96xf32>
    %cst_122 = arith.constant dense<0.000000e+00> : vector<16x96xf32>
    %471 = tpu.matmul %466, %298, %cst_122 {dimension_numbers = #tpu.dot_dimension_numbers<[1], [0], [0], [1], [0, 0, 1, 1], [], []>} : vector<16x32xf32>, vector<32x96xf32>, vector<16x96xf32> -> vector<16x96xf32>
    %472 = vector.extract_strided_slice %470 {offsets = [0, 0], sizes = [16, 32], strides = [1, 1]} : vector<16x96xf32> to vector<16x32xf32>
    %473 = vector.extract_strided_slice %471 {offsets = [0, 0], sizes = [16, 32], strides = [1, 1]} : vector<16x96xf32> to vector<16x32xf32>
    %474 = arith.addf %472, %473 : vector<16x32xf32>
    %475 = arith.negf %474 : vector<16x32xf32>
    %476 = math.exp %475 : vector<16x32xf32>
    %cst_123 = arith.constant 1.000000e+00 : f32
    %477 = vector.broadcast %cst_123 : f32 to vector<16x32xf32>
    %478 = arith.addf %477, %476 : vector<16x32xf32>
    %479 = arith.divf %477, %478 : vector<16x32xf32>
    %480 = vector.extract_strided_slice %470 {offsets = [0, 32], sizes = [16, 32], strides = [1, 1]} : vector<16x96xf32> to vector<16x32xf32>
    %481 = vector.extract_strided_slice %471 {offsets = [0, 32], sizes = [16, 32], strides = [1, 1]} : vector<16x96xf32> to vector<16x32xf32>
    %482 = arith.addf %480, %481 : vector<16x32xf32>
    %483 = arith.negf %482 : vector<16x32xf32>
    %484 = math.exp %483 : vector<16x32xf32>
    %cst_124 = arith.constant 1.000000e+00 : f32
    %485 = vector.broadcast %cst_124 : f32 to vector<16x32xf32>
    %486 = arith.addf %485, %484 : vector<16x32xf32>
    %487 = arith.divf %485, %486 : vector<16x32xf32>
    %488 = vector.extract_strided_slice %470 {offsets = [0, 64], sizes = [16, 32], strides = [1, 1]} : vector<16x96xf32> to vector<16x32xf32>
    %489 = vector.extract_strided_slice %471 {offsets = [0, 64], sizes = [16, 32], strides = [1, 1]} : vector<16x96xf32> to vector<16x32xf32>
    %490 = vector.broadcast %299 : vector<1x32xf32> to vector<16x32xf32>
    %491 = arith.addf %489, %490 : vector<16x32xf32>
    %492 = arith.mulf %479, %491 : vector<16x32xf32>
    %493 = arith.addf %488, %492 : vector<16x32xf32>
    %494 = math.tanh %493 : vector<16x32xf32>
    %cst_125 = arith.constant 1.000000e+00 : f32
    %495 = vector.broadcast %cst_125 : f32 to vector<16x32xf32>
    %496 = arith.subf %495, %487 : vector<16x32xf32>
    %497 = arith.mulf %496, %494 : vector<16x32xf32>
    %498 = arith.mulf %487, %466 : vector<16x32xf32>
    %499 = arith.addf %497, %498 : vector<16x32xf32>
    %c6_i32_126 = arith.constant 6 : i32
    %c16_i32_127 = arith.constant 16 : i32
    %500 = arith.muli %c6_i32_126, %c16_i32_127 : i32
    %501 = tpu.assume_multiple %500, 16 : i32
    %502 = arith.index_cast %501 : i32 to index
    %c0_128 = arith.constant 0 : index
    %503 = vector.load %arg21[%502, %c0_128] : memref<128x96xf32, #tpu.memory_space<vmem>>, vector<16x96xf32>
    %cst_129 = arith.constant dense<0.000000e+00> : vector<16x96xf32>
    %504 = tpu.matmul %499, %298, %cst_129 {dimension_numbers = #tpu.dot_dimension_numbers<[1], [0], [0], [1], [0, 0, 1, 1], [], []>} : vector<16x32xf32>, vector<32x96xf32>, vector<16x96xf32> -> vector<16x96xf32>
    %505 = vector.extract_strided_slice %503 {offsets = [0, 0], sizes = [16, 32], strides = [1, 1]} : vector<16x96xf32> to vector<16x32xf32>
    %506 = vector.extract_strided_slice %504 {offsets = [0, 0], sizes = [16, 32], strides = [1, 1]} : vector<16x96xf32> to vector<16x32xf32>
    %507 = arith.addf %505, %506 : vector<16x32xf32>
    %508 = arith.negf %507 : vector<16x32xf32>
    %509 = math.exp %508 : vector<16x32xf32>
    %cst_130 = arith.constant 1.000000e+00 : f32
    %510 = vector.broadcast %cst_130 : f32 to vector<16x32xf32>
    %511 = arith.addf %510, %509 : vector<16x32xf32>
    %512 = arith.divf %510, %511 : vector<16x32xf32>
    %513 = vector.extract_strided_slice %503 {offsets = [0, 32], sizes = [16, 32], strides = [1, 1]} : vector<16x96xf32> to vector<16x32xf32>
    %514 = vector.extract_strided_slice %504 {offsets = [0, 32], sizes = [16, 32], strides = [1, 1]} : vector<16x96xf32> to vector<16x32xf32>
    %515 = arith.addf %513, %514 : vector<16x32xf32>
    %516 = arith.negf %515 : vector<16x32xf32>
    %517 = math.exp %516 : vector<16x32xf32>
    %cst_131 = arith.constant 1.000000e+00 : f32
    %518 = vector.broadcast %cst_131 : f32 to vector<16x32xf32>
    %519 = arith.addf %518, %517 : vector<16x32xf32>
    %520 = arith.divf %518, %519 : vector<16x32xf32>
    %521 = vector.extract_strided_slice %503 {offsets = [0, 64], sizes = [16, 32], strides = [1, 1]} : vector<16x96xf32> to vector<16x32xf32>
    %522 = vector.extract_strided_slice %504 {offsets = [0, 64], sizes = [16, 32], strides = [1, 1]} : vector<16x96xf32> to vector<16x32xf32>
    %523 = vector.broadcast %299 : vector<1x32xf32> to vector<16x32xf32>
    %524 = arith.addf %522, %523 : vector<16x32xf32>
    %525 = arith.mulf %512, %524 : vector<16x32xf32>
    %526 = arith.addf %521, %525 : vector<16x32xf32>
    %527 = math.tanh %526 : vector<16x32xf32>
    %cst_132 = arith.constant 1.000000e+00 : f32
    %528 = vector.broadcast %cst_132 : f32 to vector<16x32xf32>
    %529 = arith.subf %528, %520 : vector<16x32xf32>
    %530 = arith.mulf %529, %527 : vector<16x32xf32>
    %531 = arith.mulf %520, %499 : vector<16x32xf32>
    %532 = arith.addf %530, %531 : vector<16x32xf32>
    %c7_i32_133 = arith.constant 7 : i32
    %c16_i32_134 = arith.constant 16 : i32
    %533 = arith.muli %c7_i32_133, %c16_i32_134 : i32
    %534 = tpu.assume_multiple %533, 16 : i32
    %535 = arith.index_cast %534 : i32 to index
    %c0_135 = arith.constant 0 : index
    %536 = vector.load %arg21[%535, %c0_135] : memref<128x96xf32, #tpu.memory_space<vmem>>, vector<16x96xf32>
    %cst_136 = arith.constant dense<0.000000e+00> : vector<16x96xf32>
    %537 = tpu.matmul %532, %298, %cst_136 {dimension_numbers = #tpu.dot_dimension_numbers<[1], [0], [0], [1], [0, 0, 1, 1], [], []>} : vector<16x32xf32>, vector<32x96xf32>, vector<16x96xf32> -> vector<16x96xf32>
    %538 = vector.extract_strided_slice %536 {offsets = [0, 0], sizes = [16, 32], strides = [1, 1]} : vector<16x96xf32> to vector<16x32xf32>
    %539 = vector.extract_strided_slice %537 {offsets = [0, 0], sizes = [16, 32], strides = [1, 1]} : vector<16x96xf32> to vector<16x32xf32>
    %540 = arith.addf %538, %539 : vector<16x32xf32>
    %541 = arith.negf %540 : vector<16x32xf32>
    %542 = math.exp %541 : vector<16x32xf32>
    %cst_137 = arith.constant 1.000000e+00 : f32
    %543 = vector.broadcast %cst_137 : f32 to vector<16x32xf32>
    %544 = arith.addf %543, %542 : vector<16x32xf32>
    %545 = arith.divf %543, %544 : vector<16x32xf32>
    %546 = vector.extract_strided_slice %536 {offsets = [0, 32], sizes = [16, 32], strides = [1, 1]} : vector<16x96xf32> to vector<16x32xf32>
    %547 = vector.extract_strided_slice %537 {offsets = [0, 32], sizes = [16, 32], strides = [1, 1]} : vector<16x96xf32> to vector<16x32xf32>
    %548 = arith.addf %546, %547 : vector<16x32xf32>
    %549 = arith.negf %548 : vector<16x32xf32>
    %550 = math.exp %549 : vector<16x32xf32>
    %cst_138 = arith.constant 1.000000e+00 : f32
    %551 = vector.broadcast %cst_138 : f32 to vector<16x32xf32>
    %552 = arith.addf %551, %550 : vector<16x32xf32>
    %553 = arith.divf %551, %552 : vector<16x32xf32>
    %554 = vector.extract_strided_slice %536 {offsets = [0, 64], sizes = [16, 32], strides = [1, 1]} : vector<16x96xf32> to vector<16x32xf32>
    %555 = vector.extract_strided_slice %537 {offsets = [0, 64], sizes = [16, 32], strides = [1, 1]} : vector<16x96xf32> to vector<16x32xf32>
    %556 = vector.broadcast %299 : vector<1x32xf32> to vector<16x32xf32>
    %557 = arith.addf %555, %556 : vector<16x32xf32>
    %558 = arith.mulf %545, %557 : vector<16x32xf32>
    %559 = arith.addf %554, %558 : vector<16x32xf32>
    %560 = math.tanh %559 : vector<16x32xf32>
    %cst_139 = arith.constant 1.000000e+00 : f32
    %561 = vector.broadcast %cst_139 : f32 to vector<16x32xf32>
    %562 = arith.subf %561, %553 : vector<16x32xf32>
    %563 = arith.mulf %562, %560 : vector<16x32xf32>
    %564 = arith.mulf %553, %532 : vector<16x32xf32>
    %565 = arith.addf %563, %564 : vector<16x32xf32>
    %c8_i32_140 = arith.constant 8 : i32
    %566 = tpu.iota {dimensions = array<i32: 0>} : vector<16x1xi32>
    %c2_i32_141 = arith.constant 2 : i32
    %567 = vector.broadcast %c2_i32_141 : i32 to vector<16x1xi32>
    %568 = arith.cmpi slt, %566, %567 : vector<16x1xi32>
    %c0_142 = arith.constant 0 : index
    %c0_143 = arith.constant 0 : index
    %569 = vector.load %arg10[%c0_142, %c0_143] : memref<16x32xf32, #tpu.memory_space<vmem>>, vector<16x32xf32>
    %570 = vector.shape_cast %568 : vector<16x1xi1> to vector<16x1xi1>
    %571 = vector.broadcast %570 : vector<16x1xi1> to vector<16x32xi1>
    %572 = arith.select %571, %569, %565 : vector<16x32xi1>, vector<16x32xf32>
    %c0_144 = arith.constant 0 : index
    %c0_145 = arith.constant 0 : index
    %573 = vector.load %arg11[%c0_144, %c0_145] : memref<16x16xf32, #tpu.memory_space<vmem>>, vector<16x16xf32>
    %574 = vector.shape_cast %572 : vector<16x32xf32> to vector<1x16x32xf32>
    %575 = vector.shape_cast %574 : vector<1x16x32xf32> to vector<1x16x32xf32>
    %576 = vector.broadcast %575 : vector<1x16x32xf32> to vector<8x16x32xf32>
    %c0_146 = arith.constant 0 : index
    %c0_147 = arith.constant 0 : index
    %c0_148 = arith.constant 0 : index
    %577 = vector.load %arg12[%c0_146, %c0_147, %c0_148] : memref<8x32x16xf32, #tpu.memory_space<vmem>>, vector<8x32x16xf32>
    "tpu.trace_start"() <{level = 10 : i32, message = "hnf,hfc->hnc"}> : () -> ()
    %cst_149 = arith.constant dense<0.000000e+00> : vector<8x16x16xf32>
    %578 = tpu.matmul %576, %577, %cst_149 {dimension_numbers = #tpu.dot_dimension_numbers<[2], [1], [1], [2], [0, 0, 0, 1, 1, 2], [0], [0]>} : vector<8x16x32xf32>, vector<8x32x16xf32>, vector<8x16x16xf32> -> vector<8x16x16xf32>
    "tpu.trace_stop"() : () -> ()
    %c0_150 = arith.constant 0 : index
    %c0_151 = arith.constant 0 : index
    %c0_152 = arith.constant 0 : index
    %579 = vector.load %arg13[%c0_150, %c0_151, %c0_152] : memref<8x1x16xf32, #tpu.memory_space<vmem>>, vector<8x1x16xf32>
    %c0_153 = arith.constant 0 : index
    %c0_154 = arith.constant 0 : index
    %c0_155 = arith.constant 0 : index
    %580 = vector.load %arg14[%c0_153, %c0_154, %c0_155] : memref<8x1x16xf32, #tpu.memory_space<vmem>>, vector<8x1x16xf32>
    %581 = vector.broadcast %579 : vector<8x1x16xf32> to vector<8x16x16xf32>
    %582 = arith.mulf %578, %581 : vector<8x16x16xf32>
    %cst_156 = arith.constant dense<0.000000e+00> : vector<8x16xf32>
    %583 = vector.multi_reduction <add>, %582, %cst_156 [2] : vector<8x16x16xf32> to vector<8x16xf32>
    %584 = vector.broadcast %580 : vector<8x1x16xf32> to vector<8x16x16xf32>
    %585 = arith.mulf %578, %584 : vector<8x16x16xf32>
    %cst_157 = arith.constant dense<0.000000e+00> : vector<8x16xf32>
    %586 = vector.multi_reduction <add>, %585, %cst_157 [2] : vector<8x16x16xf32> to vector<8x16xf32>
    %587 = vector.shape_cast %586 : vector<8x16xf32> to vector<8x16x1xf32>
    %588 = vector.shape_cast %583 : vector<8x16xf32> to vector<8x1x16xf32>
    %589 = vector.broadcast %587 : vector<8x16x1xf32> to vector<8x16x16xf32>
    %590 = vector.broadcast %588 : vector<8x1x16xf32> to vector<8x16x16xf32>
    %591 = arith.addf %589, %590 : vector<8x16x16xf32>
    %cst_158 = arith.constant 0.000000e+00 : f32
    %592 = vector.broadcast %cst_158 : f32 to vector<8x16x16xf32>
    %593 = arith.cmpf ogt, %591, %592 : vector<8x16x16xf32>
    %cst_159 = arith.constant 2.000000e-01 : f32
    %594 = vector.broadcast %cst_159 : f32 to vector<8x16x16xf32>
    %595 = arith.mulf %594, %591 : vector<8x16x16xf32>
    %596 = arith.select %593, %591, %595 : vector<8x16x16xi1>, vector<8x16x16xf32>
    %597 = vector.shape_cast %573 : vector<16x16xf32> to vector<1x16x16xf32>
    %cst_160 = arith.constant 0.000000e+00 : f32
    %598 = vector.broadcast %cst_160 : f32 to vector<1x16x16xf32>
    %599 = arith.cmpf ogt, %597, %598 : vector<1x16x16xf32>
    %cst_161 = arith.constant -1.000000e+30 : f32
    %600 = vector.shape_cast %599 : vector<1x16x16xi1> to vector<1x16x16xi1>
    %601 = vector.broadcast %600 : vector<1x16x16xi1> to vector<8x16x16xi1>
    %602 = vector.broadcast %cst_161 : f32 to vector<8x16x16xf32>
    %603 = arith.select %601, %596, %602 : vector<8x16x16xi1>, vector<8x16x16xf32>
    %cst_162 = arith.constant dense<0xFF800000> : vector<8x16xf32>
    %604 = vector.multi_reduction <maximumf>, %603, %cst_162 [2] : vector<8x16x16xf32> to vector<8x16xf32>
    %605 = vector.shape_cast %604 : vector<8x16xf32> to vector<8x16x1xf32>
    %606 = vector.broadcast %605 : vector<8x16x1xf32> to vector<8x16x16xf32>
    %607 = arith.subf %603, %606 : vector<8x16x16xf32>
    %608 = math.exp %607 : vector<8x16x16xf32>
    %cst_163 = arith.constant dense<0.000000e+00> : vector<8x16xf32>
    %609 = vector.multi_reduction <add>, %608, %cst_163 [2] : vector<8x16x16xf32> to vector<8x16xf32>
    %610 = vector.shape_cast %609 : vector<8x16xf32> to vector<8x16x1xf32>
    %611 = tpu.reciprocal %610 {approx = true} : vector<8x16x1xf32> -> vector<8x16x1xf32>
    %612 = vector.broadcast %611 : vector<8x16x1xf32> to vector<8x16x16xf32>
    %613 = arith.mulf %608, %612 : vector<8x16x16xf32>
    "tpu.trace_start"() <{level = 10 : i32, message = "hij,hjc->hic"}> : () -> ()
    %cst_164 = arith.constant dense<0.000000e+00> : vector<8x16x16xf32>
    %614 = tpu.matmul %613, %578, %cst_164 {dimension_numbers = #tpu.dot_dimension_numbers<[2], [1], [1], [2], [0, 0, 0, 1, 1, 2], [0], [0]>} : vector<8x16x16xf32>, vector<8x16x16xf32>, vector<8x16x16xf32> -> vector<8x16x16xf32>
    "tpu.trace_stop"() : () -> ()
    %c0_165 = arith.constant 0 : index
    %c0_166 = arith.constant 0 : index
    %c0_167 = arith.constant 0 : index
    %615 = vector.load %arg15[%c0_165, %c0_166, %c0_167] : memref<8x16x16xf32, #tpu.memory_space<vmem>>, vector<8x16x16xf32>
    "tpu.trace_start"() <{level = 10 : i32, message = "hnc,hcd->hnd"}> : () -> ()
    %cst_168 = arith.constant dense<0.000000e+00> : vector<8x16x16xf32>
    %616 = tpu.matmul %614, %615, %cst_168 {dimension_numbers = #tpu.dot_dimension_numbers<[2], [1], [1], [2], [0, 0, 0, 1, 1, 2], [0], [0]>} : vector<8x16x16xf32>, vector<8x16x16xf32>, vector<8x16x16xf32> -> vector<8x16x16xf32>
    "tpu.trace_stop"() : () -> ()
    %cst_169 = arith.constant dense<0.000000e+00> : vector<16x16xf32>
    %617 = vector.multi_reduction <add>, %616, %cst_169 [0] : vector<8x16x16xf32> to vector<16x16xf32>
    %c0_170 = arith.constant 0 : index
    %c0_171 = arith.constant 0 : index
    %618 = vector.load %arg16[%c0_170, %c0_171] : memref<1x16xf32, #tpu.memory_space<vmem>>, vector<1x16xf32>
    %619 = vector.broadcast %618 : vector<1x16xf32> to vector<16x16xf32>
    %620 = arith.addf %617, %619 : vector<16x16xf32>
    %621 = vector.shape_cast %620 : vector<16x16xf32> to vector<1x16x16xf32>
    %c0_172 = arith.constant 0 : index
    %c0_173 = arith.constant 0 : index
    %c0_174 = arith.constant 0 : index
    %622 = vector.load %arg17[%c0_172, %c0_173, %c0_174] : memref<1x1x16xf32, #tpu.memory_space<vmem>>, vector<1x1x16xf32>
    %c0_175 = arith.constant 0 : index
    %c0_176 = arith.constant 0 : index
    %c0_177 = arith.constant 0 : index
    %623 = vector.load %arg18[%c0_175, %c0_176, %c0_177] : memref<1x1x16xf32, #tpu.memory_space<vmem>>, vector<1x1x16xf32>
    %624 = vector.broadcast %622 : vector<1x1x16xf32> to vector<1x16x16xf32>
    %625 = arith.mulf %621, %624 : vector<1x16x16xf32>
    %cst_178 = arith.constant dense<0.000000e+00> : vector<1x16xf32>
    %626 = vector.multi_reduction <add>, %625, %cst_178 [2] : vector<1x16x16xf32> to vector<1x16xf32>
    %627 = vector.broadcast %623 : vector<1x1x16xf32> to vector<1x16x16xf32>
    %628 = arith.mulf %621, %627 : vector<1x16x16xf32>
    %cst_179 = arith.constant dense<0.000000e+00> : vector<1x16xf32>
    %629 = vector.multi_reduction <add>, %628, %cst_179 [2] : vector<1x16x16xf32> to vector<1x16xf32>
    %630 = vector.shape_cast %629 : vector<1x16xf32> to vector<1x16x1xf32>
    %631 = vector.shape_cast %626 : vector<1x16xf32> to vector<1x1x16xf32>
    %632 = vector.broadcast %630 : vector<1x16x1xf32> to vector<1x16x16xf32>
    %633 = vector.broadcast %631 : vector<1x1x16xf32> to vector<1x16x16xf32>
    %634 = arith.addf %632, %633 : vector<1x16x16xf32>
    %cst_180 = arith.constant 0.000000e+00 : f32
    %635 = vector.broadcast %cst_180 : f32 to vector<1x16x16xf32>
    %636 = arith.cmpf ogt, %634, %635 : vector<1x16x16xf32>
    %cst_181 = arith.constant 2.000000e-01 : f32
    %637 = vector.broadcast %cst_181 : f32 to vector<1x16x16xf32>
    %638 = arith.mulf %637, %634 : vector<1x16x16xf32>
    %639 = arith.select %636, %634, %638 : vector<1x16x16xi1>, vector<1x16x16xf32>
    %640 = vector.shape_cast %573 : vector<16x16xf32> to vector<1x16x16xf32>
    %cst_182 = arith.constant 0.000000e+00 : f32
    %641 = vector.broadcast %cst_182 : f32 to vector<1x16x16xf32>
    %642 = arith.cmpf ogt, %640, %641 : vector<1x16x16xf32>
    %cst_183 = arith.constant -1.000000e+30 : f32
    %643 = vector.broadcast %cst_183 : f32 to vector<1x16x16xf32>
    %644 = arith.select %642, %639, %643 : vector<1x16x16xi1>, vector<1x16x16xf32>
    %cst_184 = arith.constant dense<0xFF800000> : vector<1x16xf32>
    %645 = vector.multi_reduction <maximumf>, %644, %cst_184 [2] : vector<1x16x16xf32> to vector<1x16xf32>
    %646 = vector.shape_cast %645 : vector<1x16xf32> to vector<1x16x1xf32>
    %647 = vector.broadcast %646 : vector<1x16x1xf32> to vector<1x16x16xf32>
    %648 = arith.subf %644, %647 : vector<1x16x16xf32>
    %649 = math.exp %648 : vector<1x16x16xf32>
    %cst_185 = arith.constant dense<0.000000e+00> : vector<1x16xf32>
    %650 = vector.multi_reduction <add>, %649, %cst_185 [2] : vector<1x16x16xf32> to vector<1x16xf32>
    %651 = vector.shape_cast %650 : vector<1x16xf32> to vector<1x16x1xf32>
    %652 = tpu.reciprocal %651 {approx = true} : vector<1x16x1xf32> -> vector<1x16x1xf32>
    %653 = vector.broadcast %652 : vector<1x16x1xf32> to vector<1x16x16xf32>
    %654 = arith.mulf %649, %653 : vector<1x16x16xf32>
    "tpu.trace_start"() <{level = 10 : i32, message = "hij,hjc->hic"}> : () -> ()
    %cst_186 = arith.constant dense<0.000000e+00> : vector<1x16x16xf32>
    %655 = tpu.matmul %654, %621, %cst_186 {dimension_numbers = #tpu.dot_dimension_numbers<[2], [1], [1], [2], [0, 0, 0, 1, 1, 2], [0], [0]>} : vector<1x16x16xf32>, vector<1x16x16xf32>, vector<1x16x16xf32> -> vector<1x16x16xf32>
    "tpu.trace_stop"() : () -> ()
    %656 = vector.shape_cast %655 : vector<1x16x16xf32> to vector<16x16xf32>
    %c0_187 = arith.constant 0 : index
    %c0_188 = arith.constant 0 : index
    %657 = vector.load %arg19[%c0_187, %c0_188] : memref<1x16xf32, #tpu.memory_space<vmem>>, vector<1x16xf32>
    %658 = vector.broadcast %657 : vector<1x16xf32> to vector<16x16xf32>
    %659 = arith.addf %656, %658 : vector<16x16xf32>
    %cst_189 = arith.constant 0.000000e+00 : f32
    %660 = vector.broadcast %cst_189 : f32 to vector<16x112xf32>
    %661 = tpu.concatenate %659, %660 in 1 : vector<16x16xf32>, vector<16x112xf32> -> vector<16x128xf32>
    %c0_190 = arith.constant 0 : index
    %c0_191 = arith.constant 0 : index
    %662 = vector.load %arg20[%c0_190, %c0_191] : memref<16x128xf32, #tpu.memory_space<vmem>>, vector<16x128xf32>
    tpu.vector_store %arg20[%c0_190, %c0_191], %661 {strides = array<i32>} : memref<16x128xf32, #tpu.memory_space<vmem>>, vector<16x128xf32>,
    return
  }
}

</mosaic_0001>

<bundles_post_ra>
// kernel: tree_gat_forward.1
= control target key start
LH: loop header
LB: loop body
LE: loop exit
PB: predicated region body
PF: predicated region fallthrough
CT: control target
= control target key end

     0   :  { %s5618_s0 = inlined_call_operand.vmem [shape: f32[128,32], index: 0, kind: input, shape index: {}]   ;;  %s5619_s1 = inlined_call_operand.vmem [shape: f32[2,16,32], index: 1, kind: input, shape index: {}]   ;;  %s5620_s2 = inlined_call_operand.vmem [shape: f32[32,96], index: 2, kind: input, shape index: {}]   ;;  %s5621_s3 = inlined_call_operand.vmem [shape: f32[32,96], index: 3, kind: input, shape index: {}]   ;;  %s5622_s4 = inlined_call_operand.vmem [shape: f32[1,96], index: 4, kind: input, shape index: {}]   ;;  %s5623_s5 = inlined_call_operand.vmem [shape: f32[1,32], index: 5, kind: input, shape index: {}]   ;;  %s5624_s6 = inlined_call_operand.vmem [shape: f32[32,96], index: 6, kind: input, shape index: {}]   ;;  %s5625_s7 = inlined_call_operand.vmem [shape: f32[32,96], index: 7, kind: input, shape index: {}]   ;;  %s5626_s8 = inlined_call_operand.vmem [shape: f32[1,96], index: 8, kind: input, shape index: {}]   ;;  %s5627_s9 = inlined_call_operand.vmem [shape: f32[1,32], index: 9, kind: input, shape index: {}]   ;;  %s5628_s10 = inlined_call_operand.vmem [shape: f32[16,32], index: 10, kind: input, shape index: {}]   ;;  %s5629_s11 = inlined_call_operand.vmem [shape: f32[16,16], index: 11, kind: input, shape index: {}]   ;;  %s5630_s12 = inlined_call_operand.vmem [shape: f32[8,32,16], index: 12, kind: input, shape index: {}]   ;;  %s5631_s13 = inlined_call_operand.vmem [shape: f32[8,1,16], index: 13, kind: input, shape index: {}]   ;;  %s5632_s14 = inlined_call_operand.vmem [shape: f32[8,1,16], index: 14, kind: input, shape index: {}]   ;;  %s5633_s15 = inlined_call_operand.vmem [shape: f32[8,16,16], index: 15, kind: input, shape index: {}]   ;;  %s5634_s16 = inlined_call_operand.vmem [shape: f32[1,16], index: 16, kind: input, shape index: {}]   ;;  %s5635_s17 = inlined_call_operand.vmem [shape: f32[1,1,16], index: 17, kind: input, shape index: {}]   ;;  %s5636_s18 = inlined_call_operand.vmem [shape: f32[1,1,16], index: 18, kind: input, shape index: {}]   ;;  %s5637_s19 = inlined_call_operand.vmem [shape: f32[1,16], index: 19, kind: input, shape index: {}]   ;;  %s5638_s20 = inlined_call_operand.hbm [shape: f32[16,128], index: 20, kind: output, shape index: {}]  }
   0x1   :  { %5644 = sst [smem:[#allocation7_spill]] %s5618_s0 }
   0x2   :  { %5645 = sst [smem:[#allocation8_spill]] %s5619_s1 }
   0x3   :  { %5646 = sst [smem:[#allocation9_spill]] %s5620_s2 }
   0x4   :  { %5647 = sst [smem:[#allocation10_spill]] %s5621_s3 }
   0x5   :  { %5648 = sst [smem:[#allocation11_spill]] %s5622_s4 }
   0x6   :  { %s5649_s23 = sld [smem:[#allocation9_spill]]  ;;  %v3898_v7 = vld [vmem:[%s5623_s5] ss:$0 sm:$0xff]  ;;  %vm90_vm0 = vcmask 261120   ;;  %s4214_s27 = smov 64  }
   0x7   :  { %s5650_s29 = sld [smem:[#allocation7_spill]]  ;;  %301 = vrot.lane.b32.xlu0 %v3898_v7, %s4214_s27 }
   0x8   :  { %s5651_s21 = sld [smem:[#allocation10_spill]] }
   0x9   :  { %s5652_s1 = sld [smem:[#allocation8_spill]] }
   0xc   :  { %v85_v0 = vld [vmem:[%s5649_s23 + $0x18] sm:$0xff]  ;;  %v84_v1 = vld [vmem:[%s5649_s23 + $0x10] sm:$0xff]  ;;  %v83_v2 = vld [vmem:[%s5649_s23 + $0x8] sm:$0xff] }
   0xd   :  { %151 = vmatpush.msra.mxu0 %v85_v0  ;;  %3888 = vmatpush.msra.mxu1 %v85_v0  ;;  %v82_v3 = vld [vmem:[%s5649_s23] sm:$0xff]  ;;  %v81_v6 = vld [vmem:[%s5650_s29 + $0x78] sm:$0xff]  ;;  %v67_v11 = vld [vmem:[%s5650_s29 + $0x8] sm:$0xff] }
   0xe   :  { %v66_v4 = vld [vmem:[%s5650_s29] sm:$0xff]  ;;  %v4343_v5 = vld [vmem:[%s5651_s21 + $0x18] sm:$0xff]  ;;  %v4356_v8 = vld [vmem:[%s5651_s21 + $0x10] sm:$0xff] }
   0xf   :  { %152 = vmatpush.msra.mxu0 %v84_v1  ;;  %3889 = vmatpush.msra.mxu1 %v84_v1  ;;  %v4361_v9 = vld [vmem:[%s5651_s21 + $0x8] sm:$0xff]  ;;  %v4370_v10 = vld [vmem:[%s5651_s21] sm:$0xff] }
  0x10   :  { %379 = vmatpush.msra.mxu2 %v4343_v5  ;;  %500 = vmatpush.msra.mxu3 %v4343_v5  ;;  %v226_v12 = vld [vmem:[%s5652_s1] sm:$0xff] }
  0x11   :  { %153 = vmatpush.msra.mxu0 %v83_v2  ;;  %3890 = vmatpush.msra.mxu1 %v83_v2 }
  0x12   :  { %380 = vmatpush.msra.mxu2 %v4356_v8  ;;  %501 = vmatpush.msra.mxu3 %v4356_v8 }
  0x13   :  { %154 = vmatpush.msra.mxu0 %v82_v3  ;;  %3891 = vmatpush.msra.mxu1 %v82_v3 }
  0x14   :  { %3740 = vmatmul.msk.f32.vlgmr.msra.gmra.mxu0 %vm90_vm0, %v66_v4  ;;  %3755 = vmatmul.msk.f32.vlgmr.msra.gmra.mxu1 %vm90_vm0, %v81_v6 }
  0x15   :  { %248 = vmatpush.msrb.mxu1 %v4343_v5  ;;  %381 = vmatpush.msra.mxu2 %v4361_v9 }
  0x16   :  { %502 = vmatpush.msra.mxu3 %v4361_v9 }
  0x17   :  { %249 = vmatpush.msrb.mxu1 %v4356_v8  ;;  %382 = vmatpush.msra.mxu2 %v4370_v10 }
  0x19   :  { %742 = vmatpush.msrb.mxu2 %v4343_v5  ;;  %250 = vmatpush.msrb.mxu1 %v4361_v9 }
  0x1a   :  { %25 = vsyncpa [#allocation5], 0  ;;  %503 = vmatpush.msra.mxu3 %v4370_v10  ;;  %v4401_v13 = vld [vmem:[%s5652_s1 + $0x8] sm:$0xff]  ;;  %s5653_s25 = sld [smem:[#allocation11_spill]]  ;;  %vm204_vm1 = vcmask 785408   ;;  %s4215_s3 = smov 32  }
  0x1b   :  { %743 = vmatpush.msrb.mxu2 %v4356_v8  ;;  %251 = vmatpush.msrb.mxu1 %v4370_v10  ;;  %s4216_s26 = smov 96   ;;  %v68_v2 = vld [vmem:[%s5650_s29 + $0x10] sm:$0xff] }
  0x1c   :  { %863 = vmatpush.msrb.mxu3 %v4343_v5  ;;  %3741 = vmatmul.msk.f32.gmra.mxu0 %vm90_vm0, %v67_v11 }
  0x1d   :  { %3756 = vmatmul.msk.f32.vlgmr.msrb.gmra.mxu1 %vm90_vm0, %v226_v12  ;;  %744 = vmatpush.msrb.mxu2 %v4361_v9 }
  0x1e   :  { %621 = vmatpush.msra.mxu1 %v4343_v5  ;;  %864 = vmatpush.msrb.mxu3 %v4356_v8 }
  0x1f   :  { %745 = vmatpush.msrb.mxu2 %v4370_v10 }
  0x20   :  { %622 = vmatpush.msra.mxu1 %v4356_v8  ;;  %865 = vmatpush.msrb.mxu3 %v4361_v9  ;;  %v4415_v14 = vld [vmem:[%s5653_s25] ss:$0 sm:$0xff] }
  0x22   :  { %623 = vmatpush.msra.mxu1 %v4361_v9  ;;  %866 = vmatpush.msrb.mxu3 %v4370_v10 }
  0x24   :  { %624 = vmatpush.msra.mxu1 %v4370_v10  ;;  %3742 = vmatmul.msk.f32.gmra.mxu0 %vm90_vm0, %v68_v2 }
  0x25   :  { %3757 = vmatmul.msk.f32.gmra.mxu1 %vm90_vm0, %v4401_v13 }
  0x26   :  { %984 = vmatpush.msrb.mxu1 %v4343_v5 }
  0x28   :  { %985 = vmatpush.msrb.mxu1 %v4356_v8 }
  0x2a   :  { %986 = vmatpush.msrb.mxu1 %v4361_v9 }
  0x2c   :  { %987 = vmatpush.msrb.mxu1 %v4370_v10 }
  0x79   :  { %v4421_v19 = vpop.permute.xlu0 %301 }
  0x91   :  { %v156_v15 = vpop.f32.mrf.mxu0  ;;  %v201_v16 = vpop.f32.mrf.mxu1 }
  0x92   :  { %v157_v17 = vadd.f32 %v4415_v14, %v156_v15  ;;  %v202_v18 = vadd.f32 %v4415_v14, %v201_v16 }
  0x94   :  { %205 = vst.msk [vmem:[#allocation2] sm:$0xff] %vm204_vm1, %v157_v17 }
  0x95   :  { %220 = vst.msk [vmem:[#allocation2 + $0x78] sm:$0xff] %vm204_vm1, %v202_v18 }
  0x99   :  { %v159_v20 = vpop.f32.mrf.mxu0 }
  0x9a   :  { %v253_v21 = vpop.f32.mrf.mxu1  ;;  %v160_v22 = vadd.f32 %v4415_v14, %v159_v20 }
  0x9b   :  { %v304_v23 = vadd.f32 %v4421_v19, %v253_v21  ;;  %v228_v26 = vld [vmem:[#allocation2] sm:$0xff] }
  0x9c   :  { %206 = vst.msk [vmem:[#allocation2 + $0x8] sm:$0xff] %vm204_vm1, %v160_v22  ;;  %v259_v27 = vadd.f32 %v253_v21, %v228_v26  ;;  %v69_v21 = vld [vmem:[%s5650_s29 + $0x18] sm:$0xff] }
  0x9d   :  { %308 = vrot.lane.b32.xlu0 %v304_v23, %s4214_s27  ;;  %3743 = vmatmul.msk.f32.gmra.mxu0 %vm90_vm0, %v69_v21 }
  0x9e   :  { %v3758_v28 = vmul.f32 -1.442695, %v259_v27 }
  0xa0   :  { %3922 = vpow2.f32 %v3758_v28 }
  0xa1   :  { %v162_v22 = vpop.f32.mrf.mxu0 }
  0xa2   :  { %v256_v24 = vpop.f32.mrf.mxu1  ;;  %v163_v23 = vadd.f32 %v4415_v14, %v162_v22 }
  0xa3   :  { %v305_v25 = vadd.f32 %v4421_v19, %v256_v24  ;;  %v229_v29 = vld [vmem:[#allocation2 + $0x8] sm:$0xff] }
  0xa4   :  { %v260_v30 = vadd.f32 %v256_v24, %v229_v29  ;;  %207 = vst.msk [vmem:[#allocation2 + $0x10] sm:$0xff] %vm204_vm1, %v163_v23 }
  0xa5   :  { %340 = vrot.lane.b32.xlu0 %v226_v12, %s4215_s3  ;;  %310 = vrot.lane.b32.xlu1 %v305_v25, %s4214_s27 }
  0xa6   :  { %v3759_v31 = vmul.f32 -1.442695, %v260_v30  ;;  %v3923_v32 = vpop.eup %3922 }
  0xa7   :  { %v267_v33 = vadd.f32 1.0, %v3923_v32 }
  0xa8   :  { %3924 = vpow2.f32 %v3759_v31 }
  0xa9   :  { %3926 = vrcp.f32 %v267_v33  ;;  %v280_v44 = vand.u32 2147483648, %v267_v33  ;;  %vm274_vm3 = vweird.f32 %v267_v33  ;;  %v278_v45 = vand.u32 2147483647, %v267_v33 }
  0xab   :  { %v281_v48 = vor.u32 1.1754944e-38, %v280_v44  ;;  %vm279_vm5 = vcmp.eq.f32.partialorder %v278_v45, 8.507059e+37 }
  0xae   :  { %v3925_v34 = vpop.eup %3924 }
  0xaf   :  { %v268_v35 = vadd.f32 1.0, %v3925_v34  ;;  %v3927_v36 = vpop.eup %3926 }
  0xb0   :  { %v270_v37 = vmul.f32 %v3927_v36, %v267_v33  ;;  %vm275_vm2 = vweird.f32 %v3927_v36 }
  0xb1   :  { %3928 = vrcp.f32 %v268_v35  ;;  %vm276_vm4 = vmor %vm274_vm3, %vm275_vm2  ;;  %v295_v53 = vand.u32 2147483648, %v268_v35  ;;  %vm289_vm7 = vweird.f32 %v268_v35  ;;  %v293_v54 = vand.u32 2147483647, %v268_v35 }
  0xb2   :  { %v271_v38 = vsub.f32 1.0, %v270_v37 }
  0xb3   :  { %v296_v56 = vor.u32 1.1754944e-38, %v295_v53  ;;  %vm294_vm9 = vcmp.eq.f32.partialorder %v293_v54, 8.507059e+37 }
  0xb4   :  { %v272_v40 = vmul.f32 %v3927_v36, %v271_v38 }
  0xb6   :  { %v273_v42 = vadd.f32 %v3927_v36, %v272_v40 }
  0xb7   :  { %v3929_v39 = vpop.eup %3928 }
  0xb8   :  { %v285_v41 = vmul.f32 %v3929_v39, %v268_v35  ;;  %v277_v46 = vsel %vm276_vm4, %v3927_v36, %v273_v42  ;;  %vm290_vm6 = vweird.f32 %v3929_v39 }
  0xb9   :  { %v282_v50 = vsel %vm279_vm5, %v281_v48, %v277_v46  ;;  %vm291_vm8 = vmor %vm289_vm7, %vm290_vm6 }
  0xba   :  { %v286_v43 = vsub.f32 1.0, %v285_v41  ;;  %v328_v4 = vsub.f32 1.0, %v282_v50 }
  0xbc   :  { %v287_v47 = vmul.f32 %v3929_v39, %v286_v43 }
  0xbe   :  { %v288_v52 = vadd.f32 %v3929_v39, %v287_v47 }
  0xc0   :  { %v292_v55 = vsel %vm291_vm8, %v3929_v39, %v288_v52 }
  0xc1   :  { %v297_v58 = vsel %vm294_vm9, %v296_v56, %v292_v55 }
  0xc2   :  { %v329_v15 = vsub.f32 1.0, %v297_v58 }
 0x10f   :  { %v309_v49 = vpop.permute.xlu0 %308 }
 0x110   :  { %v314_v51 = vmul.f32 %v309_v49, %v282_v50 }
 0x112   :  { %318 = vrot.lane.b32.xlu1 %v314_v51, %s4214_s27 }
 0x117   :  { %v311_v57 = vpop.permute.xlu1 %310  ;;  %v341_v3 = vpop.permute.xlu0 %340 }
 0x118   :  { %v315_v59 = vmul.f32 %v311_v57, %v297_v58  ;;  %v346_v7 = vmul.f32 %v341_v3, %v282_v50 }
 0x11a   :  { %320 = vrot.lane.b32.xlu2 %v315_v59, %s4214_s27 }
 0x174   :  { %v321_v60 = vpop.permute.xlu2 %320 }
 0x175   :  { %v325_v61 = vadd.f32 %v321_v60, %v229_v29 }
 0x177   :  { %3930 = vtanh.f32 %v325_v61 }
 0x17d   :  { %v3931_v62 = vpop.eup %3930 }
 0x17e   :  { %334 = vrot.lane.b32.xlu1 %v3931_v62, %s4216_s26 }
 0x184   :  { %v319_v63 = vpop.permute.xlu1 %318 }
 0x185   :  { %v324_v0 = vadd.f32 %v319_v63, %v228_v26  ;;  %v165_v26 = vpop.f32.mrf.mxu0 }
 0x186   :  { %v166_v27 = vadd.f32 %v4415_v14, %v165_v26 }
 0x187   :  { %3932 = vtanh.f32 %v324_v0 }
 0x188   :  { %208 = vst.msk [vmem:[#allocation2 + $0x18] sm:$0xff] %vm204_vm1, %v166_v27 }
 0x18d   :  { %v3933_v1 = vpop.eup %3932 }
 0x18e   :  { %332 = vrot.lane.b32.xlu2 %v3933_v1, %s4216_s26 }
 0x18f   :  { %v362_v34 = vld [vmem:[#allocation2 + $0x18] sm:$0xff] }
 0x196   :  { %342 = vrot.lane.b32.xlu2 %v4401_v13, %s4215_s3 }
 0x1e8   :  { %v333_v6 = vpop.permute.xlu2 %332 }
 0x1e9   :  { %v338_v11 = vmul.f32 %v333_v6, %v328_v4  ;;  %v70_v4 = vld [vmem:[%s5650_s29 + $0x20] sm:$0xff] }
 0x1ea   :  { %3744 = vmatmul.msk.f32.gmra.mxu0 %vm90_vm0, %v70_v4 }
 0x1eb   :  { %v4440_v12 = vadd.f32 %v346_v7, %v338_v11 }
 0x1ed   :  { %352 = vrot.lane.b32.xlu0 %v4440_v12, %s4216_s26 }
 0x1f0   :  { %v343_v16 = vpop.permute.xlu2 %342  ;;  %v335_v17 = vpop.permute.xlu1 %334 }
 0x1f1   :  { %v347_v13 = vmul.f32 %v343_v16, %v297_v58  ;;  %v339_v18 = vmul.f32 %v335_v17, %v329_v15 }
 0x1f3   :  { %v4444_v20 = vadd.f32 %v347_v13, %v339_v18 }
 0x1f5   :  { %354 = vrot.lane.b32.xlu1 %v4444_v20, %s4216_s26 }
 0x25f   :  { %v353_v24 = vpop.permute.xlu0 %352 }
 0x260   :  { %358 = vst.msk [vmem:[#allocation3] sm:$0xff] %vm90_vm0, %v353_v24  ;;  %3760 = vmatmul.msk.f32.vlgmr.msra.gmra.mxu2 %vm90_vm0, %v353_v24 }
 0x261   :  { %1105 = vmatpush.msra.mxu2 %v4343_v5 }
 0x263   :  { %1106 = vmatpush.msra.mxu2 %v4356_v8 }
 0x265   :  { %1107 = vmatpush.msra.mxu2 %v4361_v9  ;;  %v361_v9 = vld [vmem:[#allocation2 + $0x10] sm:$0xff] }
 0x267   :  { %v355_v25 = vpop.permute.xlu1 %354  ;;  %1108 = vmatpush.msra.mxu2 %v4370_v10  ;;  %v168_v24 = vpop.f32.mrf.mxu0 }
 0x268   :  { %359 = vst.msk [vmem:[#allocation3 + $0x8] sm:$0xff] %vm90_vm0, %v355_v25  ;;  %3761 = vmatmul.msk.f32.gmra.mxu2 %vm90_vm0, %v355_v25 }
 0x2e3   :  { %v384_v28 = vpop.f32.mrf.mxu2 }
 0x2e4   :  { %v430_v29 = vadd.f32 %v384_v28, %v4421_v19  ;;  %v390_v10 = vadd.f32 %v384_v28, %v361_v9 }
 0x2e6   :  { %434 = vrot.lane.b32.xlu2 %v430_v29, %s4214_s27  ;;  %v3762_v30 = vmul.f32 -1.442695, %v390_v10 }
 0x2e8   :  { %3934 = vpow2.f32 %v3762_v30 }
 0x2eb   :  { %v387_v5 = vpop.f32.mrf.mxu2 }
 0x2ec   :  { %v431_v8 = vadd.f32 %v387_v5, %v4421_v19  ;;  %v391_v36 = vadd.f32 %v387_v5, %v362_v34 }
 0x2ee   :  { %436 = vrot.lane.b32.xlu0 %v431_v8, %s4214_s27  ;;  %v3935_v31 = vpop.eup %3934  ;;  %v3763_v38 = vmul.f32 -1.442695, %v391_v36 }
 0x2ef   :  { %v398_v32 = vadd.f32 1.0, %v3935_v31 }
 0x2f1   :  { %3936 = vrcp.f32 %v398_v32  ;;  %v411_v41 = vand.u32 2147483648, %v398_v32  ;;  %vm405_vm11 = vweird.f32 %v398_v32  ;;  %v409_v42 = vand.u32 2147483647, %v398_v32 }
 0x2f2   :  { %3938 = vpow2.f32 %v3763_v38 }
 0x2f3   :  { %v412_v45 = vor.u32 1.1754944e-38, %v411_v41  ;;  %vm410_vm13 = vcmp.eq.f32.partialorder %v409_v42, 8.507059e+37 }
 0x2f7   :  { %v3937_v33 = vpop.eup %3936 }
 0x2f8   :  { %v401_v35 = vmul.f32 %v3937_v33, %v398_v32  ;;  %vm406_vm10 = vweird.f32 %v3937_v33  ;;  %v3939_v43 = vpop.eup %3938 }
 0x2f9   :  { %vm407_vm12 = vmor %vm405_vm11, %vm406_vm10  ;;  %v399_v46 = vadd.f32 1.0, %v3939_v43 }
 0x2fa   :  { %v402_v37 = vsub.f32 1.0, %v401_v35 }
 0x2fb   :  { %3940 = vrcp.f32 %v399_v46  ;;  %v426_v55 = vand.u32 2147483648, %v399_v46  ;;  %vm420_vm15 = vweird.f32 %v399_v46  ;;  %v424_v56 = vand.u32 2147483647, %v399_v46 }
 0x2fc   :  { %v403_v39 = vmul.f32 %v3937_v33, %v402_v37 }
 0x2fd   :  { %v427_v58 = vor.u32 1.1754944e-38, %v426_v55  ;;  %vm425_vm3 = vcmp.eq.f32.partialorder %v424_v56, 8.507059e+37 }
 0x2fe   :  { %v404_v40 = vadd.f32 %v3937_v33, %v403_v39 }
 0x300   :  { %v408_v44 = vsel %vm407_vm12, %v3937_v33, %v404_v40 }
 0x301   :  { %v413_v47 = vsel %vm410_vm13, %v412_v45, %v408_v44  ;;  %v3941_v50 = vpop.eup %3940 }
 0x302   :  { %v416_v51 = vmul.f32 %v3941_v50, %v399_v46  ;;  %vm421_vm14 = vweird.f32 %v3941_v50  ;;  %v454_v6 = vsub.f32 1.0, %v413_v47  ;;  %v466_v11 = vmul.f32 %v413_v47, %v4440_v12  ;;  %v71_v12 = vld [vmem:[%s5650_s29 + $0x28] sm:$0xff] }
 0x303   :  { %vm422_vm2 = vmor %vm420_vm15, %vm421_vm14  ;;  %3745 = vmatmul.msk.f32.gmra.mxu0 %vm90_vm0, %v71_v12 }
 0x304   :  { %v417_v52 = vsub.f32 1.0, %v416_v51 }
 0x306   :  { %v418_v53 = vmul.f32 %v3941_v50, %v417_v52 }
 0x308   :  { %v419_v54 = vadd.f32 %v3941_v50, %v418_v53 }
 0x30a   :  { %v423_v57 = vsel %vm422_vm2, %v3941_v50, %v419_v54 }
 0x30b   :  { %v428_v60 = vsel %vm425_vm3, %v427_v58, %v423_v57 }
 0x30c   :  { %v455_v17 = vsub.f32 1.0, %v428_v60  ;;  %v467_v18 = vmul.f32 %v428_v60, %v4444_v20  ;;  %v169_v20 = vadd.f32 %v4415_v14, %v168_v24 }
 0x30e   :  { %209 = vst.msk [vmem:[#allocation2 + $0x20] sm:$0xff] %vm204_vm1, %v169_v20 }
 0x340   :  { %v435_v48 = vpop.permute.xlu2 %434 }
 0x341   :  { %v440_v49 = vmul.f32 %v435_v48, %v413_v47 }
 0x343   :  { %444 = vrot.lane.b32.xlu1 %v440_v49, %s4214_s27 }
 0x360   :  { %v437_v59 = vpop.permute.xlu0 %436 }
 0x361   :  { %v441_v61 = vmul.f32 %v437_v59, %v428_v60 }
 0x363   :  { %446 = vrot.lane.b32.xlu2 %v441_v61, %s4214_s27 }
 0x380   :  { %v171_v26 = vpop.f32.mrf.mxu0 }
 0x381   :  { %v172_v27 = vadd.f32 %v4415_v14, %v171_v26 }
 0x383   :  { %210 = vst.msk [vmem:[#allocation2 + $0x28] sm:$0xff] %vm204_vm1, %v172_v27 }
 0x38a   :  { %v483_v31 = vld [vmem:[#allocation2 + $0x28] sm:$0xff] }
 0x3b5   :  { %v445_v62 = vpop.permute.xlu1 %444 }
 0x3b6   :  { %v450_v63 = vadd.f32 %v445_v62, %v361_v9  ;;  %v482_v9 = vld [vmem:[#allocation2 + $0x20] sm:$0xff] }
 0x3b8   :  { %3942 = vtanh.f32 %v450_v63 }
 0x3bd   :  { %v447_v0 = vpop.permute.xlu2 %446 }
 0x3be   :  { %v3943_v1 = vpop.eup %3942  ;;  %v451_v2 = vadd.f32 %v447_v0, %v362_v34 }
 0x3bf   :  { %458 = vrot.lane.b32.xlu0 %v3943_v1, %s4216_s26 }
 0x3c0   :  { %3944 = vtanh.f32 %v451_v2 }
 0x3c6   :  { %v3945_v3 = vpop.eup %3944 }
 0x3c7   :  { %460 = vrot.lane.b32.xlu1 %v3945_v3, %s4216_s26 }
 0x431   :  { %v459_v7 = vpop.permute.xlu0 %458 }
 0x432   :  { %v464_v15 = vmul.f32 %v459_v7, %v454_v6 }
 0x434   :  { %v4477_v16 = vadd.f32 %v466_v11, %v464_v15 }
 0x436   :  { %472 = vrot.lane.b32.xlu2 %v4477_v16, %s4216_s26 }
 0x439   :  { %v461_v13 = vpop.permute.xlu1 %460 }
 0x43a   :  { %v465_v21 = vmul.f32 %v461_v13, %v455_v17  ;;  %v72_v17 = vld [vmem:[%s5650_s29 + $0x30] sm:$0xff]  ;;  %v73_v13 = vld [vmem:[%s5650_s29 + $0x38] sm:$0xff] }
 0x43b   :  { %3746 = vmatmul.msk.f32.gmra.mxu0 %vm90_vm0, %v72_v17 }
 0x43c   :  { %v4482_v22 = vadd.f32 %v467_v18, %v465_v21 }
 0x43e   :  { %474 = vrot.lane.b32.xlu0 %v4482_v22, %s4216_s26 }
 0x443   :  { %3747 = vmatmul.msk.f32.gmra.mxu0 %vm90_vm0, %v73_v13 }
 0x490   :  { %v473_v23 = vpop.permute.xlu2 %472 }
 0x491   :  { %479 = vst.msk [vmem:[#allocation3 + $0x10] sm:$0xff] %vm90_vm0, %v473_v23  ;;  %3764 = vmatmul.msk.f32.vlgmr.msra.gmra.mxu3 %vm90_vm0, %v473_v23 }
 0x4b0   :  { %v475_v25 = vpop.permute.xlu0 %474 }
 0x4b1   :  { %480 = vst.msk [vmem:[#allocation3 + $0x18] sm:$0xff] %vm90_vm0, %v475_v25  ;;  %3765 = vmatmul.msk.f32.gmra.mxu3 %vm90_vm0, %v475_v25 }
 0x4b8   :  { %v174_v25 = vpop.f32.mrf.mxu0 }
 0x4b9   :  { %v175_v26 = vadd.f32 %v4415_v14, %v174_v25 }
 0x4bb   :  { %211 = vst.msk [vmem:[#allocation2 + $0x30] sm:$0xff] %vm204_vm1, %v175_v26 }
 0x514   :  { %v505_v28 = vpop.f32.mrf.mxu3 }
 0x515   :  { %v551_v29 = vadd.f32 %v505_v28, %v4421_v19  ;;  %v511_v10 = vadd.f32 %v505_v28, %v482_v9 }
 0x517   :  { %555 = vrot.lane.b32.xlu1 %v551_v29, %s4214_s27  ;;  %v3766_v30 = vmul.f32 -1.442695, %v511_v10 }
 0x519   :  { %3946 = vpow2.f32 %v3766_v30 }
 0x51f   :  { %v3947_v34 = vpop.eup %3946 }
 0x520   :  { %v519_v35 = vadd.f32 1.0, %v3947_v34 }
 0x522   :  { %v532_v46 = vand.u32 2147483648, %v519_v35  ;;  %vm526_vm5 = vweird.f32 %v519_v35  ;;  %v530_v47 = vand.u32 2147483647, %v519_v35 }
 0x524   :  { %v533_v50 = vor.u32 1.1754944e-38, %v532_v46  ;;  %vm531_vm7 = vcmp.eq.f32.partialorder %v530_v47, 8.507059e+37 }
 0x534   :  { %v508_v5 = vpop.f32.mrf.mxu3 }
 0x535   :  { %v552_v8 = vadd.f32 %v508_v5, %v4421_v19  ;;  %v512_v32 = vadd.f32 %v508_v5, %v483_v31 }
 0x537   :  { %557 = vrot.lane.b32.xlu2 %v552_v8, %s4214_s27  ;;  %v3767_v33 = vmul.f32 -1.442695, %v512_v32 }
 0x539   :  { %3948 = vpow2.f32 %v3767_v33 }
 0x53a   :  { %3950 = vrcp.f32 %v519_v35 }
 0x53f   :  { %v3949_v36 = vpop.eup %3948 }
 0x540   :  { %v520_v37 = vadd.f32 1.0, %v3949_v36  ;;  %v3951_v38 = vpop.eup %3950 }
 0x541   :  { %v522_v39 = vmul.f32 %v3951_v38, %v519_v35  ;;  %vm527_vm4 = vweird.f32 %v3951_v38 }
 0x542   :  { %3952 = vrcp.f32 %v520_v37  ;;  %vm528_vm6 = vmor %vm526_vm5, %vm527_vm4  ;;  %v547_v55 = vand.u32 2147483648, %v520_v37  ;;  %vm541_vm9 = vweird.f32 %v520_v37  ;;  %v545_v56 = vand.u32 2147483647, %v520_v37 }
 0x543   :  { %v523_v40 = vsub.f32 1.0, %v522_v39 }
 0x544   :  { %v548_v58 = vor.u32 1.1754944e-38, %v547_v55  ;;  %vm546_vm11 = vcmp.eq.f32.partialorder %v545_v56, 8.507059e+37 }
 0x545   :  { %v524_v42 = vmul.f32 %v3951_v38, %v523_v40 }
 0x547   :  { %v525_v44 = vadd.f32 %v3951_v38, %v524_v42 }
 0x548   :  { %v3953_v41 = vpop.eup %3952 }
 0x549   :  { %v537_v43 = vmul.f32 %v3953_v41, %v520_v37  ;;  %v529_v48 = vsel %vm528_vm6, %v3951_v38, %v525_v44  ;;  %vm542_vm8 = vweird.f32 %v3953_v41 }
 0x54a   :  { %v534_v51 = vsel %vm531_vm7, %v533_v50, %v529_v48  ;;  %vm543_vm10 = vmor %vm541_vm9, %vm542_vm8 }
 0x54b   :  { %v538_v45 = vsub.f32 1.0, %v537_v43  ;;  %v575_v4 = vsub.f32 1.0, %v534_v51  ;;  %v587_v7 = vmul.f32 %v534_v51, %v4477_v16 }
 0x54d   :  { %v539_v49 = vmul.f32 %v3953_v41, %v538_v45 }
 0x54f   :  { %v540_v54 = vadd.f32 %v3953_v41, %v539_v49 }
 0x551   :  { %v544_v57 = vsel %vm543_vm10, %v3953_v41, %v540_v54 }
 0x552   :  { %v549_v60 = vsel %vm546_vm11, %v548_v58, %v544_v57 }
 0x553   :  { %v576_v18 = vsub.f32 1.0, %v549_v60  ;;  %v588_v21 = vmul.f32 %v549_v60, %v4482_v22  ;;  %v177_v22 = vpop.f32.mrf.mxu0 }
 0x554   :  { %v178_v27 = vadd.f32 %v4415_v14, %v177_v22 }
 0x556   :  { %212 = vst.msk [vmem:[#allocation2 + $0x38] sm:$0xff] %vm204_vm1, %v178_v27 }
 0x589   :  { %v556_v52 = vpop.permute.xlu1 %555 }
 0x58a   :  { %v561_v53 = vmul.f32 %v556_v52, %v534_v51 }
 0x58c   :  { %565 = vrot.lane.b32.xlu0 %v561_v53, %s4214_s27 }
 0x591   :  { %v558_v59 = vpop.permute.xlu2 %557 }
 0x592   :  { %v562_v61 = vmul.f32 %v558_v59, %v549_v60 }
 0x594   :  { %567 = vrot.lane.b32.xlu1 %v562_v61, %s4214_s27 }
 0x5fe   :  { %v566_v62 = vpop.permute.xlu0 %565 }
 0x5ff   :  { %v571_v63 = vadd.f32 %v566_v62, %v482_v9  ;;  %v603_v9 = vld [vmem:[#allocation2 + $0x30] sm:$0xff] }
 0x601   :  { %3954 = vtanh.f32 %v571_v63 }
 0x606   :  { %v568_v0 = vpop.permute.xlu1 %567 }
 0x607   :  { %v3955_v1 = vpop.eup %3954  ;;  %v572_v2 = vadd.f32 %v568_v0, %v483_v31  ;;  %v604_v31 = vld [vmem:[#allocation2 + $0x38] sm:$0xff] }
 0x608   :  { %579 = vrot.lane.b32.xlu2 %v3955_v1, %s4216_s26 }
 0x609   :  { %3956 = vtanh.f32 %v572_v2 }
 0x60f   :  { %v3957_v3 = vpop.eup %3956 }
 0x610   :  { %581 = vrot.lane.b32.xlu0 %v3957_v3, %s4216_s26 }
 0x662   :  { %v580_v6 = vpop.permute.xlu2 %579 }
 0x663   :  { %v585_v11 = vmul.f32 %v580_v6, %v575_v4  ;;  %v74_v4 = vld [vmem:[%s5650_s29 + $0x40] sm:$0xff] }
 0x664   :  { %3748 = vmatmul.msk.f32.gmra.mxu0 %vm90_vm0, %v74_v4  ;;  %v76_v4 = vld [vmem:[%s5650_s29 + $0x50] sm:$0xff] }
 0x665   :  { %v4507_v15 = vadd.f32 %v587_v7, %v585_v11 }
 0x667   :  { %593 = vrot.lane.b32.xlu1 %v4507_v15, %s4216_s26 }
 0x682   :  { %v582_v16 = vpop.permute.xlu0 %581 }
 0x683   :  { %v586_v12 = vmul.f32 %v582_v16, %v576_v18 }
 0x685   :  { %v4520_v23 = vadd.f32 %v588_v21, %v586_v12 }
 0x687   :  { %595 = vrot.lane.b32.xlu2 %v4520_v23, %s4216_s26 }
 0x6d9   :  { %v594_v24 = vpop.permute.xlu1 %593 }
 0x6da   :  { %600 = vst.msk [vmem:[#allocation3 + $0x20] sm:$0xff] %vm90_vm0, %v594_v24  ;;  %3768 = vmatmul.msk.f32.vlgmr.msra.gmra.mxu1 %vm90_vm0, %v594_v24 }
 0x6e1   :  { %v596_v20 = vpop.permute.xlu2 %595 }
 0x6e2   :  { %601 = vst.msk [vmem:[#allocation3 + $0x28] sm:$0xff] %vm90_vm0, %v596_v20  ;;  %3769 = vmatmul.msk.f32.gmra.mxu1 %vm90_vm0, %v596_v20  ;;  %v180_v20 = vpop.f32.mrf.mxu0 }
 0x6e3   :  { %v181_v25 = vadd.f32 %v4415_v14, %v180_v20 }
 0x6e5   :  { %213 = vst.msk [vmem:[#allocation2 + $0x40] sm:$0xff] %vm204_vm1, %v181_v25 }
 0x757   :  { %v626_v28 = vpop.f32.mrf.mxu1 }
 0x758   :  { %v672_v29 = vadd.f32 %v626_v28, %v4421_v19  ;;  %v632_v10 = vadd.f32 %v626_v28, %v603_v9 }
 0x75a   :  { %676 = vrot.lane.b32.xlu0 %v672_v29, %s4214_s27  ;;  %v3770_v30 = vmul.f32 -1.442695, %v632_v10 }
 0x75c   :  { %3958 = vpow2.f32 %v3770_v30 }
 0x75f   :  { %v629_v5 = vpop.f32.mrf.mxu1 }
 0x760   :  { %v673_v8 = vadd.f32 %v629_v5, %v4421_v19  ;;  %v633_v32 = vadd.f32 %v629_v5, %v604_v31 }
 0x762   :  { %678 = vrot.lane.b32.xlu1 %v673_v8, %s4214_s27  ;;  %v3771_v33 = vmul.f32 -1.442695, %v633_v32  ;;  %v3959_v34 = vpop.eup %3958 }
 0x763   :  { %v640_v35 = vadd.f32 1.0, %v3959_v34 }
 0x764   :  { %3960 = vpow2.f32 %v3771_v33 }
 0x765   :  { %3962 = vrcp.f32 %v640_v35  ;;  %v653_v46 = vand.u32 2147483648, %v640_v35  ;;  %vm647_vm13 = vweird.f32 %v640_v35  ;;  %v651_v47 = vand.u32 2147483647, %v640_v35 }
 0x767   :  { %v654_v50 = vor.u32 1.1754944e-38, %v653_v46  ;;  %vm652_vm15 = vcmp.eq.f32.partialorder %v651_v47, 8.507059e+37 }
 0x76a   :  { %v3961_v36 = vpop.eup %3960 }
 0x76b   :  { %v641_v37 = vadd.f32 1.0, %v3961_v36  ;;  %v3963_v38 = vpop.eup %3962 }
 0x76c   :  { %v643_v39 = vmul.f32 %v3963_v38, %v640_v35  ;;  %vm648_vm12 = vweird.f32 %v3963_v38 }
 0x76d   :  { %3964 = vrcp.f32 %v641_v37  ;;  %vm649_vm14 = vmor %vm647_vm13, %vm648_vm12  ;;  %v668_v55 = vand.u32 2147483648, %v641_v37  ;;  %vm662_vm3 = vweird.f32 %v641_v37  ;;  %v666_v56 = vand.u32 2147483647, %v641_v37 }
 0x76e   :  { %v644_v40 = vsub.f32 1.0, %v643_v39 }
 0x76f   :  { %v669_v58 = vor.u32 1.1754944e-38, %v668_v55  ;;  %vm667_vm5 = vcmp.eq.f32.partialorder %v666_v56, 8.507059e+37 }
 0x770   :  { %v645_v42 = vmul.f32 %v3963_v38, %v644_v40 }
 0x772   :  { %v646_v44 = vadd.f32 %v3963_v38, %v645_v42 }
 0x773   :  { %v3965_v41 = vpop.eup %3964 }
 0x774   :  { %v658_v43 = vmul.f32 %v3965_v41, %v641_v37  ;;  %v650_v48 = vsel %vm649_vm14, %v3963_v38, %v646_v44  ;;  %vm663_vm2 = vweird.f32 %v3965_v41 }
 0x775   :  { %v655_v52 = vsel %vm652_vm15, %v654_v50, %v650_v48  ;;  %vm664_vm4 = vmor %vm662_vm3, %vm663_vm2 }
 0x776   :  { %v659_v45 = vsub.f32 1.0, %v658_v43  ;;  %v696_v6 = vsub.f32 1.0, %v655_v52  ;;  %v708_v11 = vmul.f32 %v655_v52, %v4507_v15  ;;  %v75_v15 = vld [vmem:[%s5650_s29 + $0x48] sm:$0xff] }
 0x777   :  { %3749 = vmatmul.msk.f32.gmra.mxu0 %vm90_vm0, %v75_v15 }
 0x778   :  { %v660_v49 = vmul.f32 %v3965_v41, %v659_v45 }
 0x77a   :  { %v661_v54 = vadd.f32 %v3965_v41, %v660_v49 }
 0x77c   :  { %v665_v57 = vsel %vm664_vm4, %v3965_v41, %v661_v54 }
 0x77d   :  { %v670_v60 = vsel %vm667_vm5, %v669_v58, %v665_v57 }
 0x77e   :  { %v697_v18 = vsub.f32 1.0, %v670_v60  ;;  %v709_v21 = vmul.f32 %v670_v60, %v4520_v23 }
 0x77f   :  { %3750 = vmatmul.msk.f32.gmra.mxu0 %vm90_vm0, %v76_v4 }
 0x7cc   :  { %v677_v51 = vpop.permute.xlu0 %676 }
 0x7cd   :  { %v682_v53 = vmul.f32 %v677_v51, %v655_v52 }
 0x7cf   :  { %686 = vrot.lane.b32.xlu2 %v682_v53, %s4214_s27 }
 0x7d4   :  { %v679_v59 = vpop.permute.xlu1 %678 }
 0x7d5   :  { %v683_v61 = vmul.f32 %v679_v59, %v670_v60 }
 0x7d7   :  { %688 = vrot.lane.b32.xlu0 %v683_v61, %s4214_s27 }
 0x7f4   :  { %v183_v22 = vpop.f32.mrf.mxu0 }
 0x7f5   :  { %v184_v27 = vadd.f32 %v4415_v14, %v183_v22  ;;  %v1223_v22 = vld [vmem:[%s5624_s6] sm:$0xff] }
 0x7f7   :  { %214 = vst.msk [vmem:[#allocation2 + $0x48] sm:$0xff] %vm204_vm1, %v184_v27 }
 0x7fe   :  { %v725_v34 = vld [vmem:[#allocation2 + $0x48] sm:$0xff] }
 0x829   :  { %v687_v62 = vpop.permute.xlu2 %686 }
 0x82a   :  { %v692_v63 = vadd.f32 %v687_v62, %v603_v9  ;;  %v724_v9 = vld [vmem:[#allocation2 + $0x40] sm:$0xff] }
 0x82c   :  { %3966 = vtanh.f32 %v692_v63 }
 0x832   :  { %v3967_v0 = vpop.eup %3966 }
 0x833   :  { %700 = vrot.lane.b32.xlu1 %v3967_v0, %s4216_s26 }
 0x849   :  { %v689_v1 = vpop.permute.xlu0 %688 }
 0x84a   :  { %v693_v2 = vadd.f32 %v689_v1, %v604_v31 }
 0x84c   :  { %3968 = vtanh.f32 %v693_v2 }
 0x852   :  { %v3969_v3 = vpop.eup %3968 }
 0x853   :  { %702 = vrot.lane.b32.xlu2 %v3969_v3, %s4216_s26 }
 0x8a5   :  { %v701_v7 = vpop.permute.xlu1 %700 }
 0x8a6   :  { %v706_v17 = vmul.f32 %v701_v7, %v696_v6 }
 0x8a8   :  { %v4545_v13 = vadd.f32 %v708_v11, %v706_v17 }
 0x8aa   :  { %714 = vrot.lane.b32.xlu0 %v4545_v13, %s4216_s26 }
 0x8ad   :  { %v703_v16 = vpop.permute.xlu2 %702 }
 0x8ae   :  { %v707_v12 = vmul.f32 %v703_v16, %v697_v18 }
 0x8b0   :  { %v4550_v24 = vadd.f32 %v709_v21, %v707_v12 }
 0x8b2   :  { %716 = vrot.lane.b32.xlu1 %v4550_v24, %s4216_s26 }
 0x91c   :  { %v715_v26 = vpop.permute.xlu0 %714 }
 0x91d   :  { %721 = vst.msk [vmem:[#allocation3 + $0x30] sm:$0xff] %vm90_vm0, %v715_v26  ;;  %3772 = vmatmul.msk.f32.vlgmr.msrb.gmra.mxu2 %vm90_vm0, %v715_v26  ;;  %v1225_v26 = vld [vmem:[%s5624_s6 + $0x10] sm:$0xff] }
 0x924   :  { %v717_v23 = vpop.permute.xlu1 %716 }
 0x925   :  { %722 = vst.msk [vmem:[#allocation3 + $0x38] sm:$0xff] %vm90_vm0, %v717_v23  ;;  %3773 = vmatmul.msk.f32.gmra.mxu2 %vm90_vm0, %v717_v23  ;;  %v1224_v23 = vld [vmem:[%s5624_s6 + $0x8] sm:$0xff] }
 0x9a0   :  { %v747_v28 = vpop.f32.mrf.mxu2 }
 0x9a1   :  { %v793_v29 = vadd.f32 %v747_v28, %v4421_v19  ;;  %v753_v10 = vadd.f32 %v747_v28, %v724_v9  ;;  %v1207_v28 = vld [vmem:[#allocation3] sm:$0xff] }
 0x9a3   :  { %797 = vrot.lane.b32.xlu2 %v793_v29, %s4214_s27  ;;  %v3774_v30 = vmul.f32 -1.442695, %v753_v10  ;;  %v1208_v29 = vld [vmem:[#allocation3 + $0x8] sm:$0xff] }
 0x9a4   :  { %v1212_v10 = vld [vmem:[#allocation3 + $0x28] sm:$0xff] }
 0x9a5   :  { %3970 = vpow2.f32 %v3774_v30  ;;  %v186_v30 = vpop.f32.mrf.mxu0 }
 0x9a8   :  { %v750_v5 = vpop.f32.mrf.mxu2 }
 0x9a9   :  { %v794_v8 = vadd.f32 %v750_v5, %v4421_v19  ;;  %v754_v36 = vadd.f32 %v750_v5, %v725_v34  ;;  %v1209_v5 = vld [vmem:[#allocation3 + $0x10] sm:$0xff] }
 0x9ab   :  { %799 = vrot.lane.b32.xlu0 %v794_v8, %s4214_s27  ;;  %v3971_v31 = vpop.eup %3970  ;;  %v3775_v38 = vmul.f32 -1.442695, %v754_v36  ;;  %v1210_v8 = vld [vmem:[#allocation3 + $0x18] sm:$0xff] }
 0x9ac   :  { %v761_v32 = vadd.f32 1.0, %v3971_v31  ;;  %v187_v31 = vadd.f32 %v4415_v14, %v186_v30 }
 0x9ae   :  { %3972 = vrcp.f32 %v761_v32  ;;  %v774_v41 = vand.u32 2147483648, %v761_v32  ;;  %vm768_vm7 = vweird.f32 %v761_v32  ;;  %v772_v42 = vand.u32 2147483647, %v761_v32  ;;  %215 = vst.msk [vmem:[#allocation2 + $0x50] sm:$0xff] %vm204_vm1, %v187_v31 }
 0x9af   :  { %3974 = vpow2.f32 %v3775_v38 }
 0x9b0   :  { %v775_v45 = vor.u32 1.1754944e-38, %v774_v41  ;;  %vm773_vm9 = vcmp.eq.f32.partialorder %v772_v42, 8.507059e+37  ;;  %v4629_v42 = vld [vmem:[%s5626_s8] ss:$0 sm:$0xff] }
 0x9b4   :  { %v3973_v33 = vpop.eup %3972 }
 0x9b5   :  { %v764_v35 = vmul.f32 %v3973_v33, %v761_v32  ;;  %vm769_vm6 = vweird.f32 %v3973_v33  ;;  %v3975_v43 = vpop.eup %3974  ;;  %v1213_v32 = vld [vmem:[#allocation3 + $0x30] sm:$0xff] }
 0x9b6   :  { %vm770_vm8 = vmor %vm768_vm7, %vm769_vm6  ;;  %v762_v46 = vadd.f32 1.0, %v3975_v43 }
 0x9b7   :  { %v765_v37 = vsub.f32 1.0, %v764_v35 }
 0x9b8   :  { %3976 = vrcp.f32 %v762_v46  ;;  %v789_v55 = vand.u32 2147483648, %v762_v46  ;;  %vm783_vm11 = vweird.f32 %v762_v46  ;;  %v787_v56 = vand.u32 2147483647, %v762_v46 }
 0x9b9   :  { %v766_v39 = vmul.f32 %v3973_v33, %v765_v37 }
 0x9ba   :  { %v790_v58 = vor.u32 1.1754944e-38, %v789_v55  ;;  %vm788_vm13 = vcmp.eq.f32.partialorder %v787_v56, 8.507059e+37 }
 0x9bb   :  { %v767_v40 = vadd.f32 %v3973_v33, %v766_v39 }
 0x9bd   :  { %v771_v44 = vsel %vm770_vm8, %v3973_v33, %v767_v40  ;;  %v1214_v33 = vld [vmem:[#allocation3 + $0x38] sm:$0xff] }
 0x9be   :  { %v776_v48 = vsel %vm773_vm9, %v775_v45, %v771_v44  ;;  %v3977_v50 = vpop.eup %3976 }
 0x9bf   :  { %v779_v51 = vmul.f32 %v3977_v50, %v762_v46  ;;  %vm784_vm10 = vweird.f32 %v3977_v50  ;;  %v817_v6 = vsub.f32 1.0, %v776_v48  ;;  %v829_v11 = vmul.f32 %v776_v48, %v4545_v13  ;;  %v77_v13 = vld [vmem:[%s5650_s29 + $0x58] sm:$0xff] }
 0x9c0   :  { %vm785_vm12 = vmor %vm783_vm11, %vm784_vm10  ;;  %3751 = vmatmul.msk.f32.gmra.mxu0 %vm90_vm0, %v77_v13 }
 0x9c1   :  { %v780_v52 = vsub.f32 1.0, %v779_v51 }
 0x9c3   :  { %v781_v53 = vmul.f32 %v3977_v50, %v780_v52 }
 0x9c5   :  { %v782_v54 = vadd.f32 %v3977_v50, %v781_v53 }
 0x9c7   :  { %v786_v57 = vsel %vm785_vm12, %v3977_v50, %v782_v54 }
 0x9c8   :  { %v791_v60 = vsel %vm788_vm13, %v790_v58, %v786_v57 }
 0x9c9   :  { %v818_v16 = vsub.f32 1.0, %v791_v60  ;;  %v830_v12 = vmul.f32 %v791_v60, %v4550_v24  ;;  %v1226_v24 = vld [vmem:[%s5624_s6 + $0x18] sm:$0xff] }
 0x9ca   :  { %1291 = vmatpush.msra.mxu3 %v1226_v24 }
 0x9cc   :  { %1292 = vmatpush.msra.mxu3 %v1225_v26 }
 0x9ce   :  { %1293 = vmatpush.msra.mxu3 %v1224_v23 }
 0x9d0   :  { %1294 = vmatpush.msra.mxu3 %v1223_v22 }
 0x9fd   :  { %v798_v47 = vpop.permute.xlu2 %797 }
 0x9fe   :  { %v803_v49 = vmul.f32 %v798_v47, %v776_v48 }
 0xa00   :  { %807 = vrot.lane.b32.xlu1 %v803_v49, %s4214_s27  ;;  %v4637_v49 = vld [vmem:[#allocation2 + $0x50] sm:$0xff] }
 0xa1d   :  { %v800_v59 = vpop.permute.xlu0 %799 }
 0xa1e   :  { %v804_v61 = vmul.f32 %v800_v59, %v791_v60 }
 0xa20   :  { %809 = vrot.lane.b32.xlu2 %v804_v61, %s4214_s27 }
 0xa3d   :  { %v189_v36 = vpop.f32.mrf.mxu0 }
 0xa3e   :  { %v190_v37 = vadd.f32 %v4415_v14, %v189_v36 }
 0xa40   :  { %216 = vst.msk [vmem:[#allocation2 + $0x58] sm:$0xff] %vm204_vm1, %v190_v37 }
 0xa47   :  { %v4642_v54 = vld [vmem:[#allocation2 + $0x58] sm:$0xff] }
 0xa72   :  { %v808_v62 = vpop.permute.xlu1 %807 }
 0xa73   :  { %v813_v63 = vadd.f32 %v808_v62, %v724_v9  ;;  %v1211_v9 = vld [vmem:[#allocation3 + $0x20] sm:$0xff] }
 0xa75   :  { %3978 = vtanh.f32 %v813_v63 }
 0xa7a   :  { %v810_v0 = vpop.permute.xlu2 %809 }
 0xa7b   :  { %v3979_v1 = vpop.eup %3978  ;;  %v814_v2 = vadd.f32 %v810_v0, %v725_v34 }
 0xa7c   :  { %821 = vrot.lane.b32.xlu0 %v3979_v1, %s4216_s26 }
 0xa7d   :  { %3980 = vtanh.f32 %v814_v2 }
 0xa83   :  { %v3981_v3 = vpop.eup %3980 }
 0xa84   :  { %823 = vrot.lane.b32.xlu1 %v3981_v3, %s4216_s26 }
 0xaee   :  { %v822_v7 = vpop.permute.xlu0 %821 }
 0xaef   :  { %v827_v17 = vmul.f32 %v822_v7, %v817_v6 }
 0xaf1   :  { %v4579_v18 = vadd.f32 %v829_v11, %v827_v17 }
 0xaf3   :  { %835 = vrot.lane.b32.xlu2 %v4579_v18, %s4216_s26 }
 0xaf6   :  { %v824_v21 = vpop.permute.xlu1 %823 }
 0xaf7   :  { %v828_v15 = vmul.f32 %v824_v21, %v818_v16 }
 0xaf9   :  { %v4584_v20 = vadd.f32 %v830_v12, %v828_v15 }
 0xafb   :  { %837 = vrot.lane.b32.xlu0 %v4584_v20, %s4216_s26 }
 0xb4d   :  { %v836_v25 = vpop.permute.xlu2 %835 }
 0xb4e   :  { %842 = vst.msk [vmem:[#allocation3 + $0x40] sm:$0xff] %vm90_vm0, %v836_v25  ;;  %3776 = vmatmul.msk.f32.vlgmr.msrb.gmra.mxu3 %vm90_vm0, %v836_v25 }
 0xb55   :  { %v1215_v34 = vld [vmem:[#allocation3 + $0x40] sm:$0xff] }
 0xb6d   :  { %v838_v27 = vpop.permute.xlu0 %837 }
 0xb6e   :  { %843 = vst.msk [vmem:[#allocation3 + $0x48] sm:$0xff] %vm90_vm0, %v838_v27  ;;  %3777 = vmatmul.msk.f32.gmra.mxu3 %vm90_vm0, %v838_v27 }
 0xb75   :  { %v1216_v35 = vld [vmem:[#allocation3 + $0x48] sm:$0xff] }
 0xb76   :  { %3788 = vmatmul.msk.f32.vlgmr.msra.gmra.mxu3 %vm90_vm0, %v1207_v28 }
 0xb7e   :  { %3789 = vmatmul.msk.f32.gmra.mxu3 %vm90_vm0, %v1208_v29 }
 0xb86   :  { %3790 = vmatmul.msk.f32.gmra.mxu3 %vm90_vm0, %v1209_v5 }
 0xb8e   :  { %3791 = vmatmul.msk.f32.gmra.mxu3 %vm90_vm0, %v1210_v8 }
 0xb96   :  { %3792 = vmatmul.msk.f32.gmra.mxu3 %vm90_vm0, %v1211_v9 }
 0xb9e   :  { %3793 = vmatmul.msk.f32.gmra.mxu3 %vm90_vm0, %v1212_v10 }
 0xba6   :  { %3794 = vmatmul.msk.f32.gmra.mxu3 %vm90_vm0, %v1213_v32 }
 0xbae   :  { %3795 = vmatmul.msk.f32.gmra.mxu3 %vm90_vm0, %v1214_v33 }
 0xbb6   :  { %3796 = vmatmul.msk.f32.gmra.mxu3 %vm90_vm0, %v1215_v34 }
 0xbbe   :  { %3797 = vmatmul.msk.f32.gmra.mxu3 %vm90_vm0, %v1216_v35 }
 0xbd1   :  { %v868_v38 = vpop.f32.mrf.mxu3 }
 0xbd2   :  { %v914_v39 = vadd.f32 %v868_v38, %v4421_v19  ;;  %v874_v51 = vadd.f32 %v868_v38, %v4637_v49 }
 0xbd4   :  { %918 = vrot.lane.b32.xlu1 %v914_v39, %s4214_s27  ;;  %v3778_v52 = vmul.f32 -1.442695, %v874_v51 }
 0xbd6   :  { %3982 = vpow2.f32 %v3778_v52 }
 0xbdc   :  { %v3983_v60 = vpop.eup %3982 }
 0xbdd   :  { %v882_v61 = vadd.f32 1.0, %v3983_v60 }
 0xbdf   :  { %v895_v25 = vand.u32 2147483648, %v882_v61  ;;  %vm889_vm15 = vweird.f32 %v882_v61  ;;  %v893_v26 = vand.u32 2147483647, %v882_v61 }
 0xbe1   :  { %v896_v28 = vor.u32 1.1754944e-38, %v895_v25  ;;  %vm894_vm3 = vcmp.eq.f32.partialorder %v893_v26, 8.507059e+37 }
 0xbf1   :  { %v871_v40 = vpop.f32.mrf.mxu3 }
 0xbf2   :  { %v915_v41 = vadd.f32 %v871_v40, %v4421_v19  ;;  %v875_v56 = vadd.f32 %v871_v40, %v4642_v54 }
 0xbf4   :  { %920 = vrot.lane.b32.xlu2 %v915_v41, %s4214_s27  ;;  %v3779_v57 = vmul.f32 -1.442695, %v875_v56  ;;  %v3901_v56 = vld [vmem:[%s5627_s9] ss:$0 sm:$0xff]  ;;  %s4218_s9 = smov 128  }
 0xbf6   :  { %3984 = vpow2.f32 %v3779_v57 }
 0xbf7   :  { %3986 = vrcp.f32 %v882_v61 }
 0xbf9   :  { %v1296_v43 = vpop.f32.mrf.mxu3 }
 0xbfa   :  { %v1297_v14 = vadd.f32 %v4629_v42, %v1296_v43 }
 0xbfc   :  { %1344 = vst.msk [vmem:[#allocation2] sm:$0xff] %vm204_vm1, %v1297_v14  ;;  %v3985_v0 = vpop.eup %3984 }
 0xbfd   :  { %v883_v1 = vadd.f32 1.0, %v3985_v0  ;;  %v3987_v2 = vpop.eup %3986 }
 0xbfe   :  { %v885_v6 = vmul.f32 %v3987_v2, %v882_v61  ;;  %vm890_vm14 = vweird.f32 %v3987_v2  ;;  %v4725_v61 = vld [vmem:[%s5653_s25] ss:$0 sm:$0xff] }
 0xbff   :  { %3988 = vrcp.f32 %v883_v1  ;;  %vm891_vm2 = vmor %vm889_vm15, %vm890_vm14  ;;  %v910_v10 = vand.u32 2147483648, %v883_v1  ;;  %vm904_vm5 = vweird.f32 %v883_v1  ;;  %v908_v30 = vand.u32 2147483647, %v883_v1 }
 0xc00   :  { %v886_v7 = vsub.f32 1.0, %v885_v6 }
 0xc01   :  { %v1299_v44 = vpop.f32.mrf.mxu3  ;;  %v911_v32 = vor.u32 1.1754944e-38, %v910_v10  ;;  %vm909_vm7 = vcmp.eq.f32.partialorder %v908_v30, 8.507059e+37 }
 0xc02   :  { %v1300_v45 = vadd.f32 %v4629_v42, %v1299_v44  ;;  %v887_v21 = vmul.f32 %v3987_v2, %v886_v7 }
 0xc04   :  { %1345 = vst.msk [vmem:[#allocation2 + $0x8] sm:$0xff] %vm204_vm1, %v1300_v45  ;;  %v888_v15 = vadd.f32 %v3987_v2, %v887_v21 }
 0xc05   :  { %v3989_v11 = vpop.eup %3988 }
 0xc06   :  { %v900_v12 = vmul.f32 %v3989_v11, %v883_v1  ;;  %v892_v22 = vsel %vm891_vm2, %v3987_v2, %v888_v15  ;;  %vm905_vm4 = vweird.f32 %v3989_v11 }
 0xc07   :  { %v897_v5 = vsel %vm894_vm3, %v896_v28, %v892_v22  ;;  %vm906_vm6 = vmor %vm904_vm5, %vm905_vm4 }
 0xc08   :  { %v901_v13 = vsub.f32 1.0, %v900_v12  ;;  %v938_v43 = vsub.f32 1.0, %v897_v5  ;;  %v950_v44 = vmul.f32 %v897_v5, %v4579_v18 }
 0xc09   :  { %v1302_v46 = vpop.f32.mrf.mxu3 }
 0xc0a   :  { %v1303_v47 = vadd.f32 %v4629_v42, %v1302_v46  ;;  %v902_v27 = vmul.f32 %v3989_v11, %v901_v13 }
 0xc0c   :  { %1346 = vst.msk [vmem:[#allocation2 + $0x10] sm:$0xff] %vm204_vm1, %v1303_v47  ;;  %v903_v9 = vadd.f32 %v3989_v11, %v902_v27  ;;  %v78_v47 = vld [vmem:[%s5650_s29 + $0x60] sm:$0xff] }
 0xc0d   :  { %3752 = vmatmul.msk.f32.gmra.mxu0 %vm90_vm0, %v78_v47 }
 0xc0e   :  { %v907_v31 = vsel %vm906_vm6, %v3989_v11, %v903_v9 }
 0xc0f   :  { %v912_v34 = vsel %vm909_vm7, %v911_v32, %v907_v31  ;;  %v4770_v32 = vld [vmem:[#allocation2] sm:$0xff] }
 0xc11   :  { %v1305_v48 = vpop.f32.mrf.mxu3 }
 0xc12   :  { %v1306_v50 = vadd.f32 %v4629_v42, %v1305_v48  ;;  %v79_v48 = vld [vmem:[%s5650_s29 + $0x68] sm:$0xff] }
 0xc14   :  { %1347 = vst.msk [vmem:[#allocation2 + $0x18] sm:$0xff] %vm204_vm1, %v1306_v50  ;;  %v951_v50 = vmul.f32 %v912_v34, %v4584_v20  ;;  %v4696_v20 = vld [vmem:[%s5625_s7 + $0x8] sm:$0xff] }
 0xc15   :  { %3753 = vmatmul.msk.f32.gmra.mxu0 %vm90_vm0, %v79_v48 }
 0xc19   :  { %v1308_v53 = vpop.f32.mrf.mxu3 }
 0xc1a   :  { %v1309_v55 = vadd.f32 %v4629_v42, %v1308_v53  ;;  %v4684_v53 = vld [vmem:[%s5625_s7 + $0x18] sm:$0xff] }
 0xc1b   :  { %1388 = vmatpush.msra.mxu1 %v4684_v53  ;;  %1514 = vmatpush.msrb.mxu2 %v4684_v53 }
 0xc1c   :  { %1348 = vst.msk [vmem:[#allocation2 + $0x20] sm:$0xff] %vm204_vm1, %v1309_v55  ;;  %v4703_v55 = vld [vmem:[%s5625_s7] sm:$0xff] }
 0xc21   :  { %v1311_v58 = vpop.f32.mrf.mxu3 }
 0xc22   :  { %v1312_v59 = vadd.f32 %v4629_v42, %v1311_v58 }
 0xc24   :  { %1349 = vst.msk [vmem:[#allocation2 + $0x28] sm:$0xff] %vm204_vm1, %v1312_v59 }
 0xc29   :  { %v1314_v62 = vpop.f32.mrf.mxu3 }
 0xc2a   :  { %v1315_v63 = vadd.f32 %v4629_v42, %v1314_v62 }
 0xc2c   :  { %1350 = vst.msk [vmem:[#allocation2 + $0x30] sm:$0xff] %vm204_vm1, %v1315_v63  ;;  %v4731_v63 = vld [vmem:[%s5652_s1 + $0x10] sm:$0xff] }
 0xc31   :  { %v1317_v3 = vpop.f32.mrf.mxu3 }
 0xc32   :  { %v1318_v4 = vadd.f32 %v4629_v42, %v1317_v3  ;;  %v4743_v3 = vld [vmem:[%s5652_s1 + $0x18] sm:$0xff] }
 0xc34   :  { %1351 = vst.msk [vmem:[#allocation2 + $0x38] sm:$0xff] %vm204_vm1, %v1318_v4 }
 0xc39   :  { %v1320_v17 = vpop.f32.mrf.mxu3 }
 0xc3a   :  { %v1321_v16 = vadd.f32 %v4629_v42, %v1320_v17 }
 0xc3c   :  { %1352 = vst.msk [vmem:[#allocation2 + $0x40] sm:$0xff] %vm204_vm1, %v1321_v16 }
 0xc41   :  { %v1323_v24 = vpop.f32.mrf.mxu3 }
 0xc42   :  { %v1324_v23 = vadd.f32 %v4629_v42, %v1323_v24 }
 0xc44   :  { %1353 = vst.msk [vmem:[#allocation2 + $0x48] sm:$0xff] %vm204_vm1, %v1324_v23 }
 0xc46   :  { %v919_v29 = vpop.permute.xlu1 %918 }
 0xc47   :  { %v924_v8 = vmul.f32 %v919_v29, %v897_v5 }
 0xc49   :  { %928 = vrot.lane.b32.xlu0 %v924_v8, %s4214_s27 }
 0xc4e   :  { %v921_v33 = vpop.permute.xlu2 %920 }
 0xc4f   :  { %v925_v35 = vmul.f32 %v921_v33, %v912_v34 }
 0xc51   :  { %930 = vrot.lane.b32.xlu1 %v925_v35, %s4214_s27 }
 0xc8a   :  { %v192_v60 = vpop.f32.mrf.mxu0 }
 0xc8b   :  { %v193_v62 = vadd.f32 %v4725_v61, %v192_v60 }
 0xc8d   :  { %217 = vst.msk [vmem:[#allocation2 + $0x60] sm:$0xff] %vm204_vm1, %v193_v62 }
 0xc92   :  { %v195_v1 = vpop.f32.mrf.mxu0 }
 0xc93   :  { %v196_v2 = vadd.f32 %v4725_v61, %v195_v1 }
 0xc94   :  { %v4767_v28 = vld [vmem:[#allocation2 + $0x60] sm:$0xff] }
 0xc95   :  { %218 = vst.msk [vmem:[#allocation2 + $0x68] sm:$0xff] %vm204_vm1, %v196_v2 }
 0xc9c   :  { %v4764_v23 = vld [vmem:[#allocation2 + $0x68] sm:$0xff] }
 0xcbb   :  { %v929_v36 = vpop.permute.xlu0 %928 }
 0xcbc   :  { %v934_v37 = vadd.f32 %v929_v36, %v4637_v49  ;;  %v939_v49 = vsub.f32 1.0, %v912_v34 }
 0xcbe   :  { %3990 = vtanh.f32 %v934_v37 }
 0xcc3   :  { %v931_v38 = vpop.permute.xlu1 %930 }
 0xcc4   :  { %v3991_v39 = vpop.eup %3990  ;;  %v935_v40 = vadd.f32 %v931_v38, %v4642_v54  ;;  %v4689_v54 = vld [vmem:[%s5625_s7 + $0x10] sm:$0xff]  ;;  %v4773_v38 = vld [vmem:[#allocation2 + $0x8] sm:$0xff]  ;;  %s3728_s7 = sshll.u32 %s5638_s20, 4  ;;  %s3729_s7 = int_to_ptr.hbm [resolvable:$true] %s3728_s7 }
 0xcc5   :  { %942 = vrot.lane.b32.xlu2 %v3991_v39, %s4216_s26  ;;  %1389 = vmatpush.msra.mxu1 %v4689_v54 }
 0xcc6   :  { %3992 = vtanh.f32 %v935_v40  ;;  %1515 = vmatpush.msrb.mxu2 %v4689_v54 }
 0xcc7   :  { %1390 = vmatpush.msra.mxu1 %v4696_v20 }
 0xcc8   :  { %1516 = vmatpush.msrb.mxu2 %v4696_v20 }
 0xcc9   :  { %1391 = vmatpush.msra.mxu1 %v4703_v55 }
 0xcca   :  { %1517 = vmatpush.msrb.mxu2 %v4703_v55 }
 0xccc   :  { %v3993_v41 = vpop.eup %3992 }
 0xccd   :  { %944 = vrot.lane.b32.xlu0 %v3993_v41, %s4216_s26 }
 0xcd5   :  { %1441 = vrot.lane.b32.xlu0 %v3901_v56, %s4214_s27 }
 0xd1f   :  { %v943_v14 = vpop.permute.xlu2 %942 }
 0xd20   :  { %v948_v45 = vmul.f32 %v943_v14, %v938_v43 }
 0xd22   :  { %v4664_v46 = vadd.f32 %v950_v44, %v948_v45 }
 0xd24   :  { %956 = vrot.lane.b32.xlu1 %v4664_v46, %s4216_s26 }
 0xd3f   :  { %v945_v18 = vpop.permute.xlu0 %944 }
 0xd40   :  { %v949_v51 = vmul.f32 %v945_v18, %v939_v49 }
 0xd42   :  { %v4677_v52 = vadd.f32 %v951_v50, %v949_v51 }
 0xd44   :  { %958 = vrot.lane.b32.xlu2 %v4677_v52, %s4216_s26 }
 0xd47   :  { %v4754_v16 = vpop.permute.xlu0 %1441 }
 0xd96   :  { %v957_v57 = vpop.permute.xlu1 %956 }
 0xd97   :  { %963 = vst.msk [vmem:[#allocation3 + $0x50] sm:$0xff] %vm90_vm0, %v957_v57  ;;  %3780 = vmatmul.msk.f32.vlgmr.msrb.gmra.mxu1 %vm90_vm0, %v957_v57 }
 0xd98   :  { %1629 = vmatpush.msrb.mxu1 %v4684_v53 }
 0xd9a   :  { %1630 = vmatpush.msrb.mxu1 %v4689_v54 }
 0xd9c   :  { %1631 = vmatpush.msrb.mxu1 %v4696_v20 }
 0xd9e   :  { %v959_v58 = vpop.permute.xlu2 %958  ;;  %v1217_v59 = vld [vmem:[#allocation3 + $0x50] sm:$0xff]  ;;  %1632 = vmatpush.msrb.mxu1 %v4703_v55 }
 0xd9f   :  { %964 = vst.msk [vmem:[#allocation3 + $0x58] sm:$0xff] %vm90_vm0, %v959_v58  ;;  %3781 = vmatmul.msk.f32.gmra.mxu1 %vm90_vm0, %v959_v58  ;;  %3798 = vmatmul.msk.f32.gmra.mxu3 %vm90_vm0, %v1217_v59 }
 0xda6   :  { %v1218_v0 = vld [vmem:[#allocation3 + $0x58] sm:$0xff] }
 0xda7   :  { %3799 = vmatmul.msk.f32.gmra.mxu3 %vm90_vm0, %v1218_v0  ;;  %3806 = vmatmul.msk.f32.vlgmr.msra.gmra.mxu1 %vm90_vm0, %v4731_v63 }
 0xda8   :  { %1859 = vmatpush.msra.mxu1 %v4684_v53 }
 0xdaa   :  { %1860 = vmatpush.msra.mxu1 %v4689_v54 }
 0xdac   :  { %1861 = vmatpush.msra.mxu1 %v4696_v20 }
 0xdae   :  { %1862 = vmatpush.msra.mxu1 %v4703_v55 }
 0xdaf   :  { %3807 = vmatmul.msk.f32.gmra.mxu1 %vm90_vm0, %v4743_v3 }
 0xe14   :  { %v989_v4 = vpop.f32.mrf.mxu1 }
 0xe15   :  { %v1035_v6 = vadd.f32 %v989_v4, %v4421_v19  ;;  %v995_v5 = vadd.f32 %v989_v4, %v4767_v28 }
 0xe17   :  { %1039 = vrot.lane.b32.xlu1 %v1035_v6, %s4214_s27  ;;  %v3782_v9 = vmul.f32 -1.442695, %v995_v5 }
 0xe1c   :  { %v992_v7 = vpop.f32.mrf.mxu1 }
 0xe1d   :  { %v1036_v11 = vadd.f32 %v992_v7, %v4421_v19  ;;  %v996_v22 = vadd.f32 %v992_v7, %v4764_v23 }
 0xe1f   :  { %1041 = vrot.lane.b32.xlu2 %v1036_v11, %s4214_s27  ;;  %v3783_v27 = vmul.f32 -1.442695, %v996_v22 }
 0xe21   :  { %3994 = vpow2.f32 %v3783_v27 }
 0xe22   :  { %v1326_v17 = vpop.f32.mrf.mxu3 }
 0xe23   :  { %v1327_v21 = vadd.f32 %v4629_v42, %v1326_v17 }
 0xe24   :  { %v1393_v12 = vpop.f32.mrf.mxu1 }
 0xe25   :  { %1354 = vst.msk [vmem:[#allocation2 + $0x50] sm:$0xff] %vm204_vm1, %v1327_v21  ;;  %v1444_v15 = vadd.f32 %v4754_v16, %v1393_v12  ;;  %v1399_v33 = vadd.f32 %v1393_v12, %v4770_v32 }
 0xe27   :  { %1448 = vrot.lane.b32.xlu0 %v1444_v15, %s4214_s27  ;;  %v3995_v29 = vpop.eup %3994  ;;  %v3808_v36 = vmul.f32 -1.442695, %v1399_v33 }
 0xe28   :  { %v1004_v8 = vadd.f32 1.0, %v3995_v29 }
 0xe2a   :  { %v1329_v13 = vpop.f32.mrf.mxu3  ;;  %3996 = vrcp.f32 %v1004_v8  ;;  %v1031_v43 = vand.u32 2147483648, %v1004_v8  ;;  %vm1025_vm9 = vweird.f32 %v1004_v8  ;;  %v1029_v44 = vand.u32 2147483647, %v1004_v8 }
 0xe2b   :  { %v1330_v25 = vadd.f32 %v4629_v42, %v1329_v13  ;;  %3998 = vpow2.f32 %v3782_v9 }
 0xe2c   :  { %v1396_v24 = vpop.f32.mrf.mxu1  ;;  %v1032_v49 = vor.u32 1.1754944e-38, %v1031_v43  ;;  %vm1030_vm11 = vcmp.eq.f32.partialorder %v1029_v44, 8.507059e+37 }
 0xe2d   :  { %1355 = vst.msk [vmem:[#allocation2 + $0x58] sm:$0xff] %vm204_vm1, %v1330_v25  ;;  %v1445_v26 = vadd.f32 %v4754_v16, %v1396_v24  ;;  %v1400_v39 = vadd.f32 %v1396_v24, %v4773_v38 }
 0xe2f   :  { %1450 = vrot.lane.b32.xlu1 %v1445_v26, %s4214_s27  ;;  %v3809_v14 = vmul.f32 -1.442695, %v1400_v39 }
 0xe30   :  { %v3997_v10 = vpop.eup %3996 }
 0xe31   :  { %v3999_v30 = vpop.eup %3998  ;;  %v1021_v31 = vmul.f32 %v3997_v10, %v1004_v8  ;;  %vm1026_vm8 = vweird.f32 %v3997_v10 }
 0xe32   :  { %v1003_v34 = vadd.f32 1.0, %v3999_v30  ;;  %vm1027_vm10 = vmor %vm1025_vm9, %vm1026_vm8 }
 0xe33   :  { %v1022_v35 = vsub.f32 1.0, %v1021_v31 }
 0xe34   :  { %4000 = vrcp.f32 %v1003_v34  ;;  %v1016_v1 = vand.u32 2147483648, %v1003_v34  ;;  %vm1010_vm13 = vweird.f32 %v1003_v34  ;;  %v1014_v2 = vand.u32 2147483647, %v1003_v34 }
 0xe35   :  { %v1023_v37 = vmul.f32 %v3997_v10, %v1022_v35  ;;  %4002 = vpow2.f32 %v3808_v36 }
 0xe36   :  { %4004 = vpow2.f32 %v3809_v14  ;;  %v1017_v7 = vor.u32 1.1754944e-38, %v1016_v1  ;;  %vm1015_vm15 = vcmp.eq.f32.partialorder %v1014_v2, 8.507059e+37 }
 0xe37   :  { %v1024_v40 = vadd.f32 %v3997_v10, %v1023_v37 }
 0xe39   :  { %v1028_v47 = vsel %vm1027_vm10, %v3997_v10, %v1024_v40 }
 0xe3a   :  { %v4001_v41 = vpop.eup %4000  ;;  %v4776_v51 = vsel %vm1030_vm11, %v1032_v49, %v1028_v47 }
 0xe3b   :  { %v4003_v45 = vpop.eup %4002  ;;  %v1006_v48 = vmul.f32 %v4001_v41, %v1003_v34  ;;  %vm1011_vm12 = vweird.f32 %v4001_v41 }
 0xe3c   :  { %v1407_v18 = vadd.f32 1.0, %v4003_v45  ;;  %v4005_v58 = vpop.eup %4004  ;;  %vm1012_vm14 = vmor %vm1010_vm13, %vm1011_vm12 }
 0xe3d   :  { %v1007_v57 = vsub.f32 1.0, %v1006_v48  ;;  %v1408_v60 = vadd.f32 1.0, %v4005_v58 }
 0xe3e   :  { %4006 = vrcp.f32 %v1407_v18  ;;  %v1420_v22 = vand.u32 2147483648, %v1407_v18  ;;  %vm1414_vm3 = vweird.f32 %v1407_v18  ;;  %v1418_v27 = vand.u32 2147483647, %v1407_v18 }
 0xe3f   :  { %v1008_v59 = vmul.f32 %v4001_v41, %v1007_v57  ;;  %4008 = vrcp.f32 %v1408_v60  ;;  %v1435_v33 = vand.u32 2147483648, %v1408_v60  ;;  %vm1429_vm7 = vweird.f32 %v1408_v60 }
 0xe40   :  { %v1421_v8 = vor.u32 1.1754944e-38, %v1420_v22  ;;  %vm1419_vm5 = vcmp.eq.f32.partialorder %v1418_v27, 8.507059e+37  ;;  %v1433_v34 = vand.u32 2147483647, %v1408_v60 }
 0xe41   :  { %v1009_v62 = vadd.f32 %v4001_v41, %v1008_v59  ;;  %v1436_v36 = vor.u32 1.1754944e-38, %v1435_v33  ;;  %v1060_v59 = vsub.f32 1.0, %v4776_v51 }
 0xe42   :  { %vm1434_vm9 = vcmp.eq.f32.partialorder %v1433_v34, 8.507059e+37 }
 0xe43   :  { %v1013_v4 = vsel %vm1012_vm14, %v4001_v41, %v1009_v62 }
 0xe44   :  { %v4007_v0 = vpop.eup %4006  ;;  %v1018_v17 = vsel %vm1015_vm15, %v1017_v7, %v1013_v4 }
 0xe45   :  { %v1410_v6 = vmul.f32 %v4007_v0, %v1407_v18  ;;  %v4009_v15 = vpop.eup %4008  ;;  %vm1415_vm2 = vweird.f32 %v4007_v0  ;;  %v1071_v57 = vmul.f32 %v1018_v17, %v4664_v46 }
 0xe46   :  { %v1425_v25 = vmul.f32 %v4009_v15, %v1408_v60  ;;  %vm1416_vm4 = vmor %vm1414_vm3, %vm1415_vm2  ;;  %vm1430_vm6 = vweird.f32 %v4009_v15  ;;  %v1072_v60 = vmul.f32 %v4776_v51, %v4677_v52 }
 0xe47   :  { %v1411_v12 = vsub.f32 1.0, %v1410_v6  ;;  %vm1431_vm8 = vmor %vm1429_vm7, %vm1430_vm6 }
 0xe48   :  { %v1426_v26 = vsub.f32 1.0, %v1425_v25 }
 0xe49   :  { %v1412_v13 = vmul.f32 %v4007_v0, %v1411_v12  ;;  %v80_v12 = vld [vmem:[%s5650_s29 + $0x70] sm:$0xff] }
 0xe4a   :  { %v1427_v5 = vmul.f32 %v4009_v15, %v1426_v26  ;;  %3754 = vmatmul.msk.f32.gmra.mxu0 %vm90_vm0, %v80_v12 }
 0xe4b   :  { %v1413_v24 = vadd.f32 %v4007_v0, %v1412_v13 }
 0xe4c   :  { %v1428_v31 = vadd.f32 %v4009_v15, %v1427_v5 }
 0xe4d   :  { %v1417_v29 = vsel %vm1416_vm4, %v4007_v0, %v1413_v24 }
 0xe4e   :  { %v1422_v10 = vsel %vm1419_vm5, %v1421_v8, %v1417_v29  ;;  %v1432_v35 = vsel %vm1431_vm8, %v4009_v15, %v1428_v31 }
 0xe4f   :  { %v1437_v39 = vsel %vm1434_vm9, %v1436_v36, %v1432_v35  ;;  %v1468_v46 = vsub.f32 1.0, %v1422_v10  ;;  %v1491_v36 = vld [vmem:[#allocation2 + $0x18] sm:$0xff] }
 0xe50   :  { %v1469_v7 = vsub.f32 1.0, %v1437_v39 }
 0xe79   :  { %v1042_v50 = vpop.permute.xlu2 %1041 }
 0xe7a   :  { %v1046_v56 = vmul.f32 %v1042_v50, %v4776_v51 }
 0xe7c   :  { %1051 = vrot.lane.b32.xlu0 %v1046_v56, %s4214_s27 }
 0xe89   :  { %v1040_v11 = vpop.permute.xlu1 %1039 }
 0xe8a   :  { %v1045_v21 = vmul.f32 %v1040_v11, %v1018_v17 }
 0xe8c   :  { %1049 = vrot.lane.b32.xlu2 %v1045_v21, %s4214_s27 }
 0xe99   :  { %v1449_v9 = vpop.permute.xlu0 %1448 }
 0xe9a   :  { %v1454_v30 = vmul.f32 %v1449_v9, %v1422_v10 }
 0xe9c   :  { %1458 = vrot.lane.b32.xlu1 %v1454_v30, %s4214_s27 }
 0xea1   :  { %v1451_v37 = vpop.permute.xlu1 %1450 }
 0xea2   :  { %v1455_v40 = vmul.f32 %v1451_v37, %v1437_v39 }
 0xea4   :  { %1460 = vrot.lane.b32.xlu2 %v1455_v40, %s4214_s27 }
 0xec7   :  { %v198_v27 = vpop.f32.mrf.mxu0 }
 0xec8   :  { %v199_v29 = vadd.f32 %v4725_v61, %v198_v27 }
 0xeca   :  { %219 = vst.msk [vmem:[#allocation2 + $0x70] sm:$0xff] %vm204_vm1, %v199_v29 }
 0xee6   :  { %v1050_v41 = vpop.permute.xlu2 %1049 }
 0xee7   :  { %v1055_v43 = vadd.f32 %v1050_v41, %v4767_v28  ;;  %v1490_v41 = vld [vmem:[#allocation2 + $0x10] sm:$0xff] }
 0xee9   :  { %4010 = vtanh.f32 %v1055_v43 }
 0xeee   :  { %v1052_v14 = vpop.permute.xlu0 %1051 }
 0xeef   :  { %v4011_v44 = vpop.eup %4010  ;;  %v1056_v45 = vadd.f32 %v1052_v14, %v4764_v23 }
 0xef0   :  { %1063 = vrot.lane.b32.xlu0 %v4011_v44, %s4216_s26 }
 0xef1   :  { %4012 = vtanh.f32 %v1056_v45 }
 0xef7   :  { %v4013_v47 = vpop.eup %4012 }
 0xef8   :  { %1480 = vrot.lane.b32.xlu0 %v4731_v63, %s4215_s3  ;;  %1065 = vrot.lane.b32.xlu1 %v4013_v47, %s4216_s26  ;;  %v1059_v63 = vsub.f32 1.0, %v1018_v17 }
 0xefe   :  { %v1461_v48 = vpop.permute.xlu2 %1460 }
 0xeff   :  { %v1465_v49 = vadd.f32 %v1461_v48, %v4773_v38 }
 0xf01   :  { %4014 = vtanh.f32 %v1465_v49 }
 0xf07   :  { %v4015_v18 = vpop.eup %4014 }
 0xf08   :  { %1474 = vrot.lane.b32.xlu1 %v4015_v18, %s4216_s26 }
 0xf0e   :  { %v1459_v28 = vpop.permute.xlu1 %1458 }
 0xf0f   :  { %v1464_v50 = vadd.f32 %v1459_v28, %v4770_v32 }
 0xf11   :  { %4016 = vtanh.f32 %v1464_v50 }
 0xf17   :  { %v4017_v23 = vpop.eup %4016 }
 0xf18   :  { %1472 = vrot.lane.b32.xlu2 %v4017_v23, %s4216_s26 }
 0xf20   :  { %1482 = vrot.lane.b32.xlu2 %v4743_v3, %s4215_s3 }
 0xf62   :  { %v1064_v56 = vpop.permute.xlu0 %1063 }
 0xf63   :  { %v1069_v58 = vmul.f32 %v1064_v56, %v1059_v63 }
 0xf65   :  { %v4796_v38 = vadd.f32 %v1071_v57, %v1069_v58 }
 0xf67   :  { %1077 = vrot.lane.b32.xlu0 %v4796_v38, %s4216_s26 }
 0xf6a   :  { %v1066_v32 = vpop.permute.xlu1 %1065  ;;  %v1481_v3 = vpop.permute.xlu0 %1480 }
 0xf6b   :  { %v1070_v62 = vmul.f32 %v1066_v32, %v1060_v59  ;;  %v1486_v2 = vmul.f32 %v1481_v3, %v1422_v10 }
 0xf6d   :  { %v4803_v0 = vadd.f32 %v1072_v60, %v1070_v62 }
 0xf6f   :  { %1079 = vrot.lane.b32.xlu1 %v4803_v0, %s4216_s26 }
 0xf72   :  { %v1473_v1 = vpop.permute.xlu2 %1472 }
 0xf73   :  { %v1478_v4 = vmul.f32 %v1473_v1, %v1468_v46 }
 0xf75   :  { %v4807_v6 = vadd.f32 %v1486_v2, %v1478_v4 }
 0xf77   :  { %1494 = vrot.lane.b32.xlu2 %v4807_v6, %s4216_s26 }
 0xf7a   :  { %v1483_v11 = vpop.permute.xlu2 %1482  ;;  %v1475_v17 = vpop.permute.xlu1 %1474 }
 0xf7b   :  { %v1487_v52 = vmul.f32 %v1483_v11, %v1437_v39  ;;  %v1479_v51 = vmul.f32 %v1475_v17, %v1469_v7 }
 0xf7d   :  { %v4811_v21 = vadd.f32 %v1487_v52, %v1479_v51 }
 0xf7f   :  { %1496 = vrot.lane.b32.xlu0 %v4811_v21, %s4216_s26 }
 0xfd1   :  { %v1495_v24 = vpop.permute.xlu2 %1494 }
 0xfd9   :  { %v1078_v15 = vpop.permute.xlu0 %1077 }
 0xfda   :  { %1084 = vst.msk [vmem:[#allocation3 + $0x60] sm:$0xff] %vm90_vm0, %v1078_v15  ;;  %3784 = vmatmul.msk.f32.vlgmr.msra.gmra.mxu2 %vm90_vm0, %v1078_v15 }
 0xfdb   :  { %1744 = vmatpush.msra.mxu2 %v4684_v53 }
 0xfdd   :  { %1745 = vmatpush.msra.mxu2 %v4689_v54 }
 0xfdf   :  { %1746 = vmatpush.msra.mxu2 %v4696_v20 }
 0xfe1   :  { %v1080_v13 = vpop.permute.xlu1 %1079  ;;  %v1219_v25 = vld [vmem:[#allocation3 + $0x60] sm:$0xff]  ;;  %1747 = vmatpush.msra.mxu2 %v4703_v55 }
 0xfe2   :  { %1085 = vst.msk [vmem:[#allocation3 + $0x68] sm:$0xff] %vm90_vm0, %v1080_v13  ;;  %3785 = vmatmul.msk.f32.gmra.mxu2 %vm90_vm0, %v1080_v13  ;;  %3800 = vmatmul.msk.f32.gmra.mxu3 %vm90_vm0, %v1219_v25 }
 0xfe9   :  { %v1220_v26 = vld [vmem:[#allocation3 + $0x68] sm:$0xff] }
 0xfea   :  { %3801 = vmatmul.msk.f32.gmra.mxu3 %vm90_vm0, %v1220_v26  ;;  %3810 = vmatmul.msk.f32.vlgmr.msrb.gmra.mxu2 %vm90_vm0, %v1495_v24 }
 0xfeb   :  { %1974 = vmatpush.msrb.mxu2 %v4684_v53 }
 0xfed   :  { %1975 = vmatpush.msrb.mxu2 %v4689_v54 }
 0xfef   :  { %1976 = vmatpush.msrb.mxu2 %v4696_v20 }
 0xff1   :  { %v1497_v22 = vpop.permute.xlu0 %1496  ;;  %1977 = vmatpush.msrb.mxu2 %v4703_v55 }
 0xff2   :  { %3811 = vmatmul.msk.f32.gmra.mxu2 %vm90_vm0, %v1497_v22 }
0x105d   :  { %v4837_v5 = vpop.f32.mrf.mxu2 }
0x1065   :  { %v4839_v8 = vpop.f32.mrf.mxu2  ;;  %v1332_v9 = vpop.f32.mrf.mxu3 }
0x1066   :  { %v1333_v10 = vadd.f32 %v4629_v42, %v1332_v9 }
0x1068   :  { %1356 = vst.msk [vmem:[#allocation2 + $0x60] sm:$0xff] %vm204_vm1, %v1333_v10 }
0x106d   :  { %v1335_v30 = vpop.f32.mrf.mxu3  ;;  %v1519_v31 = vpop.f32.mrf.mxu2 }
0x106e   :  { %v1336_v33 = vadd.f32 %v4629_v42, %v1335_v30  ;;  %v1565_v34 = vadd.f32 %v1519_v31, %v4754_v16  ;;  %v1525_v43 = vadd.f32 %v1519_v31, %v1490_v41 }
0x1070   :  { %1357 = vst.msk [vmem:[#allocation2 + $0x68] sm:$0xff] %vm204_vm1, %v1336_v33  ;;  %1569 = vrot.lane.b32.xlu1 %v1565_v34, %s4214_s27  ;;  %v3812_v42 = vmul.f32 -1.442695, %v1525_v43  ;;  %v1606_v43 = vld [vmem:[#allocation2 + $0x28] sm:$0xff] }
0x1075   :  { %v1522_v61 = vpop.f32.mrf.mxu2 }
0x1076   :  { %v1566_v35 = vadd.f32 %v1522_v61, %v4754_v16  ;;  %v1526_v37 = vadd.f32 %v1522_v61, %v1491_v36 }
0x1078   :  { %1571 = vrot.lane.b32.xlu2 %v1566_v35, %s4214_s27  ;;  %v3813_v39 = vmul.f32 -1.442695, %v1526_v37 }
0x107a   :  { %4018 = vpow2.f32 %v3813_v39  ;;  %v1605_v39 = vld [vmem:[#allocation2 + $0x20] sm:$0xff] }
0x1080   :  { %v4019_v40 = vpop.eup %4018 }
0x1081   :  { %v1534_v14 = vadd.f32 1.0, %v4019_v40 }
0x1083   :  { %4020 = vrcp.f32 %v1534_v14  ;;  %v1561_v23 = vand.u32 2147483648, %v1534_v14  ;;  %vm1555_vm11 = vweird.f32 %v1534_v14  ;;  %v1559_v63 = vand.u32 2147483647, %v1534_v14 }
0x1084   :  { %4022 = vpow2.f32 %v3812_v42 }
0x1085   :  { %v1562_v58 = vor.u32 1.1754944e-38, %v1561_v23  ;;  %vm1560_vm13 = vcmp.eq.f32.partialorder %v1559_v63, 8.507059e+37 }
0x1089   :  { %v4021_v44 = vpop.eup %4020 }
0x108a   :  { %v4023_v45 = vpop.eup %4022  ;;  %v1551_v47 = vmul.f32 %v4021_v44, %v1534_v14  ;;  %vm1556_vm10 = vweird.f32 %v4021_v44 }
0x108b   :  { %v1533_v48 = vadd.f32 1.0, %v4023_v45  ;;  %vm1557_vm12 = vmor %vm1555_vm11, %vm1556_vm10 }
0x108c   :  { %v1552_v49 = vsub.f32 1.0, %v1551_v47 }
0x108d   :  { %4024 = vrcp.f32 %v1533_v48  ;;  %v1546_v1 = vand.u32 2147483648, %v1533_v48  ;;  %vm1540_vm15 = vweird.f32 %v1533_v48  ;;  %v1544_v2 = vand.u32 2147483647, %v1533_v48 }
0x108e   :  { %v1553_v18 = vmul.f32 %v4021_v44, %v1552_v49 }
0x108f   :  { %v1547_v7 = vor.u32 1.1754944e-38, %v1546_v1  ;;  %vm1545_vm3 = vcmp.eq.f32.partialorder %v1544_v2, 8.507059e+37 }
0x1090   :  { %v1554_v28 = vadd.f32 %v4021_v44, %v1553_v18 }
0x1092   :  { %v1558_v56 = vsel %vm1557_vm12, %v4021_v44, %v1554_v28 }
0x1093   :  { %v4025_v50 = vpop.eup %4024  ;;  %v1563_v32 = vsel %vm1560_vm13, %v1562_v58, %v1558_v56 }
0x1094   :  { %v1536_v57 = vmul.f32 %v4025_v50, %v1533_v48  ;;  %vm1541_vm14 = vweird.f32 %v4025_v50  ;;  %v1590_v10 = vsub.f32 1.0, %v1563_v32  ;;  %v1602_v31 = vmul.f32 %v1563_v32, %v4811_v21 }
0x1095   :  { %vm1542_vm2 = vmor %vm1540_vm15, %vm1541_vm14 }
0x1096   :  { %v1537_v62 = vsub.f32 1.0, %v1536_v57 }
0x1098   :  { %v1538_v3 = vmul.f32 %v4025_v50, %v1537_v62 }
0x109a   :  { %v1539_v46 = vadd.f32 %v4025_v50, %v1538_v3 }
0x109c   :  { %v1543_v4 = vsel %vm1542_vm2, %v4025_v50, %v1539_v46 }
0x109d   :  { %v1548_v17 = vsel %vm1545_vm3, %v1547_v7, %v1543_v4 }
0x109e   :  { %v1589_v26 = vsub.f32 1.0, %v1548_v17  ;;  %v1601_v27 = vmul.f32 %v1548_v17, %v4807_v6 }
0x10d2   :  { %v1572_v59 = vpop.permute.xlu2 %1571 }
0x10d3   :  { %v1576_v60 = vmul.f32 %v1572_v59, %v1563_v32 }
0x10d5   :  { %1581 = vrot.lane.b32.xlu1 %v1576_v60, %s4214_s27 }
0x10e2   :  { %v1570_v11 = vpop.permute.xlu1 %1569 }
0x10e3   :  { %v1575_v52 = vmul.f32 %v1570_v11, %v1548_v17 }
0x10e5   :  { %1579 = vrot.lane.b32.xlu0 %v1575_v52, %s4214_s27 }
0x1147   :  { %v1582_v51 = vpop.permute.xlu1 %1581 }
0x1148   :  { %v1586_v12 = vadd.f32 %v1582_v51, %v1491_v36 }
0x114a   :  { %4026 = vtanh.f32 %v1586_v12 }
0x1150   :  { %v4027_v15 = vpop.eup %4026 }
0x1151   :  { %1595 = vrot.lane.b32.xlu0 %v4027_v15, %s4216_s26 }
0x1157   :  { %v1580_v13 = vpop.permute.xlu0 %1579 }
0x1158   :  { %v1585_v25 = vadd.f32 %v1580_v13, %v1490_v41 }
0x115a   :  { %4028 = vtanh.f32 %v1585_v25 }
0x1160   :  { %v4029_v24 = vpop.eup %4028 }
0x1161   :  { %1593 = vrot.lane.b32.xlu2 %v4029_v24, %s4216_s26 }
0x11bb   :  { %v1594_v22 = vpop.permute.xlu2 %1593 }
0x11bc   :  { %v1599_v29 = vmul.f32 %v1594_v22, %v1589_v26 }
0x11be   :  { %v4854_v9 = vadd.f32 %v1601_v27, %v1599_v29 }
0x11c0   :  { %1609 = vrot.lane.b32.xlu1 %v4854_v9, %s4216_s26 }
0x11c3   :  { %v1596_v30 = vpop.permute.xlu0 %1595 }
0x11c4   :  { %v1600_v33 = vmul.f32 %v1596_v30, %v1590_v10 }
0x11c6   :  { %v4859_v34 = vadd.f32 %v1602_v31, %v1600_v33 }
0x11c8   :  { %1611 = vrot.lane.b32.xlu2 %v4859_v34, %s4216_s26 }
0x1222   :  { %v1612_v6 = vpop.permute.xlu2 %1611 }
0x1232   :  { %v1610_v61 = vpop.permute.xlu1 %1609 }
0x1233   :  { %3814 = vmatmul.msk.f32.vlgmr.msrb.gmra.mxu1 %vm90_vm0, %v1610_v61 }
0x1234   :  { %2089 = vmatpush.msrb.mxu1 %v4684_v53 }
0x1236   :  { %2090 = vmatpush.msrb.mxu1 %v4689_v54 }
0x1238   :  { %2091 = vmatpush.msrb.mxu1 %v4696_v20 }
0x123a   :  { %2092 = vmatpush.msrb.mxu1 %v4703_v55 }
0x123b   :  { %3815 = vmatmul.msk.f32.gmra.mxu1 %vm90_vm0, %v1612_v6 }
0x12b0   :  { %v1634_v21 = vpop.f32.mrf.mxu1 }
0x12b1   :  { %v1680_v35 = vadd.f32 %v1634_v21, %v4754_v16  ;;  %v1640_v40 = vadd.f32 %v1634_v21, %v1605_v39 }
0x12b3   :  { %1684 = vrot.lane.b32.xlu0 %v1680_v35, %s4214_s27  ;;  %v3816_v41 = vmul.f32 -1.442695, %v1640_v40 }
0x12b5   :  { %4030 = vpow2.f32 %v3816_v41 }
0x12b8   :  { %v1637_v36 = vpop.f32.mrf.mxu1 }
0x12b9   :  { %v1681_v37 = vadd.f32 %v1637_v36, %v4754_v16  ;;  %v1641_v14 = vadd.f32 %v1637_v36, %v1606_v43 }
0x12bb   :  { %1686 = vrot.lane.b32.xlu1 %v1681_v37, %s4214_s27  ;;  %v3817_v42 = vmul.f32 -1.442695, %v1641_v14  ;;  %v4031_v44 = vpop.eup %4030 }
0x12bc   :  { %v1648_v45 = vadd.f32 1.0, %v4031_v44 }
0x12bd   :  { %4032 = vpow2.f32 %v3817_v42  ;;  %v1721_v42 = vld [vmem:[#allocation2 + $0x38] sm:$0xff] }
0x12be   :  { %4034 = vrcp.f32 %v1648_v45  ;;  %v1661_v58 = vand.u32 2147483648, %v1648_v45  ;;  %vm1655_vm5 = vweird.f32 %v1648_v45  ;;  %v1659_v59 = vand.u32 2147483647, %v1648_v45 }
0x12c0   :  { %v1662_v62 = vor.u32 1.1754944e-38, %v1661_v58  ;;  %vm1660_vm7 = vcmp.eq.f32.partialorder %v1659_v59, 8.507059e+37 }
0x12c3   :  { %v4033_v47 = vpop.eup %4032 }
0x12c4   :  { %v1649_v48 = vadd.f32 1.0, %v4033_v47  ;;  %v4035_v49 = vpop.eup %4034 }
0x12c5   :  { %v1651_v18 = vmul.f32 %v4035_v49, %v1648_v45  ;;  %vm1656_vm4 = vweird.f32 %v4035_v49 }
0x12c6   :  { %4036 = vrcp.f32 %v1649_v48  ;;  %vm1657_vm6 = vmor %vm1655_vm5, %vm1656_vm4  ;;  %v1676_v4 = vand.u32 2147483648, %v1649_v48  ;;  %vm1670_vm9 = vweird.f32 %v1649_v48  ;;  %v1674_v7 = vand.u32 2147483647, %v1649_v48 }
0x12c7   :  { %v1652_v28 = vsub.f32 1.0, %v1651_v18 }
0x12c8   :  { %v1677_v17 = vor.u32 1.1754944e-38, %v1676_v4  ;;  %vm1675_vm11 = vcmp.eq.f32.partialorder %v1674_v7, 8.507059e+37 }
0x12c9   :  { %v1653_v23 = vmul.f32 %v4035_v49, %v1652_v28 }
0x12cb   :  { %v1654_v56 = vadd.f32 %v4035_v49, %v1653_v23 }
0x12cc   :  { %v4037_v50 = vpop.eup %4036 }
0x12cd   :  { %v1666_v63 = vmul.f32 %v4037_v50, %v1649_v48  ;;  %v1658_v32 = vsel %vm1657_vm6, %v4035_v49, %v1654_v56  ;;  %vm1671_vm8 = vweird.f32 %v4037_v50 }
0x12ce   :  { %v1663_v46 = vsel %vm1660_vm7, %v1662_v62, %v1658_v32  ;;  %vm1672_vm10 = vmor %vm1670_vm9, %vm1671_vm8 }
0x12cf   :  { %v1667_v57 = vsub.f32 1.0, %v1666_v63  ;;  %v1704_v27 = vsub.f32 1.0, %v1663_v46  ;;  %v1716_v10 = vmul.f32 %v1663_v46, %v4854_v9 }
0x12d1   :  { %v1668_v60 = vmul.f32 %v4037_v50, %v1667_v57 }
0x12d3   :  { %v1669_v2 = vadd.f32 %v4037_v50, %v1668_v60 }
0x12d5   :  { %v1673_v11 = vsel %vm1672_vm10, %v4037_v50, %v1669_v2 }
0x12d6   :  { %v1678_v51 = vsel %vm1675_vm11, %v1677_v17, %v1673_v11 }
0x12d7   :  { %v1705_v33 = vsub.f32 1.0, %v1678_v51  ;;  %v1717_v6 = vmul.f32 %v1678_v51, %v4859_v34 }
0x1325   :  { %v1685_v3 = vpop.permute.xlu0 %1684 }
0x1326   :  { %v1690_v1 = vmul.f32 %v1685_v3, %v1663_v46 }
0x1328   :  { %1694 = vrot.lane.b32.xlu2 %v1690_v1, %s4214_s27 }
0x132d   :  { %v1687_v52 = vpop.permute.xlu1 %1686 }
0x132e   :  { %v1691_v12 = vmul.f32 %v1687_v52, %v1678_v51 }
0x1330   :  { %1696 = vrot.lane.b32.xlu0 %v1691_v12, %s4214_s27 }
0x1382   :  { %v1695_v15 = vpop.permute.xlu2 %1694 }
0x1383   :  { %v1700_v13 = vadd.f32 %v1695_v15, %v1605_v39 }
0x1385   :  { %4038 = vtanh.f32 %v1700_v13 }
0x138b   :  { %v4039_v25 = vpop.eup %4038 }
0x138c   :  { %1708 = vrot.lane.b32.xlu1 %v4039_v25, %s4216_s26 }
0x13a2   :  { %v1697_v24 = vpop.permute.xlu0 %1696 }
0x13a3   :  { %v1701_v26 = vadd.f32 %v1697_v24, %v1606_v43 }
0x13a5   :  { %4040 = vtanh.f32 %v1701_v26 }
0x13ab   :  { %v4041_v22 = vpop.eup %4040 }
0x13ac   :  { %1710 = vrot.lane.b32.xlu2 %v4041_v22, %s4216_s26 }
0x13fe   :  { %v1709_v29 = vpop.permute.xlu1 %1708 }
0x13ff   :  { %v1714_v30 = vmul.f32 %v1709_v29, %v1704_v27 }
0x1401   :  { %v4878_v31 = vadd.f32 %v1716_v10, %v1714_v30 }
0x1403   :  { %1724 = vrot.lane.b32.xlu0 %v4878_v31, %s4216_s26 }
0x1406   :  { %v1711_v61 = vpop.permute.xlu2 %1710 }
0x1407   :  { %v1715_v21 = vmul.f32 %v1711_v61, %v1705_v33 }
0x1409   :  { %v4883_v35 = vadd.f32 %v1717_v6, %v1715_v21 }
0x140b   :  { %1726 = vrot.lane.b32.xlu1 %v4883_v35, %s4216_s26 }
0x1475   :  { %v1725_v36 = vpop.permute.xlu0 %1724 }
0x1476   :  { %3818 = vmatmul.msk.f32.vlgmr.msra.gmra.mxu2 %vm90_vm0, %v1725_v36 }
0x1477   :  { %2204 = vmatpush.msra.mxu2 %v4684_v53  ;;  %v1720_v53 = vld [vmem:[#allocation2 + $0x30] sm:$0xff] }
0x1479   :  { %2205 = vmatpush.msra.mxu2 %v4689_v54 }
0x147b   :  { %2206 = vmatpush.msra.mxu2 %v4696_v20 }
0x147d   :  { %v1727_v9 = vpop.permute.xlu1 %1726  ;;  %2207 = vmatpush.msra.mxu2 %v4703_v55 }
0x147e   :  { %3819 = vmatmul.msk.f32.gmra.mxu2 %vm90_vm0, %v1727_v9 }
0x14f9   :  { %v1749_v34 = vpop.f32.mrf.mxu2 }
0x14fa   :  { %v1795_v37 = vadd.f32 %v1749_v34, %v4754_v16  ;;  %v1755_v41 = vadd.f32 %v1749_v34, %v1720_v53 }
0x14fc   :  { %1799 = vrot.lane.b32.xlu2 %v1795_v37, %s4214_s27  ;;  %v3820_v54 = vmul.f32 -1.442695, %v1755_v41  ;;  %v1836_v41 = vld [vmem:[#allocation2 + $0x48] sm:$0xff] }
0x14fe   :  { %4042 = vpow2.f32 %v3820_v54 }
0x1501   :  { %v1752_v39 = vpop.f32.mrf.mxu2 }
0x1502   :  { %v1796_v40 = vadd.f32 %v1752_v39, %v4754_v16  ;;  %v1756_v44 = vadd.f32 %v1752_v39, %v1721_v42  ;;  %v1835_v39 = vld [vmem:[#allocation2 + $0x40] sm:$0xff] }
0x1504   :  { %1801 = vrot.lane.b32.xlu0 %v1796_v40, %s4214_s27  ;;  %v4043_v20 = vpop.eup %4042  ;;  %v3821_v47 = vmul.f32 -1.442695, %v1756_v44 }
0x1505   :  { %v1763_v43 = vadd.f32 1.0, %v4043_v20 }
0x1507   :  { %4044 = vrcp.f32 %v1763_v43  ;;  %v1776_v18 = vand.u32 2147483648, %v1763_v43  ;;  %vm1770_vm13 = vweird.f32 %v1763_v43  ;;  %v1774_v28 = vand.u32 2147483647, %v1763_v43 }
0x1508   :  { %4046 = vpow2.f32 %v3821_v47 }
0x1509   :  { %v1777_v63 = vor.u32 1.1754944e-38, %v1776_v18  ;;  %vm1775_vm15 = vcmp.eq.f32.partialorder %v1774_v28, 8.507059e+37 }
0x150d   :  { %v4045_v55 = vpop.eup %4044 }
0x150e   :  { %v1766_v14 = vmul.f32 %v4045_v55, %v1763_v43  ;;  %vm1771_vm12 = vweird.f32 %v4045_v55  ;;  %v4047_v50 = vpop.eup %4046 }
0x150f   :  { %vm1772_vm14 = vmor %vm1770_vm13, %vm1771_vm12  ;;  %v1764_v56 = vadd.f32 1.0, %v4047_v50 }
0x1510   :  { %v1767_v45 = vsub.f32 1.0, %v1766_v14 }
0x1511   :  { %4048 = vrcp.f32 %v1764_v56  ;;  %v1791_v1 = vand.u32 2147483648, %v1764_v56  ;;  %vm1785_vm3 = vweird.f32 %v1764_v56  ;;  %v1789_v2 = vand.u32 2147483647, %v1764_v56 }
0x1512   :  { %v1768_v48 = vmul.f32 %v4045_v55, %v1767_v45 }
0x1513   :  { %v1792_v7 = vor.u32 1.1754944e-38, %v1791_v1  ;;  %vm1790_vm5 = vcmp.eq.f32.partialorder %v1789_v2, 8.507059e+37 }
0x1514   :  { %v1769_v49 = vadd.f32 %v4045_v55, %v1768_v48 }
0x1516   :  { %v1773_v23 = vsel %vm1772_vm14, %v4045_v55, %v1769_v49 }
0x1517   :  { %v1778_v57 = vsel %vm1775_vm15, %v1777_v63, %v1773_v23  ;;  %v4049_v32 = vpop.eup %4048 }
0x1518   :  { %v1781_v60 = vmul.f32 %v4049_v32, %v1764_v56  ;;  %vm1786_vm2 = vweird.f32 %v4049_v32  ;;  %v1819_v26 = vsub.f32 1.0, %v1778_v57  ;;  %v1831_v27 = vmul.f32 %v1778_v57, %v4878_v31 }
0x1519   :  { %vm1787_vm4 = vmor %vm1785_vm3, %vm1786_vm2 }
0x151a   :  { %v1782_v62 = vsub.f32 1.0, %v1781_v60 }
0x151c   :  { %v1783_v3 = vmul.f32 %v4049_v32, %v1782_v62 }
0x151e   :  { %v1784_v46 = vadd.f32 %v4049_v32, %v1783_v3 }
0x1520   :  { %v1788_v4 = vsel %vm1787_vm4, %v4049_v32, %v1784_v46 }
0x1521   :  { %v1793_v17 = vsel %vm1790_vm5, %v1792_v7, %v1788_v4 }
0x1522   :  { %v1820_v30 = vsub.f32 1.0, %v1793_v17  ;;  %v1832_v61 = vmul.f32 %v1793_v17, %v4883_v35 }
0x1556   :  { %v1800_v58 = vpop.permute.xlu2 %1799 }
0x1557   :  { %v1805_v59 = vmul.f32 %v1800_v58, %v1778_v57 }
0x1559   :  { %1809 = vrot.lane.b32.xlu1 %v1805_v59, %s4214_s27 }
0x1576   :  { %v1802_v11 = vpop.permute.xlu0 %1801 }
0x1577   :  { %v1806_v52 = vmul.f32 %v1802_v11, %v1793_v17 }
0x1579   :  { %1811 = vrot.lane.b32.xlu2 %v1806_v52, %s4214_s27 }
0x15cb   :  { %v1810_v51 = vpop.permute.xlu1 %1809 }
0x15cc   :  { %v1815_v12 = vadd.f32 %v1810_v51, %v1720_v53 }
0x15ce   :  { %4050 = vtanh.f32 %v1815_v12 }
0x15d3   :  { %v1812_v15 = vpop.permute.xlu2 %1811 }
0x15d4   :  { %v4051_v13 = vpop.eup %4050  ;;  %v1816_v25 = vadd.f32 %v1812_v15, %v1721_v42 }
0x15d5   :  { %1823 = vrot.lane.b32.xlu0 %v4051_v13, %s4216_s26 }
0x15d6   :  { %4052 = vtanh.f32 %v1816_v25 }
0x15dc   :  { %v4053_v24 = vpop.eup %4052 }
0x15dd   :  { %1825 = vrot.lane.b32.xlu1 %v4053_v24, %s4216_s26 }
0x1647   :  { %v1824_v22 = vpop.permute.xlu0 %1823 }
0x1648   :  { %v1829_v29 = vmul.f32 %v1824_v22, %v1819_v26 }
0x164a   :  { %v4902_v10 = vadd.f32 %v1831_v27, %v1829_v29 }
0x164c   :  { %1839 = vrot.lane.b32.xlu2 %v4902_v10, %s4216_s26 }
0x164f   :  { %v1826_v33 = vpop.permute.xlu1 %1825 }
0x1650   :  { %v1830_v6 = vmul.f32 %v1826_v33, %v1820_v30 }
0x1652   :  { %v4907_v21 = vadd.f32 %v1832_v61, %v1830_v6 }
0x1654   :  { %1841 = vrot.lane.b32.xlu0 %v4907_v21, %s4216_s26 }
0x16a6   :  { %v1840_v36 = vpop.permute.xlu2 %1839 }
0x16a7   :  { %3822 = vmatmul.msk.f32.vlgmr.msra.gmra.mxu1 %vm90_vm0, %v1840_v36 }
0x16c6   :  { %v1842_v31 = vpop.permute.xlu0 %1841 }
0x16c7   :  { %3823 = vmatmul.msk.f32.gmra.mxu1 %vm90_vm0, %v1842_v31 }
0x1724   :  { %v1864_v9 = vpop.f32.mrf.mxu1 }
0x1725   :  { %v1910_v34 = vadd.f32 %v1864_v9, %v4754_v16  ;;  %v1870_v40 = vadd.f32 %v1864_v9, %v1835_v39 }
0x1727   :  { %1914 = vrot.lane.b32.xlu1 %v1910_v34, %s4214_s27  ;;  %v3824_v53 = vmul.f32 -1.442695, %v1870_v40  ;;  %v1951_v40 = vld [vmem:[#allocation2 + $0x58] sm:$0xff] }
0x1729   :  { %4054 = vpow2.f32 %v3824_v53 }
0x172f   :  { %v4055_v43 = vpop.eup %4054 }
0x1730   :  { %v1878_v55 = vadd.f32 1.0, %v4055_v43 }
0x1732   :  { %v1891_v23 = vand.u32 2147483648, %v1878_v55  ;;  %vm1885_vm7 = vweird.f32 %v1878_v55  ;;  %v1889_v63 = vand.u32 2147483647, %v1878_v55 }
0x1734   :  { %v1892_v58 = vor.u32 1.1754944e-38, %v1891_v23  ;;  %vm1890_vm9 = vcmp.eq.f32.partialorder %v1889_v63, 8.507059e+37 }
0x1744   :  { %v1867_v37 = vpop.f32.mrf.mxu1 }
0x1745   :  { %v1911_v35 = vadd.f32 %v1867_v37, %v4754_v16  ;;  %v1871_v54 = vadd.f32 %v1867_v37, %v1836_v41  ;;  %v1950_v37 = vld [vmem:[#allocation2 + $0x50] sm:$0xff] }
0x1747   :  { %1916 = vrot.lane.b32.xlu2 %v1911_v35, %s4214_s27  ;;  %v3825_v20 = vmul.f32 -1.442695, %v1871_v54 }
0x1749   :  { %4056 = vpow2.f32 %v3825_v20 }
0x174a   :  { %4058 = vrcp.f32 %v1878_v55 }
0x174f   :  { %v4057_v14 = vpop.eup %4056 }
0x1750   :  { %v1879_v42 = vadd.f32 1.0, %v4057_v14  ;;  %v4059_v44 = vpop.eup %4058 }
0x1751   :  { %v1881_v45 = vmul.f32 %v4059_v44, %v1878_v55  ;;  %vm1886_vm6 = vweird.f32 %v4059_v44 }
0x1752   :  { %4060 = vrcp.f32 %v1879_v42  ;;  %vm1887_vm8 = vmor %vm1885_vm7, %vm1886_vm6  ;;  %v1906_v3 = vand.u32 2147483648, %v1879_v42  ;;  %vm1900_vm11 = vweird.f32 %v1879_v42  ;;  %v1904_v46 = vand.u32 2147483647, %v1879_v42 }
0x1753   :  { %v1882_v47 = vsub.f32 1.0, %v1881_v45 }
0x1754   :  { %v1907_v2 = vor.u32 1.1754944e-38, %v1906_v3  ;;  %vm1905_vm13 = vcmp.eq.f32.partialorder %v1904_v46, 8.507059e+37 }
0x1755   :  { %v1883_v49 = vmul.f32 %v4059_v44, %v1882_v47 }
0x1757   :  { %v1884_v28 = vadd.f32 %v4059_v44, %v1883_v49 }
0x1758   :  { %v4061_v48 = vpop.eup %4060 }
0x1759   :  { %v1896_v18 = vmul.f32 %v4061_v48, %v1879_v42  ;;  %v1888_v56 = vsel %vm1887_vm8, %v4059_v44, %v1884_v28  ;;  %vm1901_vm10 = vweird.f32 %v4061_v48 }
0x175a   :  { %v1893_v32 = vsel %vm1890_vm9, %v1892_v58, %v1888_v56  ;;  %vm1902_vm12 = vmor %vm1900_vm11, %vm1901_vm10 }
0x175b   :  { %v1897_v50 = vsub.f32 1.0, %v1896_v18  ;;  %v1934_v25 = vsub.f32 1.0, %v1893_v32  ;;  %v1946_v26 = vmul.f32 %v1893_v32, %v4902_v10 }
0x175d   :  { %v1898_v57 = vmul.f32 %v4061_v48, %v1897_v50 }
0x175f   :  { %v1899_v62 = vadd.f32 %v4061_v48, %v1898_v57 }
0x1761   :  { %v1903_v1 = vsel %vm1902_vm12, %v4061_v48, %v1899_v62 }
0x1762   :  { %v1908_v7 = vsel %vm1905_vm13, %v1907_v2, %v1903_v1 }
0x1763   :  { %v1935_v29 = vsub.f32 1.0, %v1908_v7  ;;  %v1947_v33 = vmul.f32 %v1908_v7, %v4907_v21 }
0x1799   :  { %v1915_v59 = vpop.permute.xlu1 %1914 }
0x179a   :  { %v1920_v60 = vmul.f32 %v1915_v59, %v1893_v32 }
0x179c   :  { %1924 = vrot.lane.b32.xlu0 %v1920_v60, %s4214_s27 }
0x17a1   :  { %v1917_v4 = vpop.permute.xlu2 %1916 }
0x17a2   :  { %v1921_v11 = vmul.f32 %v1917_v4, %v1908_v7 }
0x17a4   :  { %1926 = vrot.lane.b32.xlu1 %v1921_v11, %s4214_s27 }
0x180e   :  { %v1925_v17 = vpop.permute.xlu0 %1924 }
0x180f   :  { %v1930_v52 = vadd.f32 %v1925_v17, %v1835_v39 }
0x1811   :  { %4062 = vtanh.f32 %v1930_v52 }
0x1816   :  { %v1927_v51 = vpop.permute.xlu1 %1926 }
0x1817   :  { %v4063_v12 = vpop.eup %4062  ;;  %v1931_v15 = vadd.f32 %v1927_v51, %v1836_v41 }
0x1818   :  { %1938 = vrot.lane.b32.xlu2 %v4063_v12, %s4216_s26 }
0x1819   :  { %4064 = vtanh.f32 %v1931_v15  ;;  %v1156_v15 = vadd.f32 %v4837_v5, %v4421_v19 }
0x181f   :  { %v4065_v13 = vpop.eup %4064 }
0x1820   :  { %1940 = vrot.lane.b32.xlu0 %v4065_v13, %s4216_s26 }
0x1872   :  { %v1939_v24 = vpop.permute.xlu2 %1938 }
0x1873   :  { %v1944_v22 = vmul.f32 %v1939_v24, %v1934_v25 }
0x1875   :  { %v4922_v27 = vadd.f32 %v1946_v26, %v1944_v22 }
0x1877   :  { %1954 = vrot.lane.b32.xlu1 %v4922_v27, %s4216_s26 }
0x1892   :  { %v1941_v30 = vpop.permute.xlu0 %1940 }
0x1893   :  { %v1945_v61 = vmul.f32 %v1941_v30, %v1935_v29 }
0x1895   :  { %v4927_v6 = vadd.f32 %v1947_v33, %v1945_v61 }
0x1897   :  { %1956 = vrot.lane.b32.xlu2 %v4927_v6, %s4216_s26 }
0x18e9   :  { %v1955_v36 = vpop.permute.xlu1 %1954 }
0x18ea   :  { %3826 = vmatmul.msk.f32.vlgmr.msrb.gmra.mxu2 %vm90_vm0, %v1955_v36 }
0x18f1   :  { %v1957_v10 = vpop.permute.xlu2 %1956 }
0x18f2   :  { %3827 = vmatmul.msk.f32.gmra.mxu2 %vm90_vm0, %v1957_v10  ;;  %v1157_v10 = vadd.f32 %v4839_v8, %v4421_v19 }
0x196d   :  { %v1979_v31 = vpop.f32.mrf.mxu2 }
0x196e   :  { %v2025_v9 = vadd.f32 %v1979_v31, %v4754_v16  ;;  %v1985_v35 = vadd.f32 %v1979_v31, %v1950_v37 }
0x1970   :  { %2029 = vrot.lane.b32.xlu0 %v2025_v9, %s4214_s27  ;;  %v3828_v39 = vmul.f32 -1.442695, %v1985_v35  ;;  %v4959_v9 = vld [vmem:[#allocation2 + $0x70] sm:$0xff] }
0x1972   :  { %4066 = vpow2.f32 %v3828_v39 }
0x1975   :  { %v1982_v34 = vpop.f32.mrf.mxu2 }
0x1976   :  { %v2026_v21 = vadd.f32 %v1982_v34, %v4754_v16  ;;  %v1986_v53 = vadd.f32 %v1982_v34, %v1951_v40 }
0x1978   :  { %2031 = vrot.lane.b32.xlu1 %v2026_v21, %s4214_s27  ;;  %v3829_v41 = vmul.f32 -1.442695, %v1986_v53  ;;  %v4067_v54 = vpop.eup %4066  ;;  %v4963_v21 = vld [vmem:[#allocation2 + $0x78] sm:$0xff] }
0x1979   :  { %v1993_v20 = vadd.f32 1.0, %v4067_v54  ;;  %v1117_v19 = vadd.f32 %v4839_v8, %v4963_v21 }
0x197a   :  { %4068 = vpow2.f32 %v3829_v41 }
0x197b   :  { %4070 = vrcp.f32 %v1993_v20  ;;  %v2006_v28 = vand.u32 2147483648, %v1993_v20  ;;  %vm2000_vm15 = vweird.f32 %v1993_v20  ;;  %v2004_v50 = vand.u32 2147483647, %v1993_v20 }
0x197d   :  { %v2007_v56 = vor.u32 1.1754944e-38, %v2006_v28  ;;  %vm2005_vm3 = vcmp.eq.f32.partialorder %v2004_v50, 8.507059e+37 }
0x1980   :  { %v4069_v43 = vpop.eup %4068 }
0x1981   :  { %v1994_v55 = vadd.f32 1.0, %v4069_v43  ;;  %v4071_v14 = vpop.eup %4070 }
0x1982   :  { %v1996_v42 = vmul.f32 %v4071_v14, %v1993_v20  ;;  %vm2001_vm14 = vweird.f32 %v4071_v14 }
0x1983   :  { %4072 = vrcp.f32 %v1994_v55  ;;  %vm2002_vm2 = vmor %vm2000_vm15, %vm2001_vm14  ;;  %v2021_v60 = vand.u32 2147483648, %v1994_v55  ;;  %vm2015_vm5 = vweird.f32 %v1994_v55  ;;  %v2019_v62 = vand.u32 2147483647, %v1994_v55 }
0x1984   :  { %v1997_v44 = vsub.f32 1.0, %v1996_v42 }
0x1985   :  { %v2022_v46 = vor.u32 1.1754944e-38, %v2021_v60  ;;  %vm2020_vm7 = vcmp.eq.f32.partialorder %v2019_v62, 8.507059e+37 }
0x1986   :  { %v1998_v47 = vmul.f32 %v4071_v14, %v1997_v44 }
0x1988   :  { %v1999_v49 = vadd.f32 %v4071_v14, %v1998_v47 }
0x1989   :  { %v4073_v45 = vpop.eup %4072 }
0x198a   :  { %v2011_v48 = vmul.f32 %v4073_v45, %v1994_v55  ;;  %v2003_v23 = vsel %vm2002_vm2, %v4071_v14, %v1999_v49  ;;  %vm2016_vm4 = vweird.f32 %v4073_v45 }
0x198b   :  { %v2008_v58 = vsel %vm2005_vm3, %v2007_v56, %v2003_v23  ;;  %vm2017_vm6 = vmor %vm2015_vm5, %vm2016_vm4 }
0x198c   :  { %v2012_v18 = vsub.f32 1.0, %v2011_v48  ;;  %v2049_v13 = vsub.f32 1.0, %v2008_v58  ;;  %v2061_v24 = vmul.f32 %v2008_v58, %v4922_v27 }
0x198e   :  { %v2013_v63 = vmul.f32 %v4073_v45, %v2012_v18 }
0x1990   :  { %v2014_v32 = vadd.f32 %v4073_v45, %v2013_v63 }
0x1992   :  { %v2018_v3 = vsel %vm2017_vm6, %v4073_v45, %v2014_v32 }
0x1993   :  { %v2023_v2 = vsel %vm2020_vm7, %v2022_v46, %v2018_v3 }
0x1994   :  { %v2050_v29 = vsub.f32 1.0, %v2023_v2  ;;  %v2062_v33 = vmul.f32 %v2023_v2, %v4927_v6  ;;  %v1116_v6 = vadd.f32 %v4837_v5, %v4959_v9 }
0x1996   :  { %v3786_v34 = vmul.f32 -1.442695, %v1116_v6 }
0x19e2   :  { %v2030_v57 = vpop.permute.xlu0 %2029 }
0x19e3   :  { %v2035_v59 = vmul.f32 %v2030_v57, %v2008_v58 }
0x19e5   :  { %2039 = vrot.lane.b32.xlu2 %v2035_v59, %s4214_s27 }
0x19ea   :  { %v2032_v1 = vpop.permute.xlu1 %2031 }
0x19eb   :  { %v2036_v4 = vmul.f32 %v2032_v1, %v2023_v2  ;;  %v2066_v1 = vld [vmem:[#allocation2 + $0x68] sm:$0xff] }
0x19ed   :  { %2041 = vrot.lane.b32.xlu0 %v2036_v4, %s4214_s27 }
0x1a3f   :  { %v2040_v7 = vpop.permute.xlu2 %2039 }
0x1a40   :  { %v2045_v11 = vadd.f32 %v2040_v7, %v1950_v37  ;;  %v3787_v37 = vmul.f32 -1.442695, %v1117_v19 }
0x1a42   :  { %4074 = vtanh.f32 %v2045_v11  ;;  %v4979_v11 = vld [vmem:[#allocation2 + $0x60] sm:$0xff] }
0x1a48   :  { %v4075_v17 = vpop.eup %4074 }
0x1a49   :  { %2053 = vrot.lane.b32.xlu1 %v4075_v17, %s4216_s26 }
0x1a5f   :  { %v2042_v52 = vpop.permute.xlu0 %2041 }
0x1a60   :  { %v2046_v51 = vadd.f32 %v2042_v52, %v1951_v40 }
0x1a62   :  { %4076 = vtanh.f32 %v2046_v51 }
0x1a63   :  { %4078 = vpow2.f32 %v3786_v34 }
0x1a64   :  { %4080 = vpow2.f32 %v3787_v37 }
0x1a68   :  { %v4077_v12 = vpop.eup %4076 }
0x1a69   :  { %2055 = vrot.lane.b32.xlu2 %v4077_v12, %s4216_s26  ;;  %v4079_v35 = vpop.eup %4078 }
0x1a6a   :  { %v1124_v39 = vadd.f32 1.0, %v4079_v35  ;;  %v4081_v40 = vpop.eup %4080 }
0x1a6b   :  { %v1125_v53 = vadd.f32 1.0, %v4081_v40 }
0x1a6c   :  { %4082 = vrcp.f32 %v1124_v39  ;;  %v1137_v45 = vand.u32 2147483648, %v1124_v39  ;;  %vm1131_vm9 = vweird.f32 %v1124_v39  ;;  %v1135_v47 = vand.u32 2147483647, %v1124_v39 }
0x1a6d   :  { %4084 = vrcp.f32 %v1125_v53  ;;  %v1152_v58 = vand.u32 2147483648, %v1125_v53  ;;  %vm1146_vm13 = vweird.f32 %v1125_v53  ;;  %v1150_v59 = vand.u32 2147483647, %v1125_v53 }
0x1a6e   :  { %v1138_v18 = vor.u32 1.1754944e-38, %v1137_v45  ;;  %vm1136_vm11 = vcmp.eq.f32.partialorder %v1135_v47, 8.507059e+37 }
0x1a6f   :  { %v1153_v60 = vor.u32 1.1754944e-38, %v1152_v58  ;;  %vm1151_vm15 = vcmp.eq.f32.partialorder %v1150_v59, 8.507059e+37 }
0x1a71   :  { %1160 = vrot.lane.b32.xlu2 %v1156_v15, %s4214_s27 }
0x1a72   :  { %v4083_v41 = vpop.eup %4082 }
0x1a73   :  { %v1127_v54 = vmul.f32 %v4083_v41, %v1124_v39  ;;  %v4085_v43 = vpop.eup %4084  ;;  %vm1132_vm8 = vweird.f32 %v4083_v41 }
0x1a74   :  { %v1142_v55 = vmul.f32 %v4085_v43, %v1125_v53  ;;  %vm1133_vm10 = vmor %vm1131_vm9, %vm1132_vm8  ;;  %vm1147_vm12 = vweird.f32 %v4085_v43 }
0x1a75   :  { %v1128_v20 = vsub.f32 1.0, %v1127_v54  ;;  %vm1148_vm14 = vmor %vm1146_vm13, %vm1147_vm12 }
0x1a76   :  { %v1143_v44 = vsub.f32 1.0, %v1142_v55 }
0x1a77   :  { %v1129_v5 = vmul.f32 %v4083_v41, %v1128_v20 }
0x1a78   :  { %v1144_v49 = vmul.f32 %v4085_v43, %v1143_v44 }
0x1a79   :  { %v1130_v42 = vadd.f32 %v4083_v41, %v1129_v5 }
0x1a7a   :  { %v1145_v56 = vadd.f32 %v4085_v43, %v1144_v49 }
0x1a7b   :  { %v1134_v48 = vsel %vm1133_vm10, %v4083_v41, %v1130_v42 }
0x1a7c   :  { %v4969_v50 = vsel %vm1136_vm11, %v1138_v18, %v1134_v48  ;;  %v1149_v32 = vsel %vm1148_vm14, %v4085_v43, %v1145_v56 }
0x1a7d   :  { %v4975_v3 = vsel %vm1151_vm15, %v1153_v60, %v1149_v32  ;;  %v1180_v58 = vsub.f32 1.0, %v4969_v50  ;;  %v1192_v32 = vmul.f32 %v4969_v50, %v4796_v38 }
0x1a7e   :  { %v1181_v49 = vsub.f32 1.0, %v4975_v3 }
0x1abb   :  { %v2054_v25 = vpop.permute.xlu1 %2053 }
0x1abc   :  { %v2059_v26 = vmul.f32 %v2054_v25, %v2049_v13 }
0x1abe   :  { %v4945_v22 = vadd.f32 %v2061_v24, %v2059_v26 }
0x1ac0   :  { %2069 = vrot.lane.b32.xlu0 %v4945_v22, %s4216_s26 }
0x1ac3   :  { %v2056_v30 = vpop.permute.xlu2 %2055 }
0x1ac4   :  { %v2060_v61 = vmul.f32 %v2056_v30, %v2050_v29 }
0x1ac6   :  { %v4950_v36 = vadd.f32 %v2062_v33, %v2060_v61 }
0x1ac8   :  { %2071 = vrot.lane.b32.xlu1 %v4950_v36, %s4216_s26 }
0x1acb   :  { %v1161_v28 = vpop.permute.xlu2 %1160 }
0x1acc   :  { %v1166_v63 = vmul.f32 %v1161_v28, %v4969_v50  ;;  %v1193_v28 = vmul.f32 %v4975_v3, %v4803_v0 }
0x1ad0   :  { %1162 = vrot.lane.b32.xlu1 %v1157_v10, %s4214_s27 }
0x1b32   :  { %v2070_v27 = vpop.permute.xlu0 %2069 }
0x1b33   :  { %3830 = vmatmul.msk.f32.vlgmr.msrb.gmra.mxu1 %vm90_vm0, %v2070_v27 }
0x1b3a   :  { %v2072_v31 = vpop.permute.xlu1 %2071 }
0x1b3b   :  { %3831 = vmatmul.msk.f32.gmra.mxu1 %vm90_vm0, %v2072_v31 }
0x1b42   :  { %v1163_v62 = vpop.permute.xlu1 %1162 }
0x1b43   :  { %v1167_v46 = vmul.f32 %v1163_v62, %v4975_v3 }
0x1bb0   :  { %v2094_v14 = vpop.f32.mrf.mxu1 }
0x1bb1   :  { %v2140_v8 = vadd.f32 %v2094_v14, %v4754_v16  ;;  %v2100_v17 = vadd.f32 %v2094_v14, %v4979_v11 }
0x1bb3   :  { %2144 = vrot.lane.b32.xlu0 %v2140_v8, %s4214_s27  ;;  %v3832_v51 = vmul.f32 -1.442695, %v2100_v17 }
0x1bb8   :  { %v2097_v23 = vpop.f32.mrf.mxu1 }
0x1bb9   :  { %v2141_v57 = vadd.f32 %v2097_v23, %v4754_v16  ;;  %v2101_v2 = vadd.f32 %v2097_v23, %v2066_v1 }
0x1bbb   :  { %1170 = vrot.lane.b32.xlu0 %v1166_v63, %s4214_s27  ;;  %2146 = vrot.lane.b32.xlu2 %v2141_v57, %s4214_s27  ;;  %v3833_v4 = vmul.f32 -1.442695, %v2101_v2 }
0x1bbd   :  { %4086 = vpow2.f32 %v3833_v4 }
0x1bc3   :  { %1172 = vrot.lane.b32.xlu2 %v1167_v46, %s4214_s27  ;;  %v4087_v7 = vpop.eup %4086 }
0x1bc4   :  { %v2109_v52 = vadd.f32 1.0, %v4087_v7 }
0x1bc6   :  { %4088 = vrcp.f32 %v2109_v52  ;;  %v2136_v33 = vand.u32 2147483648, %v2109_v52  ;;  %vm2130_vm3 = vweird.f32 %v2109_v52  ;;  %v2134_v61 = vand.u32 2147483647, %v2109_v52 }
0x1bc7   :  { %4090 = vpow2.f32 %v3832_v51 }
0x1bc8   :  { %v2137_v31 = vor.u32 1.1754944e-38, %v2136_v33  ;;  %vm2135_vm5 = vcmp.eq.f32.partialorder %v2134_v61, 8.507059e+37 }
0x1bcc   :  { %v4089_v12 = vpop.eup %4088 }
0x1bcd   :  { %v4091_v15 = vpop.eup %4090  ;;  %v2126_v13 = vmul.f32 %v4089_v12, %v2109_v52  ;;  %vm2131_vm2 = vweird.f32 %v4089_v12 }
0x1bce   :  { %v2108_v25 = vadd.f32 1.0, %v4091_v15  ;;  %vm2132_vm4 = vmor %vm2130_vm3, %vm2131_vm2 }
0x1bcf   :  { %v2127_v24 = vsub.f32 1.0, %v2126_v13  ;;  %v4187_v13 = vld [vmem:[%s5626_s8] ss:$0 sm:$0xff] }
0x1bd0   :  { %4092 = vrcp.f32 %v2108_v25  ;;  %v2121_v41 = vand.u32 2147483648, %v2108_v25  ;;  %vm2115_vm7 = vweird.f32 %v2108_v25  ;;  %v2119_v54 = vand.u32 2147483647, %v2108_v25 }
0x1bd1   :  { %v2128_v26 = vmul.f32 %v4089_v12, %v2127_v24 }
0x1bd2   :  { %v2122_v43 = vor.u32 1.1754944e-38, %v2121_v41  ;;  %vm2120_vm9 = vcmp.eq.f32.partialorder %v2119_v54, 8.507059e+37 }
0x1bd3   :  { %v2129_v29 = vadd.f32 %v4089_v12, %v2128_v26 }
0x1bd5   :  { %v2133_v10 = vsel %vm2132_vm4, %v4089_v12, %v2129_v29  ;;  %vm2596_vm4 = vcmask 130048  }
0x1bd6   :  { %v4093_v30 = vpop.eup %4092  ;;  %v2138_v34 = vsel %vm2135_vm5, %v2137_v31, %v2133_v10 }
0x1bd7   :  { %v2111_v27 = vmul.f32 %v4093_v30, %v2108_v25  ;;  %vm2116_vm6 = vweird.f32 %v4093_v30  ;;  %v2165_v4 = vsub.f32 1.0, %v2138_v34 }
0x1bd8   :  { %vm2117_vm8 = vmor %vm2115_vm7, %vm2116_vm6 }
0x1bd9   :  { %v2112_v37 = vsub.f32 1.0, %v2111_v27 }
0x1bdb   :  { %v2113_v35 = vmul.f32 %v4093_v30, %v2112_v37 }
0x1bdd   :  { %v2114_v53 = vadd.f32 %v4093_v30, %v2113_v35 }
0x1bdf   :  { %v2118_v20 = vsel %vm2117_vm8, %v4093_v30, %v2114_v53 }
0x1be0   :  { %v2123_v55 = vsel %vm2120_vm9, %v2122_v43, %v2118_v20 }
0x1be1   :  { %v2164_v0 = vsub.f32 1.0, %v2123_v55  ;;  %v2176_v46 = vmul.f32 %v2123_v55, %v4945_v22 }
0x1c15   :  { %v2147_v6 = vpop.permute.xlu2 %2146 }
0x1c16   :  { %v2151_v19 = vmul.f32 %v2147_v6, %v2138_v34 }
0x1c18   :  { %2156 = vrot.lane.b32.xlu0 %v2151_v19, %s4214_s27 }
0x1c1d   :  { %v1173_v39 = vpop.permute.xlu2 %1172 }
0x1c1e   :  { %v1177_v40 = vadd.f32 %v1173_v39, %v4963_v21 }
0x1c20   :  { %4094 = vtanh.f32 %v1177_v40 }
0x1c25   :  { %v2145_v5 = vpop.permute.xlu0 %2144 }
0x1c26   :  { %v4095_v14 = vpop.eup %4094  ;;  %v2150_v42 = vmul.f32 %v2145_v5, %v2123_v55 }
0x1c27   :  { %1186 = vrot.lane.b32.xlu0 %v4095_v14, %s4216_s26 }
0x1c28   :  { %2154 = vrot.lane.b32.xlu1 %v2150_v42, %s4214_s27 }
0x1c2d   :  { %v1171_v44 = vpop.permute.xlu0 %1170 }
0x1c2e   :  { %v1176_v21 = vadd.f32 %v1171_v44, %v4959_v9 }
0x1c30   :  { %4096 = vtanh.f32 %v1176_v21 }
0x1c36   :  { %v4097_v8 = vpop.eup %4096 }
0x1c37   :  { %1184 = vrot.lane.b32.xlu1 %v4097_v8, %s4216_s26 }
0x1c8a   :  { %v2157_v45 = vpop.permute.xlu0 %2156 }
0x1c8b   :  { %v2161_v47 = vadd.f32 %v2157_v45, %v2066_v1 }
0x1c8d   :  { %4098 = vtanh.f32 %v2161_v47 }
0x1c93   :  { %v4099_v48 = vpop.eup %4098 }
0x1c94   :  { %2170 = vrot.lane.b32.xlu1 %v4099_v48, %s4216_s26 }
0x1c99   :  { %v1187_v18 = vpop.permute.xlu0 %1186 }
0x1c9a   :  { %v1191_v23 = vmul.f32 %v1187_v18, %v1181_v49  ;;  %v2155_v63 = vpop.permute.xlu1 %2154 }
0x1c9b   :  { %v2160_v9 = vadd.f32 %v2155_v63, %v4979_v11  ;;  %v2177_v11 = vmul.f32 %v2138_v34, %v4950_v36 }
0x1c9c   :  { %v1195_v56 = vadd.f32 %v1193_v28, %v1191_v23 }
0x1c9d   :  { %4100 = vtanh.f32 %v2160_v9 }
0x1c9e   :  { %1200 = vrot.lane.b32.xlu1 %v1195_v56, %s4216_s26 }
0x1ca3   :  { %v4101_v57 = vpop.eup %4100 }
0x1ca4   :  { %2168 = vrot.lane.b32.xlu2 %v4101_v57, %s4216_s26 }
0x1ca9   :  { %v1185_v59 = vpop.permute.xlu1 %1184 }
0x1caa   :  { %v1190_v60 = vmul.f32 %v1185_v59, %v1180_v58 }
0x1cac   :  { %v1194_v62 = vadd.f32 %v1192_v32, %v1190_v60 }
0x1cae   :  { %1198 = vrot.lane.b32.xlu2 %v1194_v62, %s4216_s26 }
0x1cfe   :  { %v2169_v3 = vpop.permute.xlu2 %2168 }
0x1cff   :  { %v2174_v1 = vmul.f32 %v2169_v3, %v2164_v0  ;;  %v2329_v3 = vld [vmem:[%s5630_s12 + $0x58] sm:$0xff] }
0x1d00   :  { %2414 = vmatpush.msrb.mxu0 %v2329_v3 }
0x1d01   :  { %v5000_v2 = vadd.f32 %v2176_v46, %v2174_v1  ;;  %v2328_v46 = vld [vmem:[%s5630_s12 + $0x50] sm:$0xff]  ;;  %v2327_v1 = vld [vmem:[%s5630_s12 + $0x48] sm:$0xff] }
0x1d02   :  { %2415 = vmatpush.msrb.mxu0 %v2328_v46 }
0x1d03   :  { %2184 = vrot.lane.b32.xlu0 %v5000_v2, %s4216_s26 }
0x1d04   :  { %2416 = vmatpush.msrb.mxu0 %v2327_v1 }
0x1d06   :  { %v2171_v7 = vpop.permute.xlu1 %2170 }
0x1d07   :  { %v2175_v17 = vmul.f32 %v2171_v7, %v2165_v4  ;;  %v2325_v4 = vld [vmem:[%s5630_s12 + $0x38] sm:$0xff]  ;;  %v2324_v7 = vld [vmem:[%s5630_s12 + $0x30] sm:$0xff] }
0x1d08   :  { %v1199_v38 = vpop.permute.xlu2 %1198  ;;  %2391 = vmatpush.msrb.mxu2 %v2325_v4 }
0x1d09   :  { %v5005_v50 = vadd.f32 %v2177_v11, %v2175_v17  ;;  %1205 = vst.msk [vmem:[#allocation3 + $0x70] sm:$0xff] %vm90_vm0, %v1199_v38  ;;  %v2321_v11 = vld [vmem:[%s5630_s12 + $0x18] sm:$0xff]  ;;  %v2326_v17 = vld [vmem:[%s5630_s12 + $0x40] sm:$0xff]  ;;  %v2320_v38 = vld [vmem:[%s5630_s12 + $0x10] sm:$0xff] }
0x1d0a   :  { %2368 = vmatpush.msra.mxu1 %v2321_v11  ;;  %2392 = vmatpush.msrb.mxu2 %v2324_v7  ;;  %v3911_v7 = vld [vmem:[%s5632_s14] ss:$0 sm:$0xff] }
0x1d0b   :  { %2186 = vrot.lane.b32.xlu2 %v5005_v50, %s4216_s26  ;;  %2417 = vmatpush.msrb.mxu0 %v2326_v17 }
0x1d0c   :  { %2369 = vmatpush.msra.mxu1 %v2320_v38 }
0x1d10   :  { %v1201_v22 = vpop.permute.xlu1 %1200  ;;  %v1221_v52 = vld [vmem:[#allocation3 + $0x70] sm:$0xff] }
0x1d11   :  { %1206 = vst.msk [vmem:[#allocation3 + $0x78] sm:$0xff] %vm90_vm0, %v1201_v22  ;;  %3802 = vmatmul.msk.f32.gmra.mxu3 %vm90_vm0, %v1221_v52  ;;  %v2323_v22 = vld [vmem:[%s5630_s12 + $0x28] sm:$0xff] }
0x1d12   :  { %v2319_v52 = vld [vmem:[%s5630_s12 + $0x8] sm:$0xff]  ;;  %2393 = vmatpush.msrb.mxu2 %v2323_v22 }
0x1d13   :  { %2370 = vmatpush.msra.mxu1 %v2319_v52 }
0x1d18   :  { %v1222_v51 = vld [vmem:[#allocation3 + $0x78] sm:$0xff] }
0x1d19   :  { %3803 = vmatmul.msk.f32.gmra.mxu3 %vm90_vm0, %v1222_v51  ;;  %v2322_v51 = vld [vmem:[%s5630_s12 + $0x20] sm:$0xff] }
0x1d1a   :  { %2394 = vmatpush.msrb.mxu2 %v2322_v51 }
0x1d65   :  { %v2187_v36 = vpop.permute.xlu2 %2186 }
0x1d75   :  { %v2185_v12 = vpop.permute.xlu0 %2184 }
0x1d76   :  { %3834 = vmatmul.msk.f32.vlgmr.msra.gmra.mxu2 %vm90_vm0, %v2185_v12 }
0x1d7e   :  { %3835 = vmatmul.msk.f32.gmra.mxu2 %vm90_vm0, %v2187_v36 }
0x1d94   :  { %v1338_v15 = vpop.f32.mrf.mxu3 }
0x1d95   :  { %v1339_v25 = vadd.f32 %v4187_v13, %v1338_v15 }
0x1d97   :  { %1358 = vst.msk [vmem:[#allocation2 + $0x70] sm:$0xff] %vm204_vm1, %v1339_v25 }
0x1d9c   :  { %v1341_v24 = vpop.f32.mrf.mxu3 }
0x1d9d   :  { %v1342_v26 = vadd.f32 %v4187_v13, %v1341_v24 }
0x1d9e   :  { %v2180_v10 = vld [vmem:[#allocation2 + $0x70] sm:$0xff] }
0x1d9f   :  { %1359 = vst.msk [vmem:[#allocation2 + $0x78] sm:$0xff] %vm204_vm1, %v1342_v26 }
0x1da6   :  { %v2181_v6 = vld [vmem:[#allocation2 + $0x78] sm:$0xff] }
0x1df9   :  { %v2209_v29 = vpop.f32.mrf.mxu2 }
0x1dfa   :  { %v2255_v30 = vadd.f32 %v2209_v29, %v4754_v16  ;;  %v2215_v27 = vadd.f32 %v2209_v29, %v2180_v10 }
0x1dfc   :  { %2259 = vrot.lane.b32.xlu0 %v2255_v30, %s4214_s27  ;;  %v3836_v31 = vmul.f32 -1.442695, %v2215_v27  ;;  %v2332_v27 = vld [vmem:[%s5630_s12 + $0x70] sm:$0xff] }
0x1dfe   :  { %4102 = vpow2.f32 %v3836_v31  ;;  %v2336_v31 = vld [vmem:[%s5630_s12 + $0x90] sm:$0xff] }
0x1e01   :  { %v2212_v33 = vpop.f32.mrf.mxu2 }
0x1e02   :  { %v2256_v61 = vadd.f32 %v2212_v33, %v4754_v16  ;;  %v2216_v34 = vadd.f32 %v2212_v33, %v2181_v6 }
0x1e04   :  { %2261 = vrot.lane.b32.xlu1 %v2256_v61, %s4214_s27  ;;  %v3837_v19 = vmul.f32 -1.442695, %v2216_v34  ;;  %v4103_v37 = vpop.eup %4102  ;;  %v2318_v61 = vld [vmem:[%s5630_s12] sm:$0xff]  ;;  %v2331_v34 = vld [vmem:[%s5630_s12 + $0x68] sm:$0xff] }
0x1e05   :  { %v2223_v35 = vadd.f32 1.0, %v4103_v37  ;;  %2371 = vmatpush.msra.mxu1 %v2318_v61  ;;  %v2339_v37 = vld [vmem:[%s5630_s12 + $0xa8] sm:$0xff]  ;;  %v3907_v61 = vld [vmem:[%s5631_s13 + $0x3] ss:$0 sm:$0xff] }
0x1e06   :  { %4104 = vpow2.f32 %v3837_v19  ;;  %v2335_v19 = vld [vmem:[%s5630_s12 + $0x88] sm:$0xff] }
0x1e07   :  { %4106 = vrcp.f32 %v2223_v35  ;;  %v2236_v14 = vand.u32 2147483648, %v2223_v35  ;;  %vm2230_vm10 = vweird.f32 %v2223_v35  ;;  %v2234_v42 = vand.u32 2147483647, %v2223_v35 }
0x1e09   :  { %v2237_v8 = vor.u32 1.1754944e-38, %v2236_v14  ;;  %vm2235_vm12 = vcmp.eq.f32.partialorder %v2234_v42, 8.507059e+37  ;;  %v2348_v14 = vld [vmem:[%s5630_s12 + $0xf0] sm:$0xff]  ;;  %v2343_v42 = vld [vmem:[%s5630_s12 + $0xc8] sm:$0xff] }
0x1e0c   :  { %v4105_v39 = vpop.eup %4104 }
0x1e0d   :  { %v2224_v40 = vadd.f32 1.0, %v4105_v39  ;;  %v4107_v53 = vpop.eup %4106  ;;  %v2334_v39 = vld [vmem:[%s5630_s12 + $0x80] sm:$0xff] }
0x1e0e   :  { %v2226_v41 = vmul.f32 %v4107_v53, %v2223_v35  ;;  %vm2231_vm1 = vweird.f32 %v4107_v53  ;;  %v2330_v35 = vld [vmem:[%s5630_s12 + $0x60] sm:$0xff] }
0x1e0f   :  { %4108 = vrcp.f32 %v2224_v40  ;;  %vm2232_vm11 = vmor %vm2230_vm10, %vm2231_vm1  ;;  %v2251_v18 = vand.u32 2147483648, %v2224_v40  ;;  %vm2245_vm14 = vweird.f32 %v2224_v40  ;;  %v2249_v28 = vand.u32 2147483647, %v2224_v40 }
0x1e10   :  { %v2227_v54 = vsub.f32 1.0, %v2226_v41 }
0x1e11   :  { %v2252_v63 = vor.u32 1.1754944e-38, %v2251_v18  ;;  %vm2250_vm2 = vcmp.eq.f32.partialorder %v2249_v28, 8.507059e+37 }
0x1e12   :  { %v2228_v20 = vmul.f32 %v4107_v53, %v2227_v54  ;;  %v2300_v54 = vld [vmem:[%s5628_s10] sm:$0xff] }
0x1e14   :  { %v2229_v5 = vadd.f32 %v4107_v53, %v2228_v20  ;;  %v2345_v20 = vld [vmem:[%s5630_s12 + $0xd8] sm:$0xff] }
0x1e15   :  { %v4109_v16 = vpop.eup %4108 }
0x1e16   :  { %v2241_v43 = vmul.f32 %v4109_v16, %v2224_v40  ;;  %v2233_v44 = vsel %vm2232_vm11, %v4107_v53, %v2229_v5  ;;  %vm2246_vm13 = vweird.f32 %v4109_v16  ;;  %v2338_v40 = vld [vmem:[%s5630_s12 + $0xa0] sm:$0xff]  ;;  %v2295_v53 = vlaneseq  ;;  %v2349_v5 = vld [vmem:[%s5630_s12 + $0xf8] sm:$0xff] }
0x1e17   :  { %v2238_v47 = vsel %vm2235_vm12, %v2237_v8, %v2233_v44  ;;  %vm2247_vm15 = vmor %vm2245_vm14, %vm2246_vm13  ;;  %v2347_v44 = vld [vmem:[%s5630_s12 + $0xe8] sm:$0xff] }
0x1e18   :  { %v2242_v55 = vsub.f32 1.0, %v2241_v43  ;;  %v2279_v12 = vsub.f32 1.0, %v2238_v47  ;;  %v2291_v15 = vmul.f32 %v2238_v47, %v5000_v2  ;;  %v2333_v2 = vld [vmem:[%s5630_s12 + $0x78] sm:$0xff]  ;;  %v2296_v41 = vshrl.u32 %v2295_v53, 7 }
0x1e19   :  { %2437 = vmatpush.msrb.mxu1 %v2333_v2 }
0x1e1a   :  { %v2243_v21 = vmul.f32 %v4109_v16, %v2242_v55  ;;  %vm2298_vm3 = vcmp.lt.s32.totalorder %v2296_v41, 2  ;;  %v2344_v55 = vld [vmem:[%s5630_s12 + $0xd0] sm:$0xff] }
0x1e1b   :  { %2438 = vmatpush.msrb.mxu1 %v2332_v27 }
0x1e1c   :  { %v2244_v49 = vadd.f32 %v4109_v16, %v2243_v21  ;;  %v2342_v21 = vld [vmem:[%s5630_s12 + $0xc0] sm:$0xff] }
0x1e1d   :  { %2439 = vmatpush.msrb.mxu1 %v2331_v34 }
0x1e1e   :  { %v2248_v23 = vsel %vm2247_vm15, %v4109_v16, %v2244_v49 }
0x1e1f   :  { %v2253_v56 = vsel %vm2250_vm2, %v2252_v63, %v2248_v23  ;;  %2440 = vmatpush.msrb.mxu1 %v2330_v35 }
0x1e20   :  { %v2280_v24 = vsub.f32 1.0, %v2253_v56  ;;  %v2292_v29 = vmul.f32 %v2253_v56, %v5005_v50  ;;  %v2341_v50 = vld [vmem:[%s5630_s12 + $0xb8] sm:$0xff] }
0x1e21   :  { %2483 = vmatpush.msra.mxu0 %v2341_v50  ;;  %v3913_v50 = vld [vmem:[%s5631_s13 + $0x4] ss:$0 sm:$0xff] }
0x1e6e   :  { %v2260_v45 = vpop.permute.xlu0 %2259 }
0x1e6f   :  { %v2265_v48 = vmul.f32 %v2260_v45, %v2238_v47  ;;  %v2346_v45 = vld [vmem:[%s5630_s12 + $0xe0] sm:$0xff] }
0x1e70   :  { %v3903_v47 = vld [vmem:[%s5631_s13] ss:$0 sm:$0xff] }
0x1e71   :  { %2269 = vrot.lane.b32.xlu2 %v2265_v48, %s4214_s27  ;;  %v3902_v48 = vld [vmem:[%s5631_s13 + $0x2] ss:$0 sm:$0xff] }
0x1e76   :  { %v2262_v9 = vpop.permute.xlu1 %2261 }
0x1e77   :  { %v2266_v57 = vmul.f32 %v2262_v9, %v2253_v56  ;;  %v3904_v9 = vld [vmem:[%s5631_s13 + $0x1] ss:$0 sm:$0xff] }
0x1e78   :  { %v3906_v56 = vld [vmem:[%s5632_s14 + $0x1] ss:$0 sm:$0xff] }
0x1e79   :  { %2271 = vrot.lane.b32.xlu0 %v2266_v57, %s4214_s27 }
0x1ecb   :  { %v2270_v58 = vpop.permute.xlu2 %2269 }
0x1ecc   :  { %v2275_v59 = vadd.f32 %v2270_v58, %v2180_v10  ;;  %v2337_v10 = vld [vmem:[%s5630_s12 + $0x98] sm:$0xff]  ;;  %v3905_v58 = vld [vmem:[%s5632_s14 + $0x2] ss:$0 sm:$0xff] }
0x1ecd   :  { %2460 = vmatpush.msra.mxu2 %v2337_v10 }
0x1ece   :  { %4110 = vtanh.f32 %v2275_v59 }
0x1ecf   :  { %2461 = vmatpush.msra.mxu2 %v2336_v31 }
0x1ed1   :  { %2462 = vmatpush.msra.mxu2 %v2335_v19 }
0x1ed3   :  { %2463 = vmatpush.msra.mxu2 %v2334_v39 }
0x1ed4   :  { %v4111_v32 = vpop.eup %4110 }
0x1ed5   :  { %2283 = vrot.lane.b32.xlu1 %v4111_v32, %s4216_s26 }
0x1eeb   :  { %v2272_v60 = vpop.permute.xlu0 %2271 }
0x1eec   :  { %v2276_v62 = vadd.f32 %v2272_v60, %v2181_v6  ;;  %v2340_v6 = vld [vmem:[%s5630_s12 + $0xb0] sm:$0xff] }
0x1eed   :  { %2484 = vmatpush.msra.mxu0 %v2340_v6 }
0x1eee   :  { %4112 = vtanh.f32 %v2276_v62 }
0x1eef   :  { %2485 = vmatpush.msra.mxu0 %v2339_v37  ;;  %v3908_v37 = vld [vmem:[%s5632_s14 + $0x3] ss:$0 sm:$0xff] }
0x1ef1   :  { %2486 = vmatpush.msra.mxu0 %v2338_v40  ;;  %v3917_v40 = vld [vmem:[%s5632_s14 + $0x7] ss:$0 sm:$0xff] }
0x1ef4   :  { %v4113_v0 = vpop.eup %4112 }
0x1ef5   :  { %2285 = vrot.lane.b32.xlu2 %v4113_v0, %s4216_s26 }
0x1f47   :  { %v2284_v36 = vpop.permute.xlu1 %2283 }
0x1f48   :  { %v2289_v13 = vmul.f32 %v2284_v36, %v2279_v12 }
0x1f4a   :  { %v2293_v25 = vadd.f32 %v2291_v15, %v2289_v13 }
0x1f4c   :  { %2308 = vrot.lane.b32.xlu0 %v2293_v25, %s4216_s26 }
0x1f4f   :  { %v2286_v26 = vpop.permute.xlu2 %2285 }
0x1f50   :  { %v2290_v30 = vmul.f32 %v2286_v26, %v2280_v24 }
0x1f52   :  { %v2294_v33 = vadd.f32 %v2292_v29, %v2290_v30 }
0x1f54   :  { %2310 = vrot.lane.b32.xlu1 %v2294_v33, %s4216_s26 }
0x1fbe   :  { %v2309_v16 = vpop.permute.xlu0 %2308 }
0x1fbf   :  { %v2314_v43 = vsel %vm2298_vm3, %v2300_v54, %v2309_v16 }
0x1fc0   :  { %3838 = vmatmul.msk.f32.vlgmr.msra.gmra.mxu1 %vm90_vm0, %v2314_v43  ;;  %3840 = vmatmul.msk.f32.vlgmr.msrb.gmra.mxu2 %vm90_vm0, %v2314_v43 }
0x1fc1   :  { %3842 = vmatmul.msk.f32.vlgmr.msrb.gmra.mxu0 %vm90_vm0, %v2314_v43  ;;  %2506 = vmatpush.msra.mxu1 %v2345_v20 }
0x1fc2   :  { %2529 = vmatpush.msrb.mxu2 %v2349_v5 }
0x1fc3   :  { %2507 = vmatpush.msra.mxu1 %v2344_v55 }
0x1fc4   :  { %2530 = vmatpush.msrb.mxu2 %v2348_v14 }
0x1fc5   :  { %2508 = vmatpush.msra.mxu1 %v2343_v42 }
0x1fc6   :  { %v2311_v8 = vpop.permute.xlu1 %2310  ;;  %2531 = vmatpush.msrb.mxu2 %v2347_v44 }
0x1fc7   :  { %2509 = vmatpush.msra.mxu1 %v2342_v21  ;;  %v3914_v21 = vld [vmem:[%s5631_s13 + $0x6] ss:$0 sm:$0xff] }
0x1fc8   :  { %3839 = vmatmul.msk.f32.gmra.mxu1 %vm90_vm0, %v2311_v8  ;;  %3841 = vmatmul.msk.f32.gmra.mxu2 %vm90_vm0, %v2311_v8 }
0x1fc9   :  { %3843 = vmatmul.msk.f32.gmra.mxu0 %vm90_vm0, %v2311_v8  ;;  %2532 = vmatpush.msrb.mxu2 %v2346_v45 }
0x1fd0   :  { %3844 = vmatmul.msk.f32.vlgmr.msrb.gmra.mxu1 %vm90_vm0, %v2314_v43  ;;  %3846 = vmatmul.msk.f32.vlgmr.msra.gmra.mxu2 %vm90_vm0, %v2314_v43 }
0x1fd1   :  { %3848 = vmatmul.msk.f32.vlgmr.msra.gmra.mxu0 %vm90_vm0, %v2314_v43 }
0x1fd8   :  { %3845 = vmatmul.msk.f32.gmra.mxu1 %vm90_vm0, %v2311_v8  ;;  %3847 = vmatmul.msk.f32.gmra.mxu2 %vm90_vm0, %v2311_v8 }
0x1fd9   :  { %3849 = vmatmul.msk.f32.gmra.mxu0 %vm90_vm0, %v2311_v8 }
0x1fe0   :  { %3850 = vmatmul.msk.f32.vlgmr.msra.gmra.mxu1 %vm90_vm0, %v2314_v43  ;;  %3852 = vmatmul.msk.f32.vlgmr.msrb.gmra.mxu2 %vm90_vm0, %v2314_v43 }
0x1fe8   :  { %3851 = vmatmul.msk.f32.gmra.mxu1 %vm90_vm0, %v2311_v8  ;;  %3853 = vmatmul.msk.f32.gmra.mxu2 %vm90_vm0, %v2311_v8  ;;  %vm2754_vm0 = vcmask 130112  }
0x203d   :  { %v2373_v49 = vpop.f32.mrf.mxu1 }
0x203e   :  { %v2419_v18 = vpop.f32.mrf.mxu0  ;;  %v2580_v28 = vmul.f32 %v3903_v47, %v2373_v49  ;;  %v2669_v52 = vmul.f32 %v3911_v7, %v2373_v49 }
0x203f   :  { %v2584_v23 = vmul.f32 %v3902_v48, %v2419_v18  ;;  %v2673_v0 = vmul.f32 %v3905_v58, %v2419_v18 }
0x2040   :  { %v2597_v63 = vsel %vm2596_vm4, %v2580_v28, 0.0  ;;  %v2685_v15 = vsel %vm2596_vm4, %v2669_v52, 0.0  ;;  %v3915_v28 = vld [vmem:[%s5632_s14 + $0x6] ss:$0 sm:$0xff]  ;;  %v3910_v52 = vld [vmem:[%s5632_s14 + $0x5] ss:$0 sm:$0xff] }
0x2041   :  { %v2609_v57 = vsel %vm2596_vm4, %v2584_v23, 0.0  ;;  %2598 = vadd.xlane.f32.xlu1 %v2597_v63  ;;  %v2697_v4 = vsel %vm2596_vm4, %v2673_v0, 0.0 }
0x2042   :  { %2610 = vadd.xlane.f32.xlu2 %v2609_v57 }
0x2043   :  { %v2396_v59 = vpop.f32.mrf.mxu2 }
0x2044   :  { %v2582_v32 = vmul.f32 %v3904_v9, %v2396_v59  ;;  %v2671_v60 = vmul.f32 %v3906_v56, %v2396_v59 }
0x2045   :  { %v2376_v62 = vpop.f32.mrf.mxu1 }
0x2046   :  { %v2422_v3 = vpop.f32.mrf.mxu0  ;;  %3121 = vmatpush.msrb.mxu0 %v2376_v62  ;;  %v2603_v46 = vsel %vm2596_vm4, %v2582_v32, 0.0  ;;  %v2691_v1 = vsel %vm2596_vm4, %v2671_v60, 0.0  ;;  %v2670_v38 = vmul.f32 %v3911_v7, %v2376_v62  ;;  %v2581_v29 = vmul.f32 %v3903_v47, %v2376_v62 }
0x2047   :  { %3179 = vmatpush.msra.mxu2 %v2422_v3  ;;  %2604 = vadd.xlane.f32.xlu0 %v2603_v46  ;;  %v2585_v11 = vmul.f32 %v3902_v48, %v2422_v3  ;;  %v2674_v13 = vmul.f32 %v3905_v58, %v2422_v3  ;;  %v3916_v58 = vld [vmem:[%s5631_s13 + $0x7] ss:$0 sm:$0xff]  ;;  %v3912_v3 = vld [vmem:[%s5632_s14 + $0x4] ss:$0 sm:$0xff] }
0x2048   :  { %3122 = vmatpush.msrb.mxu0 %v2373_v49  ;;  %v2688_v36 = vsel %vm2596_vm4, %v2670_v38, 0.0  ;;  %v2600_v10 = vsel %vm2596_vm4, %v2581_v29, 0.0  ;;  %v3909_v49 = vld [vmem:[%s5631_s13 + $0x5] ss:$0 sm:$0xff] }
0x2049   :  { %3180 = vmatpush.msra.mxu2 %v2419_v18  ;;  %2692 = vadd.xlane.f32.xlu1 %v2691_v1  ;;  %v2612_v12 = vsel %vm2596_vm4, %v2585_v11, 0.0  ;;  %v2700_v33 = vsel %vm2596_vm4, %v2674_v13, 0.0 }
0x204a   :  { %2698 = vadd.xlane.f32.xlu2 %v2697_v4 }
0x204b   :  { %v2399_v17 = vpop.f32.mrf.mxu2 }
0x204c   :  { %3150 = vmatpush.msrb.mxu1 %v2399_v17  ;;  %v2583_v24 = vmul.f32 %v3904_v9, %v2399_v17  ;;  %v2672_v27 = vmul.f32 %v3906_v56, %v2399_v17 }
0x204d   :  { %v2442_v22 = vpop.f32.mrf.mxu1 }
0x204e   :  { %v5171_v51 = vpop.f32.mrf.mxu0  ;;  %3151 = vmatpush.msrb.mxu1 %v2396_v59  ;;  %v2606_v2 = vsel %vm2596_vm4, %v2583_v24, 0.0  ;;  %v2586_v6 = vmul.f32 %v3907_v61, %v2442_v22  ;;  %v2694_v35 = vsel %vm2596_vm4, %v2672_v27, 0.0  ;;  %v2675_v54 = vmul.f32 %v3908_v37, %v2442_v22 }
0x204f   :  { %2613 = vadd.xlane.f32.xlu0 %v2612_v12  ;;  %v2590_v9 = vmul.f32 %v3909_v49, %v5171_v51 }
0x2050   :  { %v2615_v39 = vsel %vm2596_vm4, %v2586_v6, 0.0  ;;  %v2703_v55 = vsel %vm2596_vm4, %v2675_v54, 0.0 }
0x2051   :  { %2689 = vadd.xlane.f32.xlu1 %v2688_v36  ;;  %v2627_v59 = vsel %vm2596_vm4, %v2590_v9, 0.0 }
0x2052   :  { %2686 = vadd.xlane.f32.xlu2 %v2685_v15  ;;  %v2679_v15 = vmul.f32 %v3910_v52, %v5171_v51 }
0x2053   :  { %v5176_v25 = vpop.f32.mrf.mxu2 }
0x2054   :  { %v2588_v19 = vmul.f32 %v3913_v50, %v5176_v25  ;;  %v2677_v7 = vmul.f32 %v3912_v3, %v5176_v25 }
0x2055   :  { %v2445_v26 = vpop.f32.mrf.mxu1 }
0x2056   :  { %v5178_v30 = vpop.f32.mrf.mxu0  ;;  %3208 = vmatpush.msrb.mxu3 %v2445_v26  ;;  %v2621_v41 = vsel %vm2596_vm4, %v2588_v19, 0.0  ;;  %v2587_v43 = vmul.f32 %v3907_v61, %v2445_v26  ;;  %v2676_v47 = vmul.f32 %v3908_v37, %v2445_v26  ;;  %v2709_v38 = vsel %vm2596_vm4, %v2677_v7, 0.0  ;;  %v5260_v37 = vld [vmem:[%s5629_s11] sm:$0xff] }
0x2057   :  { %3266 = vmatpush.msra.mxu1 %v5178_v30  ;;  %2701 = vadd.xlane.f32.xlu0 %v2700_v33  ;;  %v2591_v17 = vmul.f32 %v3909_v49, %v5178_v30  ;;  %v2680_v24 = vmul.f32 %v3910_v52, %v5178_v30  ;;  %vm2903_vm6 = vcmp.gt.f32.partialorder %v5260_v37, 0.0 }
0x2058   :  { %3209 = vmatpush.msrb.mxu3 %v2442_v22  ;;  %v2618_v42 = vsel %vm2596_vm4, %v2587_v43, 0.0  ;;  %v2706_v23 = vsel %vm2596_vm4, %v2676_v47, 0.0 }
0x2059   :  { %3267 = vmatpush.msra.mxu1 %v5171_v51  ;;  %2607 = vadd.xlane.f32.xlu1 %v2606_v2  ;;  %v2630_v12 = vsel %vm2596_vm4, %v2591_v17, 0.0  ;;  %v2718_v26 = vsel %vm2596_vm4, %v2680_v24, 0.0 }
0x205a   :  { %2601 = vadd.xlane.f32.xlu2 %v2600_v10  ;;  %v5249_v10 = vand.u32 127, %v2295_v53 }
0x205b   :  { %v5191_v31 = vpop.f32.mrf.mxu2 }
0x205c   :  { %3237 = vmatpush.msra.mxu0 %v5191_v31  ;;  %v2589_v44 = vmul.f32 %v3913_v50, %v5191_v31  ;;  %v2678_v11 = vmul.f32 %v3912_v3, %v5191_v31  ;;  %v5252_v51 = vadd.s32 4294967288, %v5249_v10 }
0x205d   :  { %v2511_v34 = vpop.f32.mrf.mxu1 }
0x205e   :  { %3238 = vmatpush.msra.mxu0 %v5176_v25  ;;  %v2624_v48 = vsel %vm2596_vm4, %v2589_v44, 0.0  ;;  %v2592_v63 = vmul.f32 %v3914_v21, %v2511_v34  ;;  %v2681_v56 = vmul.f32 %v3915_v28, %v2511_v34  ;;  %v2712_v22 = vsel %vm2596_vm4, %v2678_v11, 0.0 }
0x205f   :  { %2695 = vadd.xlane.f32.xlu0 %v2694_v35  ;;  %v2715_v25 = vsel %vm2596_vm4, %v2679_v15, 0.0 }
0x2060   :  { %v2633_v57 = vsel %vm2596_vm4, %v2592_v63, 0.0  ;;  %v2721_v32 = vsel %vm2596_vm4, %v2681_v56, 0.0 }
0x2061   :  { %2616 = vadd.xlane.f32.xlu1 %v2615_v39 }
0x2062   :  { %2622 = vadd.xlane.f32.xlu2 %v2621_v41 }
0x2063   :  { %v2534_v16 = vpop.f32.mrf.mxu2 }
0x2064   :  { %v2683_v20 = vmul.f32 %v3917_v40, %v2534_v16  ;;  %v2594_v0 = vmul.f32 %v3916_v58, %v2534_v16 }
0x2065   :  { %v2514_v5 = vpop.f32.mrf.mxu1 }
0x2066   :  { %3295 = vmatpush.msrb.mxu2 %v2514_v5  ;;  %v2727_v14 = vsel %vm2596_vm4, %v2683_v20, 0.0  ;;  %v2593_v45 = vmul.f32 %v3914_v21, %v2514_v5  ;;  %v2682_v62 = vmul.f32 %v3915_v28, %v2514_v5  ;;  %v2639_v4 = vsel %vm2596_vm4, %v2594_v0, 0.0 }
0x2067   :  { %2704 = vadd.xlane.f32.xlu0 %v2703_v55 }
0x2068   :  { %3296 = vmatpush.msrb.mxu2 %v2511_v34  ;;  %v2636_v18 = vsel %vm2596_vm4, %v2593_v45, 0.0  ;;  %v2724_v1 = vsel %vm2596_vm4, %v2682_v62, 0.0 }
0x2069   :  { %2728 = vadd.xlane.f32.xlu1 %v2727_v14 }
0x206a   :  { %2619 = vadd.xlane.f32.xlu2 %v2618_v42 }
0x206b   :  { %v2537_v8 = vpop.f32.mrf.mxu2 }
0x206c   :  { %3324 = vmatpush.msra.mxu3 %v2537_v8  ;;  %v2595_v60 = vmul.f32 %v3916_v58, %v2537_v8  ;;  %v2684_v36 = vmul.f32 %v3917_v40, %v2537_v8 }
0x206e   :  { %3325 = vmatpush.msra.mxu3 %v2534_v16  ;;  %v2642_v46 = vsel %vm2596_vm4, %v2595_v60, 0.0  ;;  %v2730_v13 = vsel %vm2596_vm4, %v2684_v36, 0.0  ;;  %v5270_v16 = vld [vmem:[%s5629_s11 + $0x8] sm:$0xff] }
0x206f   :  { %2625 = vadd.xlane.f32.xlu0 %v2624_v48  ;;  %vm2904_vm8 = vcmp.gt.f32.partialorder %v5270_v16, 0.0 }
0x2071   :  { %2637 = vadd.xlane.f32.xlu1 %v2636_v18 }
0x2072   :  { %2707 = vadd.xlane.f32.xlu2 %v2706_v23 }
0x2077   :  { %2634 = vadd.xlane.f32.xlu0 %v2633_v57 }
0x2079   :  { %2628 = vadd.xlane.f32.xlu1 %v2627_v59 }
0x207a   :  { %2722 = vadd.xlane.f32.xlu2 %v2721_v32 }
0x207f   :  { %2643 = vadd.xlane.f32.xlu0 %v2642_v46 }
0x2081   :  { %2725 = vadd.xlane.f32.xlu1 %v2724_v1 }
0x2082   :  { %2640 = vadd.xlane.f32.xlu2 %v2639_v4 }
0x2087   :  { %2710 = vadd.xlane.f32.xlu0 %v2709_v38 }
0x2089   :  { %2713 = vadd.xlane.f32.xlu1 %v2712_v22 }
0x208a   :  { %2631 = vadd.xlane.f32.xlu2 %v2630_v12 }
0x208f   :  { %2731 = vadd.xlane.f32.xlu0 %v2730_v13 }
0x2092   :  { %2716 = vadd.xlane.f32.xlu2 %v2715_v25 }
0x209a   :  { %2719 = vadd.xlane.f32.xlu2 %v2718_v26 }
0x20b4   :  { %v2599_v29 = vpop.xlane.xlu1 %2598 }
0x20b5   :  { %v2611_v33 = vpop.xlane.xlu2 %2610  ;;  %v2751_v44 = vperm.slane %v2599_v29, %v5249_v10 }
0x20b6   :  { %v2759_v31 = vperm.slane %v2611_v33, %v5249_v10 }
0x20ba   :  { %v2605_v61 = vpop.xlane.xlu0 %2604 }
0x20bb   :  { %v2756_v5 = vperm.slane %v2605_v61, %v5249_v10 }
0x20bc   :  { %v2693_v2 = vpop.xlane.xlu1 %2692 }
0x20bd   :  { %v2699_v50 = vpop.xlane.xlu2 %2698 }
0x20c2   :  { %v2614_v27 = vpop.xlane.xlu0 %2613 }
0x20c3   :  { %v2760_v30 = vperm.slane %v2614_v27, %v5252_v51 }
0x20c4   :  { %v2690_v6 = vpop.xlane.xlu1 %2689 }
0x20c5   :  { %v2687_v34 = vpop.xlane.xlu2 %2686  ;;  %v2761_v19 = vsel %vm2754_vm0, %v2760_v30, %v2759_v31 }
0x20c6   :  { %v2843_v53 = vadd.f32 %v2761_v19, %v2699_v50 }
0x20c8   :  { %v2875_v35 = vmul.f32 0.2, %v2843_v53  ;;  %vm2859_vm5 = vcmp.gt.f32.partialorder %v2843_v53, 0.0 }
0x20ca   :  { %v2702_v39 = vpop.xlane.xlu0 %2701  ;;  %v2891_v40 = vsel %vm2859_vm5, %v2843_v53, %v2875_v35 }
0x20cb   :  { %v2844_v41 = vadd.f32 %v2761_v19, %v2702_v39  ;;  %v5265_v54 = vsel %vm2903_vm6, %v2891_v40, -1e+30 }
0x20cc   :  { %v2608_v20 = vpop.xlane.xlu1 %2607  ;;  %v2937_v43 = vsel %vm2596_vm4, %v5265_v54, -inf }
0x20cd   :  { %vm2860_vm7 = vcmp.gt.f32.partialorder %v2844_v41, 0.0  ;;  %v2876_v55 = vmul.f32 0.2, %v2844_v41  ;;  %v2757_v14 = vperm.slane %v2608_v20, %v5252_v51  ;;  %v2602_v42 = vpop.xlane.xlu2 %2601  ;;  %2938 = vmax.xlane.f32.xlu0 %v2937_v43 }
0x20ce   :  { %v2753_v21 = vperm.slane %v2602_v42, %v5252_v51 }
0x20cf   :  { %v2758_v8 = vsel %vm2754_vm0, %v2757_v14, %v2756_v5  ;;  %v2892_v45 = vsel %vm2860_vm7, %v2844_v41, %v2876_v55 }
0x20d0   :  { %v2755_v47 = vsel %vm2754_vm0, %v2753_v21, %v2751_v44  ;;  %v2841_v48 = vadd.f32 %v2758_v8, %v2693_v2  ;;  %v5283_v28 = vsel %vm2904_vm8, %v2892_v45, -1e+30 }
0x20d1   :  { %v2839_v49 = vadd.f32 %v2755_v47, %v2687_v34  ;;  %v2840_v18 = vadd.f32 %v2755_v47, %v2690_v6  ;;  %v2940_v57 = vsel %vm2596_vm4, %v5283_v28, -inf }
0x20d2   :  { %v2696_v23 = vpop.xlane.xlu0 %2695  ;;  %v2873_v63 = vmul.f32 0.2, %v2841_v48  ;;  %vm2857_vm9 = vcmp.gt.f32.partialorder %v2841_v48, 0.0 }
0x20d3   :  { %vm2855_vm1 = vcmp.gt.f32.partialorder %v2839_v49, 0.0  ;;  %v2871_v9 = vmul.f32 0.2, %v2839_v49  ;;  %vm2856_vm10 = vcmp.gt.f32.partialorder %v2840_v18, 0.0  ;;  %v2872_v59 = vmul.f32 0.2, %v2840_v18 }
0x20d4   :  { %v2617_v56 = vpop.xlane.xlu1 %2616  ;;  %v2889_v58 = vsel %vm2857_vm9, %v2841_v48, %v2873_v63  ;;  %v2842_v29 = vadd.f32 %v2758_v8, %v2696_v23 }
0x20d5   :  { %v5287_v32 = vpop.xlane.xlu2 %2622  ;;  %2941 = vmax.xlane.f32.xlu0 %v2940_v57  ;;  %v2887_v60 = vsel %vm2855_vm1, %v2839_v49, %v2871_v9  ;;  %v5295_v0 = vsel %vm2903_vm6, %v2889_v58, -1e+30  ;;  %v2888_v3 = vsel %vm2856_vm10, %v2840_v18, %v2872_v59  ;;  %v2762_v22 = vperm.slane %v2617_v56, %v5249_v10 }
0x20d6   :  { %v5291_v62 = vsel %vm2903_vm6, %v2887_v60, -1e+30  ;;  %v2931_v1 = vsel %vm2596_vm4, %v5295_v0, -inf  ;;  %v5303_v4 = vsel %vm2904_vm8, %v2888_v3, -1e+30  ;;  %vm2858_vm13 = vcmp.gt.f32.partialorder %v2842_v29, 0.0 }
0x20d7   :  { %v2925_v46 = vsel %vm2596_vm4, %v5291_v62, -inf  ;;  %2932 = vmax.xlane.f32.xlu1 %v2931_v1  ;;  %v2928_v17 = vsel %vm2596_vm4, %v5303_v4, -inf  ;;  %v2874_v27 = vmul.f32 0.2, %v2842_v29  ;;  %v2765_v63 = vperm.slane %v5287_v32, %v5249_v10 }
0x20d8   :  { %2926 = vmax.xlane.f32.xlu2 %v2925_v46 }
0x20d9   :  { %v2890_v20 = vsel %vm2858_vm13, %v2842_v29, %v2874_v27 }
0x20da   :  { %v2705_v7 = vpop.xlane.xlu0 %2704  ;;  %v5329_v5 = vsel %vm2904_vm8, %v2890_v20, -1e+30 }
0x20db   :  { %v2934_v44 = vsel %vm2596_vm4, %v5329_v5, -inf }
0x20dc   :  { %v2729_v11 = vpop.xlane.xlu1 %2728 }
0x20dd   :  { %v2620_v38 = vpop.xlane.xlu2 %2619  ;;  %2929 = vmax.xlane.f32.xlu0 %v2928_v17 }
0x20de   :  { %v2763_v52 = vperm.slane %v2620_v38, %v5252_v51 }
0x20e0   :  { %v2764_v12 = vsel %vm2754_vm0, %v2763_v52, %v2762_v22 }
0x20e1   :  { %v2845_v36 = vadd.f32 %v2764_v12, %v2705_v7 }
0x20e2   :  { %v2626_v15 = vpop.xlane.xlu0 %2625 }
0x20e3   :  { %v2877_v13 = vmul.f32 0.2, %v2845_v36  ;;  %vm2861_vm11 = vcmp.gt.f32.partialorder %v2845_v36, 0.0  ;;  %v2766_v48 = vperm.slane %v2626_v15, %v5252_v51 }
0x20e4   :  { %v2638_v25 = vpop.xlane.xlu1 %2637 }
0x20e5   :  { %v2708_v24 = vpop.xlane.xlu2 %2707  ;;  %v2893_v26 = vsel %vm2861_vm11, %v2845_v36, %v2877_v13  ;;  %v2772_v6 = vperm.slane %v2638_v25, %v5252_v51  ;;  %v2767_v58 = vsel %vm2754_vm0, %v2766_v48, %v2765_v63 }
0x20e6   :  { %v2846_v33 = vadd.f32 %v2764_v12, %v2708_v24  ;;  %v5312_v61 = vsel %vm2903_vm6, %v2893_v26, -1e+30 }
0x20e7   :  { %v2943_v2 = vsel %vm2596_vm4, %v5312_v61, -inf }
0x20e8   :  { %vm2862_vm12 = vcmp.gt.f32.partialorder %v2846_v33, 0.0  ;;  %v2878_v50 = vmul.f32 0.2, %v2846_v33  ;;  %2944 = vmax.xlane.f32.xlu1 %v2943_v2 }
0x20ea   :  { %v2635_v31 = vpop.xlane.xlu0 %2634  ;;  %v2894_v30 = vsel %vm2862_vm12, %v2846_v33, %v2878_v50 }
0x20eb   :  { %v2771_v34 = vperm.slane %v2635_v31, %v5249_v10  ;;  %v5320_v19 = vsel %vm2904_vm8, %v2894_v30, -1e+30 }
0x20ec   :  { %v2946_v53 = vsel %vm2596_vm4, %v5320_v19, -inf  ;;  %v5324_v35 = vpop.xlane.xlu1 %2628 }
0x20ed   :  { %2947 = vmax.xlane.f32.xlu2 %v2946_v53  ;;  %v2723_v39 = vpop.xlane.xlu2 %2722  ;;  %v2773_v40 = vsel %vm2754_vm0, %v2772_v6, %v2771_v34  ;;  %v2768_v33 = vperm.slane %v5324_v35, %v5249_v10 }
0x20ee   :  { %v2851_v41 = vadd.f32 %v2773_v40, %v2723_v39 }
0x20f0   :  { %vm2867_vm14 = vcmp.gt.f32.partialorder %v2851_v41, 0.0  ;;  %v2883_v43 = vmul.f32 0.2, %v2851_v41 }
0x20f2   :  { %v2644_v55 = vpop.xlane.xlu0 %2643  ;;  %v2899_v14 = vsel %vm2867_vm14, %v2851_v41, %v2883_v43 }
0x20f3   :  { %v5333_v42 = vsel %vm2903_vm6, %v2899_v14, -1e+30  ;;  %v2775_v49 = vperm.slane %v2644_v55, %v5252_v51 }
0x20f4   :  { %v2726_v21 = vpop.xlane.xlu1 %2725  ;;  %v2961_v8 = vsel %vm2596_vm4, %v5333_v42, -inf }
0x20f5   :  { %2935 = vmax.xlane.f32.xlu2 %v2934_v44  ;;  %v2641_v45 = vpop.xlane.xlu2 %2640  ;;  %v2852_v47 = vadd.f32 %v2773_v40, %v2726_v21  ;;  %2962 = vmax.xlane.f32.xlu1 %v2961_v8 }
0x20f6   :  { %v2774_v18 = vperm.slane %v2641_v45, %v5249_v10 }
0x20f7   :  { %vm2868_vm15 = vcmp.gt.f32.partialorder %v2852_v47, 0.0  ;;  %v2884_v23 = vmul.f32 0.2, %v2852_v47 }
0x20f8   :  { %v2776_v9 = vsel %vm2754_vm0, %v2775_v49, %v2774_v18 }
0x20f9   :  { %v2853_v56 = vadd.f32 %v2776_v9, %v2729_v11  ;;  %v2900_v57 = vsel %vm2868_vm15, %v2852_v47, %v2884_v23 }
0x20fa   :  { %v2711_v59 = vpop.xlane.xlu0 %2710  ;;  %v5348_v60 = vsel %vm2904_vm8, %v2900_v57, -1e+30 }
0x20fb   :  { %v2847_v3 = vadd.f32 %v2767_v58, %v2711_v59  ;;  %v2964_v46 = vsel %vm2596_vm4, %v5348_v60, -inf  ;;  %vm2869_vm2 = vcmp.gt.f32.partialorder %v2853_v56, 0.0  ;;  %v2885_v1 = vmul.f32 0.2, %v2853_v56 }
0x20fc   :  { %v2714_v7 = vpop.xlane.xlu1 %2713 }
0x20fd   :  { %vm2863_vm3 = vcmp.gt.f32.partialorder %v2847_v3, 0.0  ;;  %v2879_v32 = vmul.f32 0.2, %v2847_v3  ;;  %v2632_v17 = vpop.xlane.xlu2 %2631  ;;  %2965 = vmax.xlane.f32.xlu2 %v2964_v46  ;;  %v2848_v11 = vadd.f32 %v2767_v58, %v2714_v7  ;;  %v2901_v38 = vsel %vm2869_vm2, %v2853_v56, %v2885_v1 }
0x20fe   :  { %v5354_v22 = vsel %vm2903_vm6, %v2901_v38, -1e+30  ;;  %v2769_v13 = vperm.slane %v2632_v17, %v5252_v51 }
0x20ff   :  { %vm2864_vm5 = vcmp.gt.f32.partialorder %v2848_v11, 0.0  ;;  %v2880_v52 = vmul.f32 0.2, %v2848_v11  ;;  %v2967_v12 = vsel %vm2596_vm4, %v5354_v22, -inf  ;;  %v2895_v36 = vsel %vm2863_vm3, %v2847_v3, %v2879_v32 }
0x2100   :  { %2968 = vmax.xlane.f32.xlu0 %v2967_v12  ;;  %v5360_v15 = vsel %vm2903_vm6, %v2895_v36, -1e+30  ;;  %v2770_v30 = vsel %vm2754_vm0, %v2769_v13, %v2768_v33 }
0x2101   :  { %v2949_v25 = vsel %vm2596_vm4, %v5360_v15, -inf  ;;  %v2896_v24 = vsel %vm2864_vm5, %v2848_v11, %v2880_v52 }
0x2102   :  { %v2732_v26 = vpop.xlane.xlu0 %2731  ;;  %2950 = vmax.xlane.f32.xlu1 %v2949_v25  ;;  %v5367_v29 = vsel %vm2904_vm8, %v2896_v24, -1e+30 }
0x2103   :  { %v2854_v2 = vadd.f32 %v2776_v9, %v2732_v26  ;;  %v2952_v50 = vsel %vm2596_vm4, %v5367_v29, -inf }
0x2105   :  { %vm2870_vm7 = vcmp.gt.f32.partialorder %v2854_v2, 0.0  ;;  %v2886_v27 = vmul.f32 0.2, %v2854_v2  ;;  %v2717_v31 = vpop.xlane.xlu2 %2716  ;;  %2953 = vmax.xlane.f32.xlu2 %v2952_v50 }
0x2106   :  { %v2849_v6 = vadd.f32 %v2770_v30, %v2717_v31 }
0x2107   :  { %v2902_v34 = vsel %vm2870_vm7, %v2854_v2, %v2886_v27 }
0x2108   :  { %vm2865_vm9 = vcmp.gt.f32.partialorder %v2849_v6, 0.0  ;;  %v2881_v53 = vmul.f32 0.2, %v2849_v6  ;;  %v5376_v39 = vsel %vm2904_vm8, %v2902_v34, -1e+30 }
0x2109   :  { %v2970_v35 = vsel %vm2596_vm4, %v5376_v39, -inf }
0x210a   :  { %2971 = vmax.xlane.f32.xlu1 %v2970_v35  ;;  %v2897_v40 = vsel %vm2865_vm9, %v2849_v6, %v2881_v53 }
0x210b   :  { %v5382_v41 = vsel %vm2903_vm6, %v2897_v40, -1e+30 }
0x210c   :  { %v2955_v20 = vsel %vm2596_vm4, %v5382_v41, -inf }
0x210d   :  { %v2720_v43 = vpop.xlane.xlu2 %2719  ;;  %2956 = vmax.xlane.f32.xlu0 %v2955_v20 }
0x210e   :  { %v2850_v55 = vadd.f32 %v2770_v30, %v2720_v43 }
0x2110   :  { %vm2866_vm1 = vcmp.gt.f32.partialorder %v2850_v55, 0.0  ;;  %v2882_v14 = vmul.f32 0.2, %v2850_v55 }
0x2112   :  { %v2898_v44 = vsel %vm2866_vm1, %v2850_v55, %v2882_v14 }
0x2113   :  { %v5388_v21 = vsel %vm2904_vm8, %v2898_v44, -1e+30 }
0x2114   :  { %v2958_v8 = vsel %vm2596_vm4, %v5388_v21, -inf }
0x2115   :  { %2959 = vmax.xlane.f32.xlu0 %v2958_v8 }
0x2140   :  { %v2939_v45 = vpop.xlane.xlu0 %2938 }
0x2141   :  { %v2977_v47 = vsub.f32 %v5265_v54, %v2939_v45 }
0x2143   :  { %v2997_v48 = vmul.f32 1.442695, %v2977_v47 }
0x2145   :  { %4114 = vpow2.f32 %v2997_v48 }
0x2148   :  { %v2942_v49 = vpop.xlane.xlu0 %2941 }
0x2149   :  { %v2978_v18 = vsub.f32 %v5283_v28, %v2942_v49 }
0x214a   :  { %v2933_v56 = vpop.xlane.xlu1 %2932 }
0x214b   :  { %v5394_v23 = vpop.eup %4114  ;;  %v2999_v63 = vmul.f32 1.442695, %v2978_v18  ;;  %v2927_v9 = vpop.xlane.xlu2 %2926  ;;  %v2975_v58 = vsub.f32 %v5295_v0, %v2933_v56 }
0x214c   :  { %v2973_v57 = vsub.f32 %v5291_v62, %v2927_v9  ;;  %v3033_v59 = vsel %vm2596_vm4, %v5394_v23, 0.0 }
0x214d   :  { %4116 = vpow2.f32 %v2999_v63  ;;  %3034 = vadd.xlane.f32.xlu1 %v3033_v59  ;;  %v2993_v3 = vmul.f32 1.442695, %v2975_v58 }
0x214e   :  { %v2989_v54 = vmul.f32 1.442695, %v2973_v57 }
0x2150   :  { %4118 = vpow2.f32 %v2989_v54  ;;  %v2930_v46 = vpop.xlane.xlu0 %2929 }
0x2151   :  { %4120 = vpow2.f32 %v2993_v3  ;;  %v2974_v28 = vsub.f32 %v5303_v4, %v2930_v46 }
0x2153   :  { %v5401_v1 = vpop.eup %4116  ;;  %v2991_v7 = vmul.f32 1.442695, %v2974_v28 }
0x2154   :  { %v3036_v62 = vsel %vm2596_vm4, %v5401_v1, 0.0 }
0x2155   :  { %4122 = vpow2.f32 %v2991_v7  ;;  %3037 = vadd.xlane.f32.xlu1 %v3036_v62 }
0x2156   :  { %v5405_v0 = vpop.eup %4118 }
0x2157   :  { %v5407_v32 = vpop.eup %4120  ;;  %v3021_v17 = vsel %vm2596_vm4, %v5405_v0, 0.0 }
0x2158   :  { %3022 = vadd.xlane.f32.xlu0 %v3021_v17  ;;  %v3027_v11 = vsel %vm2596_vm4, %v5407_v32, 0.0 }
0x2159   :  { %3028 = vadd.xlane.f32.xlu2 %v3027_v11 }
0x215b   :  { %v5413_v4 = vpop.eup %4122  ;;  %v2945_v38 = vpop.xlane.xlu1 %2944 }
0x215c   :  { %v2979_v52 = vsub.f32 %v5312_v61, %v2945_v38  ;;  %v3024_v12 = vsel %vm2596_vm4, %v5413_v4, 0.0 }
0x215d   :  { %3025 = vadd.xlane.f32.xlu1 %v3024_v12 }
0x215e   :  { %v3001_v36 = vmul.f32 1.442695, %v2979_v52 }
0x2160   :  { %4124 = vpow2.f32 %v3001_v36  ;;  %v2948_v13 = vpop.xlane.xlu2 %2947 }
0x2161   :  { %v2980_v25 = vsub.f32 %v5320_v19, %v2948_v13 }
0x2163   :  { %v3003_v24 = vmul.f32 1.442695, %v2980_v25 }
0x2165   :  { %4126 = vpow2.f32 %v3003_v24 }
0x2166   :  { %v5419_v26 = vpop.eup %4124 }
0x2167   :  { %v3039_v33 = vsel %vm2596_vm4, %v5419_v26, 0.0 }
0x2168   :  { %v2936_v2 = vpop.xlane.xlu2 %2935  ;;  %3040 = vadd.xlane.f32.xlu2 %v3039_v33  ;;  %v2963_v50 = vpop.xlane.xlu1 %2962 }
0x2169   :  { %v2976_v61 = vsub.f32 %v5329_v5, %v2936_v2  ;;  %v2985_v27 = vsub.f32 %v5333_v42, %v2963_v50 }
0x216b   :  { %v5425_v31 = vpop.eup %4126  ;;  %v2995_v30 = vmul.f32 1.442695, %v2976_v61  ;;  %v3013_v6 = vmul.f32 1.442695, %v2985_v27 }
0x216c   :  { %v3042_v19 = vsel %vm2596_vm4, %v5425_v31, 0.0 }
0x216d   :  { %4128 = vpow2.f32 %v2995_v30  ;;  %3043 = vadd.xlane.f32.xlu0 %v3042_v19 }
0x216e   :  { %4130 = vpow2.f32 %v3013_v6 }
0x2170   :  { %v2966_v34 = vpop.xlane.xlu2 %2965 }
0x2171   :  { %v2986_v53 = vsub.f32 %v5348_v60, %v2966_v34 }
0x2173   :  { %v5430_v35 = vpop.eup %4128  ;;  %v3015_v40 = vmul.f32 1.442695, %v2986_v53  ;;  %v2969_v20 = vpop.xlane.xlu0 %2968 }
0x2174   :  { %v5432_v5 = vpop.eup %4130  ;;  %v2987_v42 = vsub.f32 %v5354_v22, %v2969_v20  ;;  %v3030_v43 = vsel %vm2596_vm4, %v5430_v35, 0.0 }
0x2175   :  { %4132 = vpow2.f32 %v3015_v40  ;;  %3031 = vadd.xlane.f32.xlu0 %v3030_v43  ;;  %v3057_v55 = vsel %vm2596_vm4, %v5432_v5, 0.0  ;;  %v2951_v14 = vpop.xlane.xlu1 %2950 }
0x2176   :  { %v3017_v44 = vmul.f32 1.442695, %v2987_v42  ;;  %3058 = vadd.xlane.f32.xlu2 %v3057_v55  ;;  %v2981_v60 = vsub.f32 %v5360_v15, %v2951_v14 }
0x2178   :  { %4134 = vpow2.f32 %v3017_v44  ;;  %v3005_v8 = vmul.f32 1.442695, %v2981_v60  ;;  %v2954_v45 = vpop.xlane.xlu2 %2953 }
0x2179   :  { %v2982_v47 = vsub.f32 %v5367_v29, %v2954_v45 }
0x217a   :  { %4136 = vpow2.f32 %v3005_v8 }
0x217b   :  { %v5441_v22 = vpop.eup %4132  ;;  %v3007_v48 = vmul.f32 1.442695, %v2982_v47 }
0x217c   :  { %v3060_v49 = vsel %vm2596_vm4, %v5441_v22, 0.0 }
0x217d   :  { %4138 = vpow2.f32 %v3007_v48  ;;  %3061 = vadd.xlane.f32.xlu0 %v3060_v49  ;;  %v2972_v18 = vpop.xlane.xlu1 %2971 }
0x217e   :  { %v5445_v63 = vpop.eup %4134  ;;  %v2988_v9 = vsub.f32 %v5376_v39, %v2972_v18 }
0x217f   :  { %v3063_v15 = vsel %vm2596_vm4, %v5445_v63, 0.0 }
0x2180   :  { %v5450_v56 = vpop.eup %4136  ;;  %v3019_v29 = vmul.f32 1.442695, %v2988_v9  ;;  %3064 = vadd.xlane.f32.xlu1 %v3063_v15  ;;  %v2957_v57 = vpop.xlane.xlu0 %2956 }
0x2181   :  { %v2983_v58 = vsub.f32 %v5382_v41, %v2957_v57  ;;  %v3045_v59 = vsel %vm2596_vm4, %v5450_v56, 0.0 }
0x2182   :  { %4140 = vpow2.f32 %v3019_v29  ;;  %3046 = vadd.xlane.f32.xlu2 %v3045_v59 }
0x2183   :  { %v5455_v54 = vpop.eup %4138  ;;  %v3009_v3 = vmul.f32 1.442695, %v2983_v58 }
0x2184   :  { %v3048_v39 = vsel %vm2596_vm4, %v5455_v54, 0.0 }
0x2185   :  { %4142 = vpow2.f32 %v3009_v3  ;;  %3049 = vadd.xlane.f32.xlu0 %v3048_v39  ;;  %v3334_v39 = vld [vmem:[%s5633_s15 + $0x8] sm:$0xff] }
0x2188   :  { %v5459_v46 = vpop.eup %4140  ;;  %v2960_v28 = vpop.xlane.xlu0 %2959 }
0x2189   :  { %v2984_v7 = vsub.f32 %v5388_v21, %v2960_v28  ;;  %v3066_v41 = vsel %vm2596_vm4, %v5459_v46, 0.0  ;;  %v3333_v28 = vld [vmem:[%s5633_s15] sm:$0xff] }
0x218a   :  { %3067 = vadd.xlane.f32.xlu2 %v3066_v41  ;;  %v3340_v41 = vld [vmem:[%s5633_s15 + $0x38] sm:$0xff] }
0x218b   :  { %v5464_v62 = vpop.eup %4142  ;;  %v3011_v17 = vmul.f32 1.442695, %v2984_v7  ;;  %v3335_v7 = vld [vmem:[%s5633_s15 + $0x10] sm:$0xff] }
0x218c   :  { %v3051_v11 = vsel %vm2596_vm4, %v5464_v62, 0.0 }
0x218d   :  { %4144 = vpow2.f32 %v3011_v17  ;;  %3052 = vadd.xlane.f32.xlu1 %v3051_v11  ;;  %v3346_v11 = vld [vmem:[%s5633_s15 + $0x68] sm:$0xff] }
0x2193   :  { %v5468_v38 = vpop.eup %4144 }
0x2194   :  { %v3054_v52 = vsel %vm2596_vm4, %v5468_v38, 0.0 }
0x2195   :  { %3055 = vadd.xlane.f32.xlu1 %v3054_v52 }
0x21c0   :  { %v3035_v12 = vpop.xlane.xlu1 %3034 }
0x21c1   :  { %4146 = vrcp.f32 %v3035_v12 }
0x21c7   :  { %v4147_v21 = vpop.eup %4146 }
0x21c8   :  { %v3089_v36 = vmul.f32 %v4147_v21, %v5394_v23  ;;  %v3038_v13 = vpop.xlane.xlu1 %3037  ;;  %v3342_v21 = vld [vmem:[%s5633_s15 + $0x48] sm:$0xff] }
0x21c9   :  { %4148 = vrcp.f32 %v3038_v13  ;;  %v3348_v13 = vld [vmem:[%s5633_s15 + $0x78] sm:$0xff] }
0x21ca   :  { %3858 = vmatmul.msk.f32.vlgmr.msra.gmra.mxu2 %vm2596_vm4, %v3089_v36  ;;  %v3345_v36 = vld [vmem:[%s5633_s15 + $0x60] sm:$0xff] }
0x21cb   :  { %v3023_v25 = vpop.xlane.xlu0 %3022 }
0x21cc   :  { %4150 = vrcp.f32 %v3023_v25  ;;  %v3029_v24 = vpop.xlane.xlu2 %3028  ;;  %v3344_v25 = vld [vmem:[%s5633_s15 + $0x58] sm:$0xff] }
0x21cd   :  { %4152 = vrcp.f32 %v3029_v24 }
0x21cf   :  { %v4149_v33 = vpop.eup %4148 }
0x21d0   :  { %v3026_v2 = vpop.xlane.xlu1 %3025  ;;  %v3090_v50 = vmul.f32 %v4149_v33, %v5401_v1  ;;  %v3341_v33 = vld [vmem:[%s5633_s15 + $0x40] sm:$0xff] }
0x21d1   :  { %4154 = vrcp.f32 %v3026_v2  ;;  %v3347_v2 = vld [vmem:[%s5633_s15 + $0x70] sm:$0xff] }
0x21d2   :  { %v4151_v61 = vpop.eup %4150  ;;  %3859 = vmatmul.msk.f32.gmra.mxu2 %vm2596_vm4, %v3090_v50  ;;  %v3343_v50 = vld [vmem:[%s5633_s15 + $0x50] sm:$0xff] }
0x21d3   :  { %v4153_v27 = vpop.eup %4152  ;;  %v3085_v30 = vmul.f32 %v4151_v61, %v5405_v0 }
0x21d4   :  { %v3087_v23 = vmul.f32 %v4153_v27, %v5407_v32 }
0x21d5   :  { %3854 = vmatmul.msk.f32.vlgmr.msrb.gmra.mxu0 %vm2596_vm4, %v3085_v30 }
0x21d6   :  { %3856 = vmatmul.msk.f32.vlgmr.msrb.gmra.mxu1 %vm2596_vm4, %v3087_v23  ;;  %3369 = vmatpush.msrb.mxu0 %v3334_v39 }
0x21d7   :  { %v4155_v6 = vpop.eup %4154 }
0x21d8   :  { %v3086_v34 = vmul.f32 %v4155_v6, %v5413_v4  ;;  %3370 = vmatpush.msrb.mxu0 %v3333_v28  ;;  %v3918_v28 = vld [vmem:[%s5634_s16] ss:$0 sm:$0xff] }
0x21db   :  { %v3041_v19 = vpop.xlane.xlu2 %3040 }
0x21dc   :  { %4156 = vrcp.f32 %v3041_v19 }
0x21dd   :  { %3855 = vmatmul.msk.f32.gmra.mxu0 %vm2596_vm4, %v3086_v34 }
0x21e0   :  { %v3044_v1 = vpop.xlane.xlu0 %3043 }
0x21e1   :  { %4158 = vrcp.f32 %v3044_v1 }
0x21e2   :  { %v4157_v53 = vpop.eup %4156 }
0x21e3   :  { %v3091_v40 = vmul.f32 %v4157_v53, %v5419_v26  ;;  %v3338_v26 = vld [vmem:[%s5633_s15 + $0x28] sm:$0xff] }
0x21e4   :  { %3427 = vmatpush.msra.mxu2 %v3338_v26 }
0x21e5   :  { %3860 = vmatmul.msk.f32.vlgmr.msrb.gmra.mxu3 %vm2596_vm4, %v3091_v40 }
0x21e6   :  { %3456 = vmatpush.msrb.mxu3 %v3340_v41 }
0x21e7   :  { %v4159_v0 = vpop.eup %4158 }
0x21e8   :  { %v3032_v32 = vpop.xlane.xlu0 %3031  ;;  %v3092_v42 = vmul.f32 %v4159_v0, %v5425_v31 }
0x21e9   :  { %4160 = vrcp.f32 %v3032_v32  ;;  %v3059_v20 = vpop.xlane.xlu2 %3058 }
0x21ea   :  { %4162 = vrcp.f32 %v3059_v20 }
0x21ed   :  { %3861 = vmatmul.msk.f32.gmra.mxu3 %vm2596_vm4, %v3092_v42 }
0x21ef   :  { %v4161_v4 = vpop.eup %4160 }
0x21f0   :  { %v4163_v43 = vpop.eup %4162  ;;  %v3062_v55 = vpop.xlane.xlu0 %3061  ;;  %v3088_v14 = vmul.f32 %v4161_v4, %v5430_v35 }
0x21f1   :  { %v3097_v44 = vmul.f32 %v4163_v43, %v5432_v5  ;;  %4164 = vrcp.f32 %v3062_v55 }
0x21f2   :  { %3857 = vmatmul.msk.f32.gmra.mxu1 %vm2596_vm4, %v3088_v14 }
0x21f3   :  { %3866 = vmatmul.msk.f32.vlgmr.msrb.gmra.mxu2 %vm2596_vm4, %v3097_v44  ;;  %v3065_v60 = vpop.xlane.xlu1 %3064 }
0x21f4   :  { %4166 = vrcp.f32 %v3065_v60 }
0x21f5   :  { %v3047_v31 = vpop.xlane.xlu2 %3046 }
0x21f6   :  { %4168 = vrcp.f32 %v3047_v31 }
0x21f7   :  { %v4165_v8 = vpop.eup %4164 }
0x21f8   :  { %v3098_v45 = vmul.f32 %v4165_v8, %v5441_v22  ;;  %v3050_v35 = vpop.xlane.xlu0 %3049 }
0x21f9   :  { %4170 = vrcp.f32 %v3050_v35 }
0x21fa   :  { %v4167_v47 = vpop.eup %4166 }
0x21fb   :  { %v3099_v5 = vmul.f32 %v4167_v47, %v5445_v63  ;;  %3867 = vmatmul.msk.f32.gmra.mxu2 %vm2596_vm4, %v3098_v45 }
0x21fc   :  { %v4169_v48 = vpop.eup %4168 }
0x21fd   :  { %v3093_v49 = vmul.f32 %v4169_v48, %v5450_v56  ;;  %3868 = vmatmul.msk.f32.vlgmr.msra.gmra.mxu3 %vm2596_vm4, %v3099_v5  ;;  %v3068_v18 = vpop.xlane.xlu2 %3067 }
0x21fe   :  { %4172 = vrcp.f32 %v3068_v18 }
0x21ff   :  { %3862 = vmatmul.msk.f32.vlgmr.msra.gmra.mxu0 %vm2596_vm4, %v3093_v49  ;;  %v4171_v15 = vpop.eup %4170 }
0x2200   :  { %v3053_v9 = vpop.xlane.xlu1 %3052  ;;  %v3094_v29 = vmul.f32 %v4171_v15, %v5455_v54  ;;  %v3337_v54 = vld [vmem:[%s5633_s15 + $0x20] sm:$0xff]  ;;  %3485 = vmatpush.msra.mxu0 %v3342_v21 }
0x2201   :  { %4174 = vrcp.f32 %v3053_v9  ;;  %3428 = vmatpush.msra.mxu2 %v3337_v54 }
0x2202   :  { %3486 = vmatpush.msra.mxu0 %v3341_v33 }
0x2203   :  { %3543 = vmatpush.msrb.mxu2 %v3346_v11  ;;  %v3919_v11 = vld [vmem:[%s5636_s18] ss:$0 sm:$0xff]  ;;  %s4217_s18 = smov [#allocation4]  }
0x2204   :  { %v4173_v22 = vpop.eup %4172  ;;  %s3726_s23 = sshll.u32 %s4217_s18, 4  ;;  %s3727_s23 = int_to_ptr.vmem [resolvable:$true] %s3726_s23 }
0x2205   :  { %v3100_v63 = vmul.f32 %v4173_v22, %v5459_v46  ;;  %v3336_v46 = vld [vmem:[%s5633_s15 + $0x18] sm:$0xff]  ;;  %3544 = vmatpush.msrb.mxu2 %v3345_v36 }
0x2206   :  { %3398 = vmatpush.msrb.mxu1 %v3336_v46 }
0x2207   :  { %v4175_v57 = vpop.eup %4174  ;;  %3863 = vmatmul.msk.f32.gmra.mxu0 %vm2596_vm4, %v3094_v29  ;;  %3869 = vmatmul.msk.f32.gmra.mxu3 %vm2596_vm4, %v3100_v63 }
0x2208   :  { %v3095_v56 = vmul.f32 %v4175_v57, %v5464_v62  ;;  %v3056_v58 = vpop.xlane.xlu1 %3055  ;;  %3399 = vmatpush.msrb.mxu1 %v3335_v7  ;;  %v3339_v62 = vld [vmem:[%s5633_s15 + $0x30] sm:$0xff] }
0x2209   :  { %4176 = vrcp.f32 %v3056_v58  ;;  %3457 = vmatpush.msrb.mxu3 %v3339_v62 }
0x220a   :  { %3864 = vmatmul.msk.f32.vlgmr.msra.gmra.mxu1 %vm2596_vm4, %v3095_v56 }
0x220b   :  { %3572 = vmatpush.msra.mxu3 %v3348_v13  ;;  %3514 = vmatpush.msra.mxu1 %v3344_v25 }
0x220d   :  { %3573 = vmatpush.msra.mxu3 %v3347_v2  ;;  %3515 = vmatpush.msra.mxu1 %v3343_v50 }
0x220f   :  { %v4177_v59 = vpop.eup %4176 }
0x2210   :  { %v3096_v3 = vmul.f32 %v4177_v59, %v5468_v38 }
0x2212   :  { %3865 = vmatmul.msk.f32.gmra.mxu1 %vm2596_vm4, %v3096_v3 }
0x224d   :  { %v3182_v17 = vpop.f32.mrf.mxu2 }
0x224e   :  { %3874 = vmatmul.msk.f32.vlgmr.msra.gmra.mxu2 %vm2596_vm4, %v3182_v17 }
0x2252   :  { %v3124_v38 = vpop.f32.mrf.mxu0 }
0x2253   :  { %v3153_v52 = vpop.f32.mrf.mxu1  ;;  %3870 = vmatmul.msk.f32.vlgmr.msrb.gmra.mxu0 %vm2596_vm4, %v3124_v38  ;;  %v3920_v38 = vld [vmem:[%s5635_s17] ss:$0 sm:$0xff] }
0x2254   :  { %3872 = vmatmul.msk.f32.vlgmr.msrb.gmra.mxu1 %vm2596_vm4, %v3153_v52 }
0x2255   :  { %v3185_v12 = vpop.f32.mrf.mxu2 }
0x2256   :  { %3875 = vmatmul.msk.f32.gmra.mxu2 %vm2596_vm4, %v3185_v12 }
0x225a   :  { %v3127_v24 = vpop.f32.mrf.mxu0 }
0x225b   :  { %3871 = vmatmul.msk.f32.gmra.mxu0 %vm2596_vm4, %v3127_v24 }
0x2268   :  { %v3211_v61 = vpop.f32.mrf.mxu3 }
0x2269   :  { %3876 = vmatmul.msk.f32.vlgmr.msrb.gmra.mxu3 %vm2596_vm4, %v3211_v61 }
0x226f   :  { %v3156_v27 = vpop.f32.mrf.mxu1 }
0x2270   :  { %v3214_v30 = vpop.f32.mrf.mxu3  ;;  %3873 = vmatmul.msk.f32.gmra.mxu1 %vm2596_vm4, %v3156_v27 }
0x2271   :  { %3877 = vmatmul.msk.f32.gmra.mxu3 %vm2596_vm4, %v3214_v30 }
0x2276   :  { %v3298_v23 = vpop.f32.mrf.mxu2 }
0x2277   :  { %3882 = vmatmul.msk.f32.vlgmr.msrb.gmra.mxu2 %vm2596_vm4, %v3298_v23 }
0x227c   :  { %v3240_v6 = vpop.f32.mrf.mxu0 }
0x227d   :  { %3878 = vmatmul.msk.f32.vlgmr.msra.gmra.mxu0 %vm2596_vm4, %v3240_v6 }
0x227e   :  { %v3301_v19 = vpop.f32.mrf.mxu2 }
0x227f   :  { %3883 = vmatmul.msk.f32.gmra.mxu2 %vm2596_vm4, %v3301_v19 }
0x2280   :  { %v3327_v34 = vpop.f32.mrf.mxu3 }
0x2281   :  { %3884 = vmatmul.msk.f32.vlgmr.msra.gmra.mxu3 %vm2596_vm4, %v3327_v34 }
0x2284   :  { %v3243_v1 = vpop.f32.mrf.mxu0 }
0x2285   :  { %3879 = vmatmul.msk.f32.gmra.mxu0 %vm2596_vm4, %v3243_v1 }
0x2287   :  { %v3269_v53 = vpop.f32.mrf.mxu1 }
0x2288   :  { %3880 = vmatmul.msk.f32.vlgmr.msra.gmra.mxu1 %vm2596_vm4, %v3269_v53 }
0x228a   :  { %v3330_v40 = vpop.f32.mrf.mxu3 }
0x228b   :  { %3885 = vmatmul.msk.f32.gmra.mxu3 %vm2596_vm4, %v3330_v40 }
0x228f   :  { %v3272_v0 = vpop.f32.mrf.mxu1 }
0x2290   :  { %3881 = vmatmul.msk.f32.gmra.mxu1 %vm2596_vm4, %v3272_v0 }
0x22d0   :  { %v3372_v32 = vpop.f32.mrf.mxu0 }
0x22d1   :  { %v3430_v20 = vpop.f32.mrf.mxu2  ;;  %v3401_v42 = vpop.f32.mrf.mxu1  ;;  %v3581_v55 = vsel %vm2596_vm4, %v3372_v32, 0.0 }
0x22d2   :  { %v3582_v14 = vsel %vm2596_vm4, %v3401_v42, 0.0  ;;  %v3584_v8 = vsel %vm2596_vm4, %v3430_v20, 0.0 }
0x22d3   :  { %v3583_v26 = vadd.f32 %v3582_v14, %v3581_v55 }
0x22d5   :  { %v3585_v47 = vadd.f32 %v3584_v8, %v3583_v26 }
0x22d8   :  { %v3375_v4 = vpop.f32.mrf.mxu0 }
0x22d9   :  { %v3433_v44 = vpop.f32.mrf.mxu2  ;;  %v3596_v9 = vsel %vm2596_vm4, %v3375_v4, 0.0 }
0x22da   :  { %v3599_v59 = vsel %vm2596_vm4, %v3433_v44, 0.0 }
0x22ec   :  { %v3459_v43 = vpop.f32.mrf.mxu3 }
0x22ed   :  { %v3404_v60 = vpop.f32.mrf.mxu1  ;;  %v3586_v35 = vsel %vm2596_vm4, %v3459_v43, 0.0 }
0x22ee   :  { %v3597_v5 = vsel %vm2596_vm4, %v3404_v60, 0.0  ;;  %v3587_v49 = vadd.f32 %v3586_v35, %v3585_v47 }
0x22ef   :  { %v3598_v15 = vadd.f32 %v3597_v5, %v3596_v9 }
0x22f1   :  { %v3600_v39 = vadd.f32 %v3599_v59, %v3598_v15 }
0x22f4   :  { %v3462_v45 = vpop.f32.mrf.mxu3 }
0x22f5   :  { %v3601_v3 = vsel %vm2596_vm4, %v3462_v45, 0.0 }
0x22f6   :  { %v3602_v62 = vadd.f32 %v3601_v3, %v3600_v39  ;;  %v3921_v3 = vld [vmem:[%s5637_s19] ss:$0 sm:$0xff]  ;;  %s4219_s19 = smov 8  }
0x22fa   :  { %v3488_v31 = vpop.f32.mrf.mxu0  ;;  %v3546_v18 = vpop.f32.mrf.mxu2 }
0x22fb   :  { %v3588_v48 = vsel %vm2596_vm4, %v3488_v31, 0.0  ;;  %v3592_v54 = vsel %vm2596_vm4, %v3546_v18, 0.0 }
0x22fc   :  { %v3589_v22 = vadd.f32 %v3588_v48, %v3587_v49 }
0x2302   :  { %v3491_v57 = vpop.f32.mrf.mxu0  ;;  %v3549_v52 = vpop.f32.mrf.mxu2 }
0x2303   :  { %v3603_v7 = vsel %vm2596_vm4, %v3491_v57, 0.0  ;;  %v3607_v50 = vsel %vm2596_vm4, %v3549_v52, 0.0 }
0x2304   :  { %v3575_v56 = vpop.f32.mrf.mxu3  ;;  %v3604_v12 = vadd.f32 %v3603_v7, %v3602_v62 }
0x2305   :  { %v3517_v29 = vpop.f32.mrf.mxu1  ;;  %v3594_v41 = vsel %vm2596_vm4, %v3575_v56, 0.0 }
0x2306   :  { %v3590_v63 = vsel %vm2596_vm4, %v3517_v29, 0.0 }
0x2307   :  { %v3591_v58 = vadd.f32 %v3590_v63, %v3589_v22 }
0x2309   :  { %v3593_v46 = vadd.f32 %v3592_v54, %v3591_v58 }
0x230b   :  { %v3595_v17 = vadd.f32 %v3594_v41, %v3593_v46 }
0x230d   :  { %v3520_v21 = vpop.f32.mrf.mxu1  ;;  %v3615_v36 = vadd.f32 %v3918_v28, %v3595_v17 }
0x230e   :  { %v3605_v13 = vsel %vm2596_vm4, %v3520_v21, 0.0  ;;  %v3578_v24 = vpop.f32.mrf.mxu3 }
0x230f   :  { %v3606_v25 = vadd.f32 %v3605_v13, %v3604_v12  ;;  %v3633_v33 = vmul.f32 %v3919_v11, %v3615_v36  ;;  %v3622_v2 = vmul.f32 %v3920_v38, %v3615_v36  ;;  %v3609_v23 = vsel %vm2596_vm4, %v3578_v24, 0.0 }
0x2311   :  { %v3608_v61 = vadd.f32 %v3607_v50, %v3606_v25  ;;  %v3635_v27 = vsel %vm2596_vm4, %v3633_v33, 0.0  ;;  %v3624_v30 = vsel %vm2596_vm4, %v3622_v2, 0.0 }
0x2312   :  { %3636 = vadd.xlane.f32.xlu1 %v3635_v27  ;;  %3625 = vadd.xlane.f32.xlu2 %v3624_v30 }
0x2313   :  { %v3610_v6 = vadd.f32 %v3609_v23, %v3608_v61 }
0x2315   :  { %v3616_v19 = vadd.f32 %v3918_v28, %v3610_v6 }
0x2317   :  { %3709 = vmatpush.msrb.mxu0 %v3616_v19  ;;  %v3634_v34 = vmul.f32 %v3919_v11, %v3616_v19  ;;  %v3623_v1 = vmul.f32 %v3920_v38, %v3616_v19 }
0x2319   :  { %3710 = vmatpush.msrb.mxu0 %v3615_v36  ;;  %v3638_v53 = vsel %vm2596_vm4, %v3634_v34, 0.0  ;;  %v3627_v40 = vsel %vm2596_vm4, %v3623_v1, 0.0 }
0x231a   :  { %3639 = vadd.xlane.f32.xlu2 %v3638_v53  ;;  %3628 = vadd.xlane.f32.xlu0 %v3627_v40 }
0x2385   :  { %v3626_v0 = vpop.xlane.xlu2 %3625  ;;  %v3637_v4 = vpop.xlane.xlu1 %3636 }
0x2386   :  { %v3643_v20 = vperm.slane %v3626_v0, %v5249_v10 }
0x238d   :  { %v3629_v32 = vpop.xlane.xlu0 %3628  ;;  %v3640_v43 = vpop.xlane.xlu2 %3639 }
0x238e   :  { %v3644_v42 = vperm.slane %v3629_v32, %v5252_v51 }
0x2390   :  { %v3645_v55 = vsel %vm2754_vm0, %v3644_v42, %v3643_v20 }
0x2391   :  { %v3653_v14 = vadd.f32 %v3645_v55, %v3637_v4  ;;  %v3654_v44 = vadd.f32 %v3645_v55, %v3640_v43 }
0x2393   :  { %vm3656_vm10 = vcmp.gt.f32.partialorder %v3654_v44, 0.0  ;;  %v3658_v26 = vmul.f32 0.2, %v3654_v44  ;;  %vm3655_vm11 = vcmp.gt.f32.partialorder %v3653_v14, 0.0  ;;  %v3657_v60 = vmul.f32 0.2, %v3653_v14 }
0x2395   :  { %v3660_v31 = vsel %vm3656_vm10, %v3654_v44, %v3658_v26  ;;  %v3659_v8 = vsel %vm3655_vm11, %v3653_v14, %v3657_v60 }
0x2396   :  { %v3662_v45 = vsel %vm2904_vm8, %v3660_v31, -1e+30  ;;  %v3661_v10 = vsel %vm2903_vm6, %v3659_v8, -1e+30 }
0x2397   :  { %v3666_v51 = vsel %vm2596_vm4, %v3662_v45, -inf  ;;  %v3663_v35 = vsel %vm2596_vm4, %v3661_v10, -inf }
0x2398   :  { %3667 = vmax.xlane.f32.xlu1 %v3666_v51  ;;  %3664 = vmax.xlane.f32.xlu0 %v3663_v35 }
0x240b   :  { %v3668_v47 = vpop.xlane.xlu1 %3667  ;;  %v3665_v5 = vpop.xlane.xlu0 %3664 }
0x240c   :  { %v3670_v48 = vsub.f32 %v3662_v45, %v3668_v47  ;;  %v3669_v49 = vsub.f32 %v3661_v10, %v3665_v5 }
0x240e   :  { %v3673_v18 = vmul.f32 1.442695, %v3670_v48  ;;  %v3671_v9 = vmul.f32 1.442695, %v3669_v49 }
0x2410   :  { %4178 = vpow2.f32 %v3673_v18 }
0x2411   :  { %4180 = vpow2.f32 %v3671_v9 }
0x2416   :  { %v4179_v15 = vpop.eup %4178 }
0x2417   :  { %v4181_v16 = vpop.eup %4180  ;;  %v3678_v22 = vsel %vm2596_vm4, %v4179_v15, 0.0 }
0x2418   :  { %3679 = vadd.xlane.f32.xlu0 %v3678_v22  ;;  %v3675_v37 = vsel %vm2596_vm4, %v4181_v16, 0.0 }
0x2419   :  { %3676 = vadd.xlane.f32.xlu2 %v3675_v37 }
0x248b   :  { %v3680_v63 = vpop.xlane.xlu0 %3679 }
0x248c   :  { %v3677_v29 = vpop.xlane.xlu2 %3676 }
0x248d   :  { %4182 = vrcp.f32 %v3677_v29 }
0x248e   :  { %4184 = vrcp.f32 %v3680_v63 }
0x2493   :  { %v4183_v57 = vpop.eup %4182 }
0x2494   :  { %v3683_v56 = vmul.f32 %v4183_v57, %v4181_v16  ;;  %v4185_v58 = vpop.eup %4184 }
0x2495   :  { %v3684_v59 = vmul.f32 %v4185_v58, %v4179_v15 }
0x2496   :  { %3886 = vmatmul.msk.f32.vlgmr.msrb.gmra.mxu0 %vm2596_vm4, %v3683_v56 }
0x249e   :  { %3887 = vmatmul.msk.f32.gmra.mxu0 %vm2596_vm4, %v3684_v59 }
0x2513   :  { %v3712_v54 = vpop.f32.mrf.mxu0 }
0x2514   :  { %v3713_v39 = vadd.f32 %v3921_v3, %v3712_v54 }
0x2516   :  { %v3718_v46 = vsel %vm2596_vm4, %v3713_v39, 0.0 }
0x2517   :  { %3720 = vst [vmem:[#allocation4] sm:$0xff] %v3718_v46 }
0x251b   :  { %v3715_v28 = vpop.f32.mrf.mxu0 }
0x251c   :  { %v3716_v7 = vadd.f32 %v3921_v3, %v3715_v28 }
0x251e   :  { %v3719_v41 = vsel %vm2596_vm4, %v3716_v7, 0.0 }
0x251f   :  { %3721 = vst [vmem:[#allocation4 + $0x8] sm:$0xff] %v3719_v41 }
0x2520   :  { %3734 = dma.vmem_to_hbm [thread:$0]  %s3727_s23, 256, %s3729_s7, [#allocation5], %s4218_s9, %s4218_s9, %s4219_s19  }
0x2521   :  { %4212 = dma.done.wait [#allocation5], 256  }
0x2522   :  { %4213 = vsyncadd [#allocation5], 4294967040 }
0x2523   :  { %3739 = vsyncpa [#allocation5], 1 }

</bundles_post_ra>
